<compile_context>
chip_gen: v7x
topology: tpu7x:2x2x1
jax: 0.10.0
libtpu: 0.0.40
codegen_flags: <defaults>
</compile_context>

<pallas_src>
import numpy as np

import jax
import jax.numpy as jnp
from jax import lax
from jax.experimental import pallas as pl
from jax.experimental.pallas import tpu as pltpu


# ----------------------------- kernel ---------------------------------------
def basic_block_kernel(x_ref, w1_ref, b1_ref, w2_ref, b2_ref, out_ref,
                       xp_scr, yp_scr):
    """One grid step processes NB samples (a chunk of the batch).

    x_ref  : (NB, D, Kin)   f32        w1_ref: (3*Kin,  Kout) bf16 kd-concat banded
    b*_ref : (1, Kout)      f32        w2_ref: (3*Kout, Kout) bf16
    out_ref: (NB, D, Kout)  f32
    xp_scr : (NB*(D+2), Kin)  bf16  D-padded input slab (zero halo rows)
    yp_scr : (NB*(D+2), Kout) bf16  D-padded conv1-output slab
    """
    NB, D, Kin = x_ref.shape
    Kout = out_ref.shape[2]
    P = D + 2
    M = NB * P

    zin = jnp.zeros((1, Kin), xp_scr.dtype)
    zout = jnp.zeros((1, Kout), yp_scr.dtype)

    # Scatter the NB samples into the D-padded slab as bf16 MXU operands.  The
    # per-sample zero halo rows both implement SAME padding along D and keep
    # samples from bleeding into each other once the batch is folded into M.
    for n in range(NB):                                    # NB static & small
        b = n * P
        xp_scr[b:b + 1, :] = zin
        xp_scr[b + D + 1:b + D + 2, :] = zin
        xp_scr[b + 1:b + 1 + D, :] = x_ref[n].astype(xp_scr.dtype)
        yp_scr[b:b + 1, :] = zout
        yp_scr[b + D + 1:b + D + 2, :] = zout

    def dconv3(slab_ref, wcat_ref):
        # SAME conv along D as ONE long-K matmul: LHS row j is
        # [slab[j] | slab[j+1] | slab[j+2]] (K -> 3K); weights kd-concatenated.
        lhs = jnp.concatenate([slab_ref[0:M - 2, :],
                               slab_ref[1:M - 1, :],
                               slab_ref[2:M, :]], axis=1)
        return jnp.dot(lhs, wcat_ref[...], preferred_element_type=jnp.float32)

    # ---- conv1 + bn1 (scale folded into weights) + relu --------------------
    y = jnp.maximum(dconv3(xp_scr, w1_ref) + b1_ref[...], 0.0)   # (M-2, Kout) f32

    # Intermediate never leaves VMEM: re-pad it into the second slab.
    for n in range(NB):
        b = n * P
        yp_scr[b + 1:b + 1 + D, :] = y[b:b + D, :].astype(yp_scr.dtype)

    # ---- conv2 + bn2 + residual add + relu ----------------------------------
    z = dconv3(yp_scr, w2_ref) + b2_ref[...]                     # (M-2, Kout) f32
    for n in range(NB):
        b = n * P
        out_ref[n] = jnp.maximum(z[b:b + D, :] + x_ref[n], 0.0).astype(out_ref.dtype)


# ----------------------------- wrapper ---------------------------------------
def _pick_samples_per_step(N, D, target_rows=256):
    """Fold as many samples as possible into the matmul M dim (<= ~target_rows)."""
    nb = max(1, min(N, target_rows // (D + 2)))
    while N % nb:
        nb -= 1
    return nb


def basic_block_forward(x_ndhwc, params, samples_per_step=None):
    """x_ndhwc: (N, D, H, W, C) channels-last activations (f32)."""
    N, D, H, W, C = x_ndhwc.shape
    w1c, w2c = params["w1c"], params["w2c"]
    b1, b2 = params["b1"], params["b2"]
    Kin = H * W * C
    Kout = w1c.shape[-1]
    assert w1c.shape[0] == 3 * Kin and Kin == Kout, \
        "stride=1 / downsample=None requires in_planes == planes"

    NB = samples_per_step or _pick_samples_per_step(N, D)
    assert N % NB == 0

    x_flat = x_ndhwc.reshape(N, D, Kin)          # lane-dense (>=128) last dim

    # Advisory cost hint: bf16 weight DMA dominates at these shapes.
    flops = 2 * 2 * N * (D + 2) * (3 * Kin) * Kout
    bytes_accessed = ((3 * Kin + 3 * Kout) * Kout * 2          # bf16 weights
                      + x_flat.size * x_flat.dtype.itemsize    # activations in
                      + N * D * Kout * x_flat.dtype.itemsize)  # activations out

    const = dict(pipeline_mode=pl.Buffered(1))   # single-buffer the constants

    out_flat = pl.pallas_call(
        basic_block_kernel,
        out_shape=jax.ShapeDtypeStruct((N, D, Kout), x_ndhwc.dtype),
        grid_spec=pltpu.PrefetchScalarGridSpec(
            num_scalar_prefetch=0,
            grid=(N // NB,),
            in_specs=[
                pl.BlockSpec((NB, D, Kin), lambda g: (g, 0, 0)),       # x chunk
                pl.BlockSpec((3 * Kin, Kout), lambda g: (0, 0), **const),   # w1
                pl.BlockSpec((1, Kout), lambda g: (0, 0), **const),         # b1
                pl.BlockSpec((3 * Kout, Kout), lambda g: (0, 0), **const),  # w2
                pl.BlockSpec((1, Kout), lambda g: (0, 0), **const),         # b2
            ],
            out_specs=pl.BlockSpec((NB, D, Kout), lambda g: (g, 0, 0)),
            scratch_shapes=[
                pltpu.VMEM((NB * (D + 2), Kin), jnp.bfloat16),   # padded input
                pltpu.VMEM((NB * (D + 2), Kout), jnp.bfloat16),  # padded conv1 out
            ],
        ),
        compiler_params=pltpu.CompilerParams(
            dimension_semantics=("parallel",),
            vmem_limit_bytes=32 * 1024 * 1024,
        ),
        cost_estimate=pl.CostEstimate(flops=flops, transcendentals=0,
                                      bytes_accessed=bytes_accessed),
    )(x_flat, w1c, b1, w2c, b2)

    return out_flat.reshape(N, D, H, W, Kout // (H * W))


# --------------------- parameter preparation (one time) ----------------------
def _fold_bn(gamma, beta, mean, var, eps=1e-5):
    scale = gamma / jnp.sqrt(var + eps)
    return scale, beta - mean * scale


def _band_hw(w, H, W):
    """w: (3,3,3,Cin,Cout) -> (3, H*W*Cin, H*W*Cout) banded-over-(H,W) weights.

    B[kd][(hi*W+wi)*Cin+ci, (ho*W+wo)*Cout+co] = w[kd, hi-ho+1, wi-wo+1, ci, co]
    (zero when the kernel offset is out of range): SAME padding along H/W is
    absorbed into the band structure, only D needs explicit halo rows.
    """
    w = np.asarray(w)
    Cin, Cout = w.shape[3], w.shape[4]
    B = np.zeros((3, H * W * Cin, H * W * Cout), np.float32)
    for kd in range(3):
        for kh in range(3):
            for kw in range(3):
                tap = w[kd, kh, kw]                       # (Cin, Cout)
                for ho in range(H):
                    hi = ho + kh - 1
                    if not 0 <= hi < H:
                        continue
                    for wo in range(W):
                        wi = wo + kw - 1
                        if not 0 <= wi < W:
                            continue
                        r = (hi * W + wi) * Cin
                        c = (ho * W + wo) * Cout
                        B[kd, r:r + Cin, c:c + Cout] = tap
    return B


def prepare_block_params(w1, w2, bn1, bn2, H, W):
    """w1: (3,3,3,Cin,Cout), w2: (3,3,3,Cout,Cout); bn* = (gamma,beta,mean,var)."""
    s1, b1 = _fold_bn(*bn1)
    s2, b2 = _fold_bn(*bn2)
    Cout = w1.shape[-1]
    # Fold BN scale into the conv weights, band over (H,W), concatenate the 3
    # kd taps along K (one (3K, Kout) matmul per conv), store in bf16.
    w1b = _band_hw(np.asarray(w1 * s1), H, W)
    w2b = _band_hw(np.asarray(w2 * s2), H, W)
    w1c = jnp.asarray(w1b.reshape(-1, H * W * Cout), jnp.bfloat16)
    w2c = jnp.asarray(w2b.reshape(-1, H * W * Cout), jnp.bfloat16)
    # Biases stay f32 (added to the f32 accumulator; traffic is negligible).
    b1t = jnp.tile(jnp.asarray(b1, jnp.float32), H * W).reshape(1, H * W * Cout)
    b2t = jnp.tile(jnp.asarray(b2, jnp.float32), H * W).reshape(1, H * W * Cout)
    return dict(w1c=w1c, w2c=w2c, b1=b1t, b2=b2t)


# --------------------------- pure-JAX reference -------------------------------
def _ref_forward(x, w1, w2, bn1, bn2):
    dn = ("NDHWC", "DHWIO", "NDHWC")
    s1, b1 = _fold_bn(*bn1)
    s2, b2 = _fold_bn(*bn2)
    out = lax.conv_general_dilated(x, w1, (1, 1, 1), "SAME", dimension_numbers=dn)
    out = jnp.maximum(out * s1 + b1, 0.0)
    out = lax.conv_general_dilated(out, w2, (1, 1, 1), "SAME", dimension_numbers=dn)
    out = out * s2 + b2
    return jnp.maximum(out + x, 0.0)


if __name__ == "__main__":
    key = jax.random.PRNGKey(0)
    N, C, D, H, W = 2, 8, 8, 8, 8            # in_planes == planes, stride 1
    ks = jax.random.split(key, 11)

    # NDHWC (channels-last view of PyTorch's NCDHW input)
    x = jax.random.normal(ks[0], (N, D, H, W, C), jnp.float32)

    fan_in = 27 * C
    w1 = jax.random.normal(ks[1], (3, 3, 3, C, C), jnp.float32) / np.sqrt(fan_in)
    w2 = jax.random.normal(ks[2], (3, 3, 3, C, C), jnp.float32) / np.sqrt(fan_in)

    bn1 = (1.0 + 0.1 * jax.random.normal(ks[3], (C,), jnp.float32),
           0.1 * jax.random.normal(ks[4], (C,), jnp.float32),
           0.05 * jax.random.normal(ks[5], (C,), jnp.float32),
           1.0 + 0.1 * jax.random.uniform(ks[6], (C,), jnp.float32))
    bn2 = (1.0 + 0.1 * jax.random.normal(ks[7], (C,), jnp.float32),
           0.1 * jax.random.normal(ks[8], (C,), jnp.float32),
           0.05 * jax.random.normal(ks[9], (C,), jnp.float32),
           1.0 + 0.1 * jax.random.uniform(ks[10], (C,), jnp.float32))

    params = prepare_block_params(w1, w2, bn1, bn2, H, W)

    out = jax.block_until_ready(basic_block_forward(x, params))
    ref = jax.block_until_ready(_ref_forward(x, w1, w2, bn1, bn2))

    assert out.shape == (N, D, H, W, C)
    err = float(jnp.max(jnp.abs(out - ref)))
    # bf16 MXU operands with f32 accumulation vs f32 reference -> relaxed tol.
    assert jnp.allclose(out, ref, rtol=5e-2, atol=5e-2), f"max abs err {err}"
    print("KERNEL_OK")
</pallas_src>

<mosaic_0001>
module attributes {stable_mosaic.version = 11 : i64} {
  func.func @basic_block_kernel(%arg0: i32, %arg1: memref<2x8x512xf32, #tpu.memory_space<vmem>>, %arg2: memref<1536x512xbf16, #tpu.memory_space<vmem>>, %arg3: memref<1x512xf32, #tpu.memory_space<vmem>>, %arg4: memref<1536x512xbf16, #tpu.memory_space<vmem>>, %arg5: memref<1x512xf32, #tpu.memory_space<vmem>>, %arg6: memref<2x8x512xf32, #tpu.memory_space<vmem>>, %arg7: memref<20x512xbf16, #tpu.memory_space<vmem>>, %arg8: memref<20x512xbf16, #tpu.memory_space<vmem>>) attributes {dimension_semantics = [#tpu.dimension_semantics<parallel>], iteration_bounds = array<i64: 1>, scalar_prefetch = 0 : i64, scratch_operands = 2 : i64, tpu.core_type = #tpu.core_type<tc>, window_params = [{transform_indices = @transform_0, window_bounds = array<i64: 2, 8, 512>}, {pipeline_mode = #tpu.pipeline_mode<synchronous>, transform_indices = @transform_1, window_bounds = array<i64: 1536, 512>}, {pipeline_mode = #tpu.pipeline_mode<synchronous>, transform_indices = @transform_2, window_bounds = array<i64: 1, 512>}, {pipeline_mode = #tpu.pipeline_mode<synchronous>, transform_indices = @transform_3, window_bounds = array<i64: 1536, 512>}, {pipeline_mode = #tpu.pipeline_mode<synchronous>, transform_indices = @transform_4, window_bounds = array<i64: 1, 512>}, {transform_indices = @transform_5, window_bounds = array<i64: 2, 8, 512>}]} {
    %cst = arith.constant 0.000000e+00 : bf16
    %0 = vector.broadcast %cst : bf16 to vector<1x512xbf16>
    %cst_0 = arith.constant 0.000000e+00 : bf16
    %1 = vector.broadcast %cst_0 : bf16 to vector<1x512xbf16>
    %c0 = arith.constant 0 : index
    %c0_1 = arith.constant 0 : index
    %2 = vector.load %arg7[%c0, %c0_1] : memref<20x512xbf16, #tpu.memory_space<vmem>>, vector<1x512xbf16>
    tpu.vector_store %arg7[%c0, %c0_1], %0 {strides = array<i32>} : memref<20x512xbf16, #tpu.memory_space<vmem>>, vector<1x512xbf16>,
    %c9 = arith.constant 9 : index
    %c0_2 = arith.constant 0 : index
    %3 = vector.load %arg7[%c9, %c0_2] : memref<20x512xbf16, #tpu.memory_space<vmem>>, vector<1x512xbf16>
    tpu.vector_store %arg7[%c9, %c0_2], %0 {strides = array<i32>} : memref<20x512xbf16, #tpu.memory_space<vmem>>, vector<1x512xbf16>,
    %c0_3 = arith.constant 0 : index
    %c0_4 = arith.constant 0 : index
    %c0_5 = arith.constant 0 : index
    %4 = vector.load %arg1[%c0_3, %c0_4, %c0_5] : memref<2x8x512xf32, #tpu.memory_space<vmem>>, vector<1x8x512xf32>
    %5 = vector.shape_cast %4 : vector<1x8x512xf32> to vector<8x512xf32>
    %6 = arith.truncf %5 : vector<8x512xf32> to vector<8x512xbf16>
    %c1 = arith.constant 1 : index
    %c0_6 = arith.constant 0 : index
    %7 = vector.load %arg7[%c1, %c0_6] : memref<20x512xbf16, #tpu.memory_space<vmem>>, vector<8x512xbf16>
    tpu.vector_store %arg7[%c1, %c0_6], %6 {strides = array<i32>} : memref<20x512xbf16, #tpu.memory_space<vmem>>, vector<8x512xbf16>,
    %c0_7 = arith.constant 0 : index
    %c0_8 = arith.constant 0 : index
    %8 = vector.load %arg8[%c0_7, %c0_8] : memref<20x512xbf16, #tpu.memory_space<vmem>>, vector<1x512xbf16>
    tpu.vector_store %arg8[%c0_7, %c0_8], %1 {strides = array<i32>} : memref<20x512xbf16, #tpu.memory_space<vmem>>, vector<1x512xbf16>,
    %c9_9 = arith.constant 9 : index
    %c0_10 = arith.constant 0 : index
    %9 = vector.load %arg8[%c9_9, %c0_10] : memref<20x512xbf16, #tpu.memory_space<vmem>>, vector<1x512xbf16>
    tpu.vector_store %arg8[%c9_9, %c0_10], %1 {strides = array<i32>} : memref<20x512xbf16, #tpu.memory_space<vmem>>, vector<1x512xbf16>,
    %c10 = arith.constant 10 : index
    %c0_11 = arith.constant 0 : index
    %10 = vector.load %arg7[%c10, %c0_11] : memref<20x512xbf16, #tpu.memory_space<vmem>>, vector<1x512xbf16>
    tpu.vector_store %arg7[%c10, %c0_11], %0 {strides = array<i32>} : memref<20x512xbf16, #tpu.memory_space<vmem>>, vector<1x512xbf16>,
    %c19 = arith.constant 19 : index
    %c0_12 = arith.constant 0 : index
    %11 = vector.load %arg7[%c19, %c0_12] : memref<20x512xbf16, #tpu.memory_space<vmem>>, vector<1x512xbf16>
    tpu.vector_store %arg7[%c19, %c0_12], %0 {strides = array<i32>} : memref<20x512xbf16, #tpu.memory_space<vmem>>, vector<1x512xbf16>,
    %c1_13 = arith.constant 1 : index
    %c0_14 = arith.constant 0 : index
    %c0_15 = arith.constant 0 : index
    %12 = vector.load %arg1[%c1_13, %c0_14, %c0_15] : memref<2x8x512xf32, #tpu.memory_space<vmem>>, vector<1x8x512xf32>
    %13 = vector.shape_cast %12 : vector<1x8x512xf32> to vector<8x512xf32>
    %14 = arith.truncf %13 : vector<8x512xf32> to vector<8x512xbf16>
    %c11 = arith.constant 11 : index
    %c0_16 = arith.constant 0 : index
    %15 = vector.load %arg7[%c11, %c0_16] : memref<20x512xbf16, #tpu.memory_space<vmem>>, vector<8x512xbf16>
    tpu.vector_store %arg7[%c11, %c0_16], %14 {strides = array<i32>} : memref<20x512xbf16, #tpu.memory_space<vmem>>, vector<8x512xbf16>,
    %c10_17 = arith.constant 10 : index
    %c0_18 = arith.constant 0 : index
    %16 = vector.load %arg8[%c10_17, %c0_18] : memref<20x512xbf16, #tpu.memory_space<vmem>>, vector<1x512xbf16>
    tpu.vector_store %arg8[%c10_17, %c0_18], %1 {strides = array<i32>} : memref<20x512xbf16, #tpu.memory_space<vmem>>, vector<1x512xbf16>,
    %c19_19 = arith.constant 19 : index
    %c0_20 = arith.constant 0 : index
    %17 = vector.load %arg8[%c19_19, %c0_20] : memref<20x512xbf16, #tpu.memory_space<vmem>>, vector<1x512xbf16>
    tpu.vector_store %arg8[%c19_19, %c0_20], %1 {strides = array<i32>} : memref<20x512xbf16, #tpu.memory_space<vmem>>, vector<1x512xbf16>,
    %c0_21 = arith.constant 0 : index
    %c0_22 = arith.constant 0 : index
    %18 = vector.load %arg7[%c0_21, %c0_22] : memref<20x512xbf16, #tpu.memory_space<vmem>>, vector<18x512xbf16>
    %c1_23 = arith.constant 1 : index
    %c0_24 = arith.constant 0 : index
    %19 = vector.load %arg7[%c1_23, %c0_24] : memref<20x512xbf16, #tpu.memory_space<vmem>>, vector<18x512xbf16>
    %c2 = arith.constant 2 : index
    %c0_25 = arith.constant 0 : index
    %20 = vector.load %arg7[%c2, %c0_25] : memref<20x512xbf16, #tpu.memory_space<vmem>>, vector<18x512xbf16>
    %21 = tpu.concatenate %18, %19, %20 in 1 : vector<18x512xbf16>, vector<18x512xbf16>, vector<18x512xbf16> -> vector<18x1536xbf16>
    %c0_26 = arith.constant 0 : index
    %c0_27 = arith.constant 0 : index
    %22 = vector.load %arg2[%c0_26, %c0_27] : memref<1536x512xbf16, #tpu.memory_space<vmem>>, vector<1536x512xbf16>
    %cst_28 = arith.constant dense<0.000000e+00> : vector<18x512xf32>
    %23 = tpu.matmul %21, %22, %cst_28 {dimension_numbers = #tpu.dot_dimension_numbers<[1], [0], [0], [1], [0, 0, 1, 1], [], []>} : vector<18x1536xbf16>, vector<1536x512xbf16>, vector<18x512xf32> -> vector<18x512xf32>
    %c0_29 = arith.constant 0 : index
    %c0_30 = arith.constant 0 : index
    %24 = vector.load %arg3[%c0_29, %c0_30] : memref<1x512xf32, #tpu.memory_space<vmem>>, vector<1x512xf32>
    %25 = vector.broadcast %24 : vector<1x512xf32> to vector<18x512xf32>
    %26 = arith.addf %23, %25 : vector<18x512xf32>
    %cst_31 = arith.constant 0.000000e+00 : f32
    %27 = vector.broadcast %cst_31 : f32 to vector<18x512xf32>
    %28 = arith.maximumf %26, %27 : vector<18x512xf32>
    %29 = vector.extract_strided_slice %28 {offsets = [0, 0], sizes = [8, 512], strides = [1, 1]} : vector<18x512xf32> to vector<8x512xf32>
    %30 = arith.truncf %29 : vector<8x512xf32> to vector<8x512xbf16>
    %c1_32 = arith.constant 1 : index
    %c0_33 = arith.constant 0 : index
    %31 = vector.load %arg8[%c1_32, %c0_33] : memref<20x512xbf16, #tpu.memory_space<vmem>>, vector<8x512xbf16>
    tpu.vector_store %arg8[%c1_32, %c0_33], %30 {strides = array<i32>} : memref<20x512xbf16, #tpu.memory_space<vmem>>, vector<8x512xbf16>,
    %32 = vector.extract_strided_slice %28 {offsets = [10, 0], sizes = [8, 512], strides = [1, 1]} : vector<18x512xf32> to vector<8x512xf32>
    %33 = arith.truncf %32 : vector<8x512xf32> to vector<8x512xbf16>
    %c11_34 = arith.constant 11 : index
    %c0_35 = arith.constant 0 : index
    %34 = vector.load %arg8[%c11_34, %c0_35] : memref<20x512xbf16, #tpu.memory_space<vmem>>, vector<8x512xbf16>
    tpu.vector_store %arg8[%c11_34, %c0_35], %33 {strides = array<i32>} : memref<20x512xbf16, #tpu.memory_space<vmem>>, vector<8x512xbf16>,
    %c0_36 = arith.constant 0 : index
    %c0_37 = arith.constant 0 : index
    %35 = vector.load %arg8[%c0_36, %c0_37] : memref<20x512xbf16, #tpu.memory_space<vmem>>, vector<18x512xbf16>
    %c1_38 = arith.constant 1 : index
    %c0_39 = arith.constant 0 : index
    %36 = vector.load %arg8[%c1_38, %c0_39] : memref<20x512xbf16, #tpu.memory_space<vmem>>, vector<18x512xbf16>
    %c2_40 = arith.constant 2 : index
    %c0_41 = arith.constant 0 : index
    %37 = vector.load %arg8[%c2_40, %c0_41] : memref<20x512xbf16, #tpu.memory_space<vmem>>, vector<18x512xbf16>
    %38 = tpu.concatenate %35, %36, %37 in 1 : vector<18x512xbf16>, vector<18x512xbf16>, vector<18x512xbf16> -> vector<18x1536xbf16>
    %c0_42 = arith.constant 0 : index
    %c0_43 = arith.constant 0 : index
    %39 = vector.load %arg4[%c0_42, %c0_43] : memref<1536x512xbf16, #tpu.memory_space<vmem>>, vector<1536x512xbf16>
    %cst_44 = arith.constant dense<0.000000e+00> : vector<18x512xf32>
    %40 = tpu.matmul %38, %39, %cst_44 {dimension_numbers = #tpu.dot_dimension_numbers<[1], [0], [0], [1], [0, 0, 1, 1], [], []>} : vector<18x1536xbf16>, vector<1536x512xbf16>, vector<18x512xf32> -> vector<18x512xf32>
    %c0_45 = arith.constant 0 : index
    %c0_46 = arith.constant 0 : index
    %41 = vector.load %arg5[%c0_45, %c0_46] : memref<1x512xf32, #tpu.memory_space<vmem>>, vector<1x512xf32>
    %42 = vector.broadcast %41 : vector<1x512xf32> to vector<18x512xf32>
    %43 = arith.addf %40, %42 : vector<18x512xf32>
    %44 = vector.extract_strided_slice %43 {offsets = [0, 0], sizes = [8, 512], strides = [1, 1]} : vector<18x512xf32> to vector<8x512xf32>
    %c0_47 = arith.constant 0 : index
    %c0_48 = arith.constant 0 : index
    %c0_49 = arith.constant 0 : index
    %45 = vector.load %arg1[%c0_47, %c0_48, %c0_49] : memref<2x8x512xf32, #tpu.memory_space<vmem>>, vector<1x8x512xf32>
    %46 = vector.shape_cast %45 : vector<1x8x512xf32> to vector<8x512xf32>
    %47 = arith.addf %44, %46 : vector<8x512xf32>
    %cst_50 = arith.constant 0.000000e+00 : f32
    %48 = vector.broadcast %cst_50 : f32 to vector<8x512xf32>
    %49 = arith.maximumf %47, %48 : vector<8x512xf32>
    %c0_51 = arith.constant 0 : index
    %c0_52 = arith.constant 0 : index
    %c0_53 = arith.constant 0 : index
    %50 = vector.load %arg6[%c0_51, %c0_52, %c0_53] : memref<2x8x512xf32, #tpu.memory_space<vmem>>, vector<1x8x512xf32>
    %51 = vector.shape_cast %50 : vector<1x8x512xf32> to vector<8x512xf32>
    %52 = vector.shape_cast %49 : vector<8x512xf32> to vector<1x8x512xf32>
    tpu.vector_store %arg6[%c0_51, %c0_52, %c0_53], %52 {strides = array<i32>} : memref<2x8x512xf32, #tpu.memory_space<vmem>>, vector<1x8x512xf32>,
    %53 = vector.extract_strided_slice %43 {offsets = [10, 0], sizes = [8, 512], strides = [1, 1]} : vector<18x512xf32> to vector<8x512xf32>
    %c1_54 = arith.constant 1 : index
    %c0_55 = arith.constant 0 : index
    %c0_56 = arith.constant 0 : index
    %54 = vector.load %arg1[%c1_54, %c0_55, %c0_56] : memref<2x8x512xf32, #tpu.memory_space<vmem>>, vector<1x8x512xf32>
    %55 = vector.shape_cast %54 : vector<1x8x512xf32> to vector<8x512xf32>
    %56 = arith.addf %53, %55 : vector<8x512xf32>
    %cst_57 = arith.constant 0.000000e+00 : f32
    %57 = vector.broadcast %cst_57 : f32 to vector<8x512xf32>
    %58 = arith.maximumf %56, %57 : vector<8x512xf32>
    %c1_58 = arith.constant 1 : index
    %c0_59 = arith.constant 0 : index
    %c0_60 = arith.constant 0 : index
    %59 = vector.load %arg6[%c1_58, %c0_59, %c0_60] : memref<2x8x512xf32, #tpu.memory_space<vmem>>, vector<1x8x512xf32>
    %60 = vector.shape_cast %59 : vector<1x8x512xf32> to vector<8x512xf32>
    %61 = vector.shape_cast %58 : vector<8x512xf32> to vector<1x8x512xf32>
    tpu.vector_store %arg6[%c1_58, %c0_59, %c0_60], %61 {strides = array<i32>} : memref<2x8x512xf32, #tpu.memory_space<vmem>>, vector<1x8x512xf32>,
    return
  }
  func.func @transform_0(%arg0: i32) -> (i32, i32, i32) {
    %c0_i32 = arith.constant 0 : i32
    %c0_i32_0 = arith.constant 0 : i32
    %c0_i32_1 = arith.constant 0 : i32
    return %arg0, %c0_i32, %c0_i32_0 : i32, i32, i32
  }
  func.func @transform_1(%arg0: i32) -> (i32, i32) {
    %c0_i32 = arith.constant 0 : i32
    %c0_i32_0 = arith.constant 0 : i32
    %c0_i32_1 = arith.constant 0 : i32
    return %c0_i32, %c0_i32_0 : i32, i32
  }
  func.func @transform_2(%arg0: i32) -> (i32, i32) {
    %c0_i32 = arith.constant 0 : i32
    %c0_i32_0 = arith.constant 0 : i32
    %c0_i32_1 = arith.constant 0 : i32
    return %c0_i32, %c0_i32_0 : i32, i32
  }
  func.func @transform_3(%arg0: i32) -> (i32, i32) {
    %c0_i32 = arith.constant 0 : i32
    %c0_i32_0 = arith.constant 0 : i32
    %c0_i32_1 = arith.constant 0 : i32
    return %c0_i32, %c0_i32_0 : i32, i32
  }
  func.func @transform_4(%arg0: i32) -> (i32, i32) {
    %c0_i32 = arith.constant 0 : i32
    %c0_i32_0 = arith.constant 0 : i32
    %c0_i32_1 = arith.constant 0 : i32
    return %c0_i32, %c0_i32_0 : i32, i32
  }
  func.func @transform_5(%arg0: i32) -> (i32, i32, i32) {
    %c0_i32 = arith.constant 0 : i32
    %c0_i32_0 = arith.constant 0 : i32
    %c0_i32_1 = arith.constant 0 : i32
    return %arg0, %c0_i32, %c0_i32_0 : i32, i32, i32
  }
}

</mosaic_0001>

<bundles_post_ra>
// kernel: tpu_custom_call.1
= control target key start
LH: loop header
LB: loop body
LE: loop exit
PB: predicated region body
PF: predicated region fallthrough
CT: control target
= control target key end

     0   :  { %10 = vsyncpa [#allocation5], 0  ;;  %s9517_s0 = inlined_call_operand.hbm [shape: f32[2,8,512], index: 0, kind: input, shape index: {}]   ;;  %s9518_s1 = inlined_call_operand.hbm [shape: bf16[1536,512], index: 1, kind: input, shape index: {}]   ;;  %s9519_s2 = inlined_call_operand.hbm [shape: f32[1,512], index: 2, kind: input, shape index: {}]   ;;  %s9520_s3 = inlined_call_operand.hbm [shape: bf16[1536,512], index: 3, kind: input, shape index: {}]   ;;  %s9521_s4 = inlined_call_operand.hbm [shape: f32[1,512], index: 4, kind: input, shape index: {}]   ;;  %s9522_s5 = inlined_call_operand.hbm [shape: f32[2,8,512], index: 5, kind: output, shape index: {}]  }
   0x1   :  { %11 = vsyncpa [#allocation8], 0 }
   0x2   :  { %12 = vsyncpa [#allocation11], 0 }
   0x3   :  { %13 = vsyncpa [#allocation6], 0  ;;  %s8971_s18 = smov [#allocation7]   ;;  %s8831_s22 = scalar_lea.hbm %s9518_s1, 49152 }
   0x4   :  { %s31_s19 = sshll.u32 %s8971_s18, 4  ;;  %p8832_p0 = scmp.ne.s32.totalorder %s9518_s1, %s8831_s22  ;;  %s32_s19 = int_to_ptr.vmem [resolvable:$true] %s31_s19 }
   0x5   :  { %p8835_p1 = scmp.lt.u32.totalorder %s8831_s22, %s9518_s1 }
   0x7   :  { %p8837_p2 = pnand %p8835_p1, %p8832_p0 }
   0x9   :  { %8840 = shalt.err (!%p8837_p2)
}
   0xa   :  { %s8841_s27 = scalar_lea.vmem %s32_s19, 49152  ;;  %p8846_p4 = scmp.lt.s32.totalorder %s32_s19, %s32_s19 }
   0xb   :  { %p8842_p3 = scmp.ne.s32.totalorder %s32_s19, %s8841_s27  ;;  %p8847_p5 = scmp.lt.s32.totalorder %s8841_s27, %s8841_s27 }
   0xd   :  { %p8848_p6 = por %p8847_p5, %p8846_p4 }
   0xf   :  { %p8849_p7 = pnand %p8848_p6, %p8842_p3 }
  0x11   :  { %8852 = shalt.err (!%p8849_p7)
}
  0x12   :  { %s8972_s28 = smov 256   ;;  %s8973_s29 = smov 16  }
  0x13   :  { %37 = dma.hbm_to_vmem [thread:$0]  %s9518_s1, 49152, %s32_s19, [#allocation8], %s8972_s28, %s8972_s28, %s8973_s29  }
  0x14   :  { %s8974_s7 = smov [#allocation10]   ;;  %s8975_s9 = smov [#allocation4]  }
  0x15   :  { %s53_s8 = sshll.u32 %s8974_s7, 4  ;;  %s19_s10 = sshll.u32 %s8975_s9, 4  ;;  %s54_s8 = int_to_ptr.vmem [resolvable:$true] %s53_s8  ;;  %s20_s10 = int_to_ptr.vmem [resolvable:$true] %s19_s10 }
  0x16   :  { %s8853_s13 = scalar_lea.hbm %s9520_s3, 49152 }
  0x17   :  { %p8854_p8 = scmp.ne.s32.totalorder %s9520_s3, %s8853_s13  ;;  %p8857_p9 = scmp.lt.u32.totalorder %s8853_s13, %s9520_s3 }
  0x19   :  { %p8859_p10 = pnand %p8857_p9, %p8854_p8 }
  0x1b   :  { %8862 = shalt.err (!%p8859_p10)
}
  0x1c   :  { %s8863_s1 = scalar_lea.vmem %s54_s8, 49152  ;;  %p8868_p12 = scmp.lt.s32.totalorder %s54_s8, %s54_s8 }
  0x1d   :  { %p8864_p11 = scmp.ne.s32.totalorder %s54_s8, %s8863_s1  ;;  %p8869_p13 = scmp.lt.s32.totalorder %s8863_s1, %s8863_s1 }
  0x1f   :  { %p8870_p0 = por %p8869_p13, %p8868_p12 }
  0x21   :  { %p8871_p1 = pnand %p8870_p0, %p8864_p11 }
  0x23   :  { %8874 = shalt.err (!%p8871_p1)
}
  0x24   :  { %59 = dma.hbm_to_vmem [thread:$0]  %s9520_s3, 49152, %s54_s8, [#allocation11], %s8972_s28, %s8972_s28, %s8973_s29  }
  0x25   :  { %s8875_s22 = scalar_lea.hbm %s9517_s0, 1024 }
  0x26   :  { %p8876_p2 = scmp.ne.s32.totalorder %s9517_s0, %s8875_s22  ;;  %p8879_p3 = scmp.lt.u32.totalorder %s8875_s22, %s9517_s0 }
  0x28   :  { %p8881_p4 = pnand %p8879_p3, %p8876_p2 }
  0x2a   :  { %8884 = shalt.err (!%p8881_p4)
}
  0x2b   :  { %s8885_s27 = scalar_lea.vmem %s20_s10, 1024  ;;  %p8890_p6 = scmp.lt.s32.totalorder %s20_s10, %s20_s10 }
  0x2c   :  { %p8886_p5 = scmp.ne.s32.totalorder %s20_s10, %s8885_s27  ;;  %p8891_p7 = scmp.lt.s32.totalorder %s8885_s27, %s8885_s27 }
  0x2e   :  { %p8892_p8 = por %p8891_p7, %p8890_p6 }
  0x30   :  { %p8893_p9 = pnand %p8892_p8, %p8886_p5 }
  0x32   :  { %8896 = shalt.err (!%p8893_p9)
}
  0x33   :  { %s8976_s3 = smov 512   ;;  %s8977_s28 = smov 32  }
  0x34   :  { %25 = dma.hbm_to_vmem [thread:$0]  %s9517_s0, 1024, %s20_s10, [#allocation5], %s8976_s3, %s8976_s3, %s8977_s28  }
  0x35   :  { %s8978_s6 = smov [#allocation9]   ;;  %s8979_s8 = smov [#allocation12]  }
  0x36   :  { %s44_s7 = sshll.u32 %s8978_s6, 4  ;;  %s66_s9 = sshll.u32 %s8979_s8, 4  ;;  %s45_s7 = int_to_ptr.vmem [resolvable:$true] %s44_s7  ;;  %s67_s9 = int_to_ptr.vmem [resolvable:$true] %s66_s9 }
  0x37   :  { %s8897_s13 = scalar_lea.hbm %s9519_s2, 64 }
  0x38   :  { %p8898_p10 = scmp.ne.s32.totalorder %s9519_s2, %s8897_s13  ;;  %p8901_p11 = scmp.lt.u32.totalorder %s8897_s13, %s9519_s2 }
  0x3a   :  { %p8903_p12 = pnand %p8901_p11, %p8898_p10 }
  0x3c   :  { %8906 = shalt.err (!%p8903_p12)
}
  0x3d   :  { %s8907_s0 = scalar_lea.vmem %s45_s7, 64  ;;  %p8912_p0 = scmp.lt.s32.totalorder %s45_s7, %s45_s7 }
  0x3e   :  { %p8908_p13 = scmp.ne.s32.totalorder %s45_s7, %s8907_s0  ;;  %p8913_p1 = scmp.lt.s32.totalorder %s8907_s0, %s8907_s0 }
  0x40   :  { %p8914_p2 = por %p8913_p1, %p8912_p0 }
  0x42   :  { %p8915_p3 = pnand %p8914_p2, %p8908_p13 }
  0x44   :  { %8918 = shalt.err (!%p8915_p3)
}
  0x45   :  { %47 = dma.hbm_to_vmem [thread:$0]  %s9519_s2, 64, %s45_s7, [#allocation8]  }
  0x46   :  { %s8919_s20 = scalar_lea.hbm %s9521_s4, 64 }
  0x47   :  { %p8920_p4 = scmp.ne.s32.totalorder %s9521_s4, %s8919_s20  ;;  %p8923_p5 = scmp.lt.u32.totalorder %s8919_s20, %s9521_s4 }
  0x49   :  { %p8925_p6 = pnand %p8923_p5, %p8920_p4 }
  0x4b   :  { %8928 = shalt.err (!%p8925_p6)
}
  0x4c   :  { %s8929_s25 = scalar_lea.vmem %s67_s9, 64  ;;  %p8934_p8 = scmp.lt.s32.totalorder %s67_s9, %s67_s9 }
  0x4d   :  { %p8930_p7 = scmp.ne.s32.totalorder %s67_s9, %s8929_s25  ;;  %p8935_p9 = scmp.lt.s32.totalorder %s8929_s25, %s8929_s25 }
  0x4f   :  { %p8936_p10 = por %p8935_p9, %p8934_p8 }
  0x51   :  { %p8937_p11 = pnand %p8936_p10, %p8930_p7 }
  0x53   :  { %8940 = shalt.err (!%p8937_p11)
}
  0x54   :  { %69 = dma.hbm_to_vmem [thread:$0]  %s9521_s4, 64, %s67_s9, [#allocation11]  }
  0x55   :  { %8963 = dma.done.wait [#allocation5], 1024  }
  0x56   :  { %8964 = vsyncadd [#allocation5], 4294966272 }
  0x57   :  { %8965 = dma.done.wait [#allocation8], 49216  }
  0x58   :  { %8966 = vsyncadd [#allocation8], 4294918080 }
  0x59   :  { %8967 = dma.done.wait [#allocation11], 49216  }
  0x5a   :  { %8968 = vsyncadd [#allocation11], 4294918080  ;;  %v7653_v0 = vld [vmem:[#allocation7 + $0x4] ss:$16 sps:$4 sm:$0xff]   ;;  %v7655_v1 = vld [vmem:[#allocation7 + $0xc] ss:$16 sps:$4 sm:$0xff]  }
  0x5b   :  { %2756 = vmatprep.subr.bf16.mxu0 %v7653_v0  ;;  %v7657_v2 = vld [vmem:[#allocation7] ss:$16 sps:$4 sm:$0xff]   ;;  %v7658_v3 = vld [vmem:[#allocation7 + $0x8] ss:$16 sps:$4 sm:$0xff]   ;;  %3062 = vmatprep.subr.bf16.mxu1 %v7655_v1  ;;  %v7659_v4 = vld [vmem:[#allocation7 + $0x24] ss:$16 sps:$4 sm:$0xff]  }
  0x5c   :  { %2757 = vmatpush1.bf16.msra.mxu0 %v7657_v2  ;;  %3063 = vmatpush1.bf16.msra.mxu1 %v7658_v3  ;;  %v7661_v5 = vld [vmem:[#allocation7 + $0x2c] ss:$16 sps:$4 sm:$0xff]   ;;  %v7663_v6 = vld [vmem:[#allocation7 + $0x20] ss:$16 sps:$4 sm:$0xff]   ;;  %v7664_v7 = vld [vmem:[#allocation7 + $0x28] ss:$16 sps:$4 sm:$0xff]  }
  0x5d   :  { %2758 = vmatprep.subr.bf16.mxu0 %v7659_v4  ;;  %3064 = vmatprep.subr.bf16.mxu1 %v7661_v5  ;;  %v7665_v8 = vld [vmem:[#allocation7 + $0x44] ss:$16 sps:$4 sm:$0xff]   ;;  %v7667_v9 = vld [vmem:[#allocation7 + $0x4c] ss:$16 sps:$4 sm:$0xff]   ;;  %v7669_v10 = vld [vmem:[#allocation7 + $0x40] ss:$16 sps:$4 sm:$0xff]  }
  0x5e   :  { %v7670_v11 = vld [vmem:[#allocation7 + $0x48] ss:$16 sps:$4 sm:$0xff]   ;;  %v7671_v12 = vld [vmem:[#allocation7 + $0x64] ss:$16 sps:$4 sm:$0xff]   ;;  %v7673_v13 = vld [vmem:[#allocation7 + $0x6c] ss:$16 sps:$4 sm:$0xff]  }
  0x5f   :  { %v7675_v14 = vld [vmem:[#allocation7 + $0x60] ss:$16 sps:$4 sm:$0xff]   ;;  %v7676_v15 = vld [vmem:[#allocation7 + $0x68] ss:$16 sps:$4 sm:$0xff]   ;;  %v7677_v16 = vld [vmem:[#allocation7 + $0x84] ss:$16 sps:$4 sm:$0xff]  }
  0x60   :  { %2759 = vmatpush1.bf16.msra.mxu0 %v7663_v6  ;;  %3065 = vmatpush1.bf16.msra.mxu1 %v7664_v7  ;;  %v7679_v17 = vld [vmem:[#allocation7 + $0x8c] ss:$16 sps:$4 sm:$0xff]   ;;  %v7681_v18 = vld [vmem:[#allocation7 + $0x80] ss:$16 sps:$4 sm:$0xff]   ;;  %v7682_v19 = vld [vmem:[#allocation7 + $0x88] ss:$16 sps:$4 sm:$0xff]  }
  0x61   :  { %2760 = vmatprep.subr.bf16.mxu0 %v7665_v8  ;;  %3066 = vmatprep.subr.bf16.mxu1 %v7667_v9  ;;  %v7683_v20 = vld [vmem:[#allocation7 + $0xa4] ss:$16 sps:$4 sm:$0xff]   ;;  %v7685_v21 = vld [vmem:[#allocation7 + $0xac] ss:$16 sps:$4 sm:$0xff]   ;;  %v7687_v22 = vld [vmem:[#allocation7 + $0xa0] ss:$16 sps:$4 sm:$0xff]  }
  0x62   :  { %v7688_v23 = vld [vmem:[#allocation7 + $0xa8] ss:$16 sps:$4 sm:$0xff]   ;;  %v7689_v24 = vld [vmem:[#allocation7 + $0xc4] ss:$16 sps:$4 sm:$0xff]   ;;  %v7691_v25 = vld [vmem:[#allocation7 + $0xcc] ss:$16 sps:$4 sm:$0xff]  }
  0x63   :  { %v7693_v26 = vld [vmem:[#allocation7 + $0xc0] ss:$16 sps:$4 sm:$0xff]   ;;  %v7694_v27 = vld [vmem:[#allocation7 + $0xc8] ss:$16 sps:$4 sm:$0xff]   ;;  %v7695_v28 = vld [vmem:[#allocation7 + $0xe4] ss:$16 sps:$4 sm:$0xff]  }
  0x64   :  { %2761 = vmatpush1.bf16.msra.mxu0 %v7669_v10  ;;  %3067 = vmatpush1.bf16.msra.mxu1 %v7670_v11  ;;  %vm9523_vm0 = vsmask.f32 256  ;;  %v7697_v29 = vld [vmem:[#allocation7 + $0xec] ss:$16 sps:$4 sm:$0xff]   ;;  %vm86_vm1 = vcmask 1040384   ;;  %vm89_vm5 = vcmask 1044484  }
  0x65   :  { %2762 = vmatprep.subr.bf16.mxu0 %v7671_v12  ;;  %3068 = vmatprep.subr.bf16.mxu1 %v7673_v13  ;;  %vm90_vm2 = vsmask.f32 4352  ;;  %v7699_v30 = vld [vmem:[#allocation7 + $0xe0] ss:$16 sps:$4 sm:$0xff]   ;;  %vm9076_vm3 = vmand %vm86_vm1, %vm9523_vm0  ;;  %vm99_vm4 = vsmask.f32 7938 }
  0x66   :  { %v7700_v32 = vld [vmem:[#allocation7 + $0xe8] ss:$16 sps:$4 sm:$0xff]   ;;  %v7701_v33 = vld [vmem:[#allocation7 + $0x104] ss:$16 sps:$4 sm:$0xff]   ;;  %v7703_v34 = vld [vmem:[#allocation7 + $0x10c] ss:$16 sps:$4 sm:$0xff]  }
  0x67   :  { %vm9080_vm6 = vmand %vm89_vm5, %vm90_vm2  ;;  %v7705_v36 = vld [vmem:[#allocation7 + $0x100] ss:$16 sps:$4 sm:$0xff]   ;;  %v7706_v37 = vld [vmem:[#allocation7 + $0x108] ss:$16 sps:$4 sm:$0xff]   ;;  %vm101_vm8 = vsmask.f32 7954 }
  0x68   :  { %2763 = vmatpush1.bf16.msra.mxu0 %v7675_v14  ;;  %3069 = vmatpush1.bf16.msra.mxu1 %v7676_v15  ;;  %vm9086_vm7 = vmand %vm86_vm1, %vm99_vm4  ;;  %v7707_v39 = vld [vmem:[#allocation7 + $0x124] ss:$16 sps:$4 sm:$0xff]   ;;  %v7709_v40 = vld [vmem:[#allocation7 + $0x12c] ss:$16 sps:$4 sm:$0xff]   ;;  %vm148_vm12 = vcmask 1043456   ;;  %vm150_vm13 = vcmask 1047556  }
  0x69   :  { %2764 = vmatprep.subr.bf16.mxu0 %v7677_v16  ;;  %3070 = vmatprep.subr.bf16.mxu1 %v7679_v17  ;;  %vm102_vm9 = vmand %vm89_vm5, %vm101_vm8  ;;  %v7711_v41 = vld [vmem:[#allocation7 + $0x120] ss:$16 sps:$4 sm:$0xff]   ;;  %v7712_v42 = vld [vmem:[#allocation7 + $0x128] ss:$16 sps:$4 sm:$0xff]   ;;  %vm177_vm14 = vcmask 1041409   ;;  %vm255_vm0 = vcmask 1045508  }
  0x6a   :  { %v7713_v43 = vld [vmem:[#allocation7 + $0x144] ss:$16 sps:$4 sm:$0xff]   ;;  %v7715_v44 = vld [vmem:[#allocation7 + $0x14c] ss:$16 sps:$4 sm:$0xff]   ;;  %vm9095_vm10 = vmor %vm9080_vm6, %vm9076_vm3  ;;  %vm178_vm1 = vsmask.f32 1280 }
  0x6b   :  { %v7717_v46 = vld [vmem:[#allocation7 + $0x140] ss:$16 sps:$4 sm:$0xff]   ;;  %v7718_v47 = vld [vmem:[#allocation7 + $0x148] ss:$16 sps:$4 sm:$0xff]   ;;  %vm9101_vm11 = vmor %vm102_vm9, %vm9086_vm7  ;;  %vm180_vm3 = vcmask 1045509   ;;  %s8980_s4 = smov [#allocation13]  }
  0x6c   :  { %2765 = vmatpush1.bf16.msra.mxu0 %v7681_v18  ;;  %3071 = vmatpush1.bf16.msra.mxu1 %v7682_v19  ;;  %v7719_v49 = vld [vmem:[#allocation7 + $0x164] ss:$16 sps:$4 sm:$0xff]   ;;  %v7721_v50 = vld [vmem:[#allocation7 + $0x16c] ss:$16 sps:$4 sm:$0xff]   ;;  %v7723_v51 = vld [vmem:[#allocation7 + $0x160] ss:$16 sps:$4 sm:$0xff]  }
  0x6d   :  { %2766 = vmatprep.subr.bf16.mxu0 %v7683_v20  ;;  %3072 = vmatprep.subr.bf16.mxu1 %v7685_v21  ;;  %v7724_v52 = vld [vmem:[#allocation7 + $0x168] ss:$16 sps:$4 sm:$0xff]   ;;  %v93_v53 = vld [vmem:[#allocation2] sm:$0x11]  ;;  %v104_v56 = vld [vmem:[#allocation2 + $0x10] sm:$0x11] }
  0x6e   :  { %v7725_v54 = vld [vmem:[#allocation7 + $0x184] ss:$16 sps:$4 sm:$0xff]   ;;  %v94_v55 = vsel %vm9095_vm10, 0, %v93_v53  ;;  %v111_v58 = vld [vmem:[#allocation4 + $0x8] sm:$0xff]  ;;  %v105_v60 = vsel %vm9101_vm11, 0, %v104_v56  ;;  %vm149_vm15 = vmand %vm148_vm12, %vm99_vm4  ;;  %s6669_s27 = sshll.u32 %s8980_s4, 4  ;;  %s6670_s27 = int_to_ptr.vmem [resolvable:$true] %s6669_s27 }
  0x6f   :  { %v110_v57 = vld [vmem:[#allocation4] sm:$0xff]  ;;  %v7727_v59 = vld [vmem:[#allocation7 + $0x18c] ss:$16 sps:$4 sm:$0xff]   ;;  %95 = vst [vmem:[#allocation2] sm:$0x11] %v94_v55  ;;  %vm151_vm2 = vmand %vm150_vm13, %vm101_vm8  ;;  %vm242_vm13 = vcmask 1043457   ;;  %p8946_p13 = scmp.lt.s32.totalorder %s6670_s27, %s6670_s27 }
  0x70   :  { %2767 = vmatpush1.bf16.msra.mxu0 %v7687_v22  ;;  %3073 = vmatpush1.bf16.msra.mxu1 %v7688_v23  ;;  %v7493_v61 = vpack.c.bf16 %v111_v58, %v110_v57  ;;  %v202_v62 = vld [vmem:[#allocation4 + $0x20] sm:$0xff]  ;;  %106 = vst [vmem:[#allocation2 + $0x10] sm:$0x11] %v105_v60  ;;  %vm181_vm5 = vsmask.f32 5376  ;;  %v203_v63 = vld [vmem:[#allocation4 + $0x28] sm:$0xff]  ;;  %vm9113_vm6 = vmor %vm151_vm2, %vm149_vm15 }
  0x71   :  { %2768 = vmatprep.subr.bf16.mxu0 %v7689_v24  ;;  %3074 = vmatprep.subr.bf16.mxu1 %v7691_v25  ;;  %v7729_v0 = vld [vmem:[#allocation7 + $0x180] ss:$16 sps:$4 sm:$0xff]   ;;  %v7730_v1 = vld [vmem:[#allocation7 + $0x188] ss:$16 sps:$4 sm:$0xff]   ;;  %v7495_v5 = vpack.c.bf16 %v203_v63, %v202_v62  ;;  %vm179_vm4 = vmand %vm177_vm14, %vm178_vm1  ;;  %vm190_vm7 = vsmask.f32 7942 }
  0x72   :  { %v129_v2 = vshrl.u32 %v7493_v61, 16  ;;  %v132_v3 = vshll.u32 %v7493_v61, 16  ;;  %v184_v6 = vld [vmem:[#allocation2 + $0x10] sm:$0x22]  ;;  %vm182_vm8 = vmand %vm180_vm3, %vm181_vm5  ;;  %v7733_v11 = vld [vmem:[#allocation7 + $0x1ac] ss:$16 sps:$4 sm:$0xff]  }
  0x73   :  { %v7731_v7 = vld [vmem:[#allocation7 + $0x1a4] ss:$16 sps:$4 sm:$0xff]   ;;  %v221_v9 = vshrl.u32 %v7495_v5, 16  ;;  %v224_v10 = vshll.u32 %v7495_v5, 16  ;;  %vm9121_vm9 = vmor %vm182_vm8, %vm179_vm4  ;;  %vm192_vm12 = vsmask.f32 7958 }
  0x74   :  { %2769 = vmatpush1.bf16.msra.mxu0 %v7693_v26  ;;  %3075 = vmatpush1.bf16.msra.mxu1 %v7694_v27  ;;  %v131_v8 = vrot.slane %v129_v2, 7  ;;  %v7735_v13 = vld [vmem:[#allocation7 + $0x1a0] ss:$16 sps:$4 sm:$0xff]   ;;  %v7736_v14 = vld [vmem:[#allocation7 + $0x1a8] ss:$16 sps:$4 sm:$0xff]   ;;  %v185_v17 = vsel %vm9121_vm9, 0, %v184_v6  ;;  %vm243_vm2 = vmand %vm242_vm13, %vm190_vm7 }
  0x75   :  { %2770 = vmatprep.subr.bf16.mxu0 %v7695_v28  ;;  %3076 = vmatprep.subr.bf16.mxu1 %v7697_v29  ;;  %vm244_vm15 = vcmask 1047557   ;;  %v7737_v18 = vld [vmem:[#allocation7 + $0x1c4] ss:$16 sps:$4 sm:$0xff]   ;;  %186 = vst [vmem:[#allocation2 + $0x10] sm:$0x22] %v185_v17  ;;  %v223_v20 = vrot.slane %v221_v9, 6  ;;  %vm191_vm13 = vmand %vm177_vm14, %vm190_vm7 }
  0x76   :  { %v134_v15 = vor.u32 %v132_v3, %v131_v8  ;;  %v142_v16 = vrot.slane %v131_v8, 4  ;;  %v153_v19 = vld [vmem:[#allocation2] sm:$0xff]  ;;  %v226_v21 = vrot.slane %v224_v10, 7  ;;  %v7739_v24 = vld [vmem:[#allocation7 + $0x1cc] ss:$16 sps:$4 sm:$0xff]   ;;  %vm245_vm4 = vmand %vm244_vm15, %vm192_vm12  ;;  %s8941_s29 = scalar_lea.vmem %s6670_s27, 1024 }
  0x77   :  { %v159_v23 = vld [vmem:[#allocation2 + $0x10] sm:$0x11]  ;;  %v7742_v28 = vld [vmem:[#allocation7 + $0x1c8] ss:$16 sps:$4 sm:$0xff]   ;;  %vm9137_vm8 = vmor %vm245_vm4, %vm243_vm2  ;;  %vm253_vm2 = vcmask 1041408   ;;  %p8942_p12 = scmp.ne.s32.totalorder %s6670_s27, %s8941_s29  ;;  %p8947_p0 = scmp.lt.s32.totalorder %s8941_s29, %s8941_s29 }
  0x78   :  { %2771 = vmatpush1.bf16.msra.mxu0 %v7699_v30  ;;  %3077 = vmatpush1.bf16.msra.mxu1 %v7700_v32  ;;  %v154_v22 = vsel %vm9113_vm6, %v134_v15, %v153_v19  ;;  %v160_v25 = vsel %vm9095_vm10, %v142_v16, %v159_v23  ;;  %v7741_v26 = vld [vmem:[#allocation7 + $0x1c0] ss:$16 sps:$4 sm:$0xff]   ;;  %v9135_v27 = vor.u32 %v226_v21, %v223_v20  ;;  %v7743_v30 = vld [vmem:[#allocation7 + $0x1e4] ss:$16 sps:$4 sm:$0xff]   ;;  %v7745_v31 = vld [vmem:[#allocation7 + $0x1ec] ss:$16 sps:$4 sm:$0xff]  }
  0x79   :  { %2772 = vmatprep.subr.bf16.mxu0 %v7701_v33  ;;  %3078 = vmatprep.subr.bf16.mxu1 %v7703_v34  ;;  %155 = vst [vmem:[#allocation2] sm:$0xff] %v154_v22  ;;  %161 = vst [vmem:[#allocation2 + $0x10] sm:$0x11] %v160_v25  ;;  %v7747_v33 = vld [vmem:[#allocation7 + $0x1e0] ss:$16 sps:$4 sm:$0xff]   ;;  %p8948_p1 = por %p8947_p0, %p8946_p13 }
  0x7a   :  { %v7748_v35 = vld [vmem:[#allocation7 + $0x1e8] ss:$16 sps:$4 sm:$0xff]   ;;  %v7769_v53 = vld [vmem:[#allocation7 + $0x264] ss:$16 sps:$4 sm:$0xff]   ;;  %v7767_v55 = vld [vmem:[#allocation7 + $0x260] ss:$16 sps:$4 sm:$0xff]  }
  0x7b   :  { %v7770_v56 = vld [vmem:[#allocation7 + $0x268] ss:$16 sps:$4 sm:$0xff]   ;;  %v7775_v57 = vld [vmem:[#allocation7 + $0x284] ss:$16 sps:$4 sm:$0xff]   ;;  %v7778_v58 = vld [vmem:[#allocation7 + $0x28c] ss:$16 sps:$4 sm:$0xff]   ;;  %p8949_p2 = pnand %p8948_p1, %p8942_p12 }
  0x7c   :  { %2773 = vmatpush1.bf16.msra.mxu0 %v7705_v36  ;;  %3079 = vmatpush1.bf16.msra.mxu1 %v7706_v37  ;;  %v247_v32 = vld [vmem:[#allocation2 + $0x10] sm:$0xee]  ;;  %v7754_v37 = vld [vmem:[#allocation7 + $0x20c] ss:$16 sps:$4 sm:$0xff]   ;;  %v7776_v60 = vld [vmem:[#allocation7 + $0x288] ss:$16 sps:$4 sm:$0xff]  }
  0x7d   :  { %2774 = vmatprep.subr.bf16.mxu0 %v7707_v39  ;;  %3080 = vmatprep.subr.bf16.mxu1 %v7709_v40  ;;  %v248_v34 = vsel %vm9137_vm8, %v9135_v27, %v247_v32  ;;  %v7751_v36 = vld [vmem:[#allocation7 + $0x204] ss:$16 sps:$4 sm:$0xff]   ;;  %v7749_v39 = vld [vmem:[#allocation7 + $0x200] ss:$16 sps:$4 sm:$0xff]   ;;  %v7752_v40 = vld [vmem:[#allocation7 + $0x208] ss:$16 sps:$4 sm:$0xff]  }
  0x7e   :  { %249 = vst [vmem:[#allocation2 + $0x10] sm:$0xee] %v248_v34  ;;  %v7781_v61 = vld [vmem:[#allocation7 + $0x2a4] ss:$16 sps:$4 sm:$0xff]   ;;  %v7784_v62 = vld [vmem:[#allocation7 + $0x2ac] ss:$16 sps:$4 sm:$0xff]   ;;  %vm193_vm15 = vmand %vm180_vm3, %vm192_vm12 }
  0x7f   :  { %v7779_v63 = vld [vmem:[#allocation7 + $0x2a0] ss:$16 sps:$4 sm:$0xff]   ;;  %vm9156_vm4 = vmor %vm193_vm15, %vm191_vm13  ;;  %v7787_v3 = vld [vmem:[#allocation7 + $0x2c4] ss:$16 sps:$4 sm:$0xff]  }
  0x80   :  { %2775 = vmatpush1.bf16.msra.mxu0 %v7711_v41  ;;  %3081 = vmatpush1.bf16.msra.mxu1 %v7712_v42  ;;  %v7790_v5 = vld [vmem:[#allocation7 + $0x2cc] ss:$16 sps:$4 sm:$0xff]   ;;  %vm254_vm14 = vmand %vm253_vm2, %vm178_vm1  ;;  %v7788_v8 = vld [vmem:[#allocation7 + $0x2c8] ss:$16 sps:$4 sm:$0xff]   ;;  %vm409_vm1 = vcmask 1046528  }
  0x81   :  { %2776 = vmatprep.subr.bf16.mxu0 %v7713_v43  ;;  %3082 = vmatprep.subr.bf16.mxu1 %v7715_v44  ;;  %v7757_v43 = vld [vmem:[#allocation7 + $0x224] ss:$16 sps:$4 sm:$0xff]   ;;  %v7760_v44 = vld [vmem:[#allocation7 + $0x22c] ss:$16 sps:$4 sm:$0xff]   ;;  %vm256_vm3 = vmand %vm255_vm0, %vm181_vm5  ;;  %vm330_vm0 = vsmask.f32 7424 }
  0x82   :  { %v7793_v9 = vld [vmem:[#allocation7 + $0x2e4] ss:$16 sps:$4 sm:$0xff]   ;;  %v7796_v10 = vld [vmem:[#allocation7 + $0x2ec] ss:$16 sps:$4 sm:$0xff]   ;;  %vm9165_vm7 = vmor %vm256_vm3, %vm254_vm14 }
  0x83   :  { %v96_v16 = vld [vmem:[#allocation2 + $0x8] sm:$0x11]  ;;  %v107_v17 = vld [vmem:[#allocation2 + $0x18] sm:$0x11]  ;;  %v112_v21 = vld [vmem:[#allocation4 + $0x10] sm:$0xff] }
  0x84   :  { %2777 = vmatpush1.bf16.msra.mxu0 %v7717_v46  ;;  %3083 = vmatpush1.bf16.msra.mxu1 %v7718_v47  ;;  %v7755_v46 = vld [vmem:[#allocation7 + $0x220] ss:$16 sps:$4 sm:$0xff]   ;;  %v7758_v47 = vld [vmem:[#allocation7 + $0x228] ss:$16 sps:$4 sm:$0xff]   ;;  %v97_v19 = vsel %vm9095_vm10, 0, %v96_v16  ;;  %v108_v20 = vsel %vm9101_vm11, 0, %v107_v17 }
  0x85   :  { %2778 = vmatprep.subr.bf16.mxu0 %v7719_v49  ;;  %3084 = vmatprep.subr.bf16.mxu1 %v7721_v50  ;;  %v278_v38 = vld [vmem:[#allocation2 + $0x10] sm:$0xff]  ;;  %v7766_v50 = vld [vmem:[#allocation7 + $0x24c] ss:$16 sps:$4 sm:$0xff]   ;;  %98 = vst [vmem:[#allocation2 + $0x8] sm:$0x11] %v97_v19 }
  0x86   :  { %v9144_v41 = vcombine.high %v154_v22, %v278_v38  ;;  %v9146_v42 = vcombine.low %v154_v22, %v278_v38  ;;  %v7763_v49 = vld [vmem:[#allocation7 + $0x244] ss:$16 sps:$4 sm:$0xff]   ;;  %v113_v22 = vld [vmem:[#allocation4 + $0x18] sm:$0xff]  ;;  %109 = vst [vmem:[#allocation2 + $0x18] sm:$0x11] %v108_v20 }
  0x87   :  { %v187_v23 = vld [vmem:[#allocation2 + $0x18] sm:$0x22]  ;;  %v7829_v16 = vld [vmem:[#allocation7 + $0x3a4] ss:$16 sps:$4 sm:$0xff]  }
  0x88   :  { %2779 = vmatpush1.bf16.msra.mxu0 %v7723_v51  ;;  %3085 = vmatpush1.bf16.msra.mxu1 %v7724_v52  ;;  %v7761_v51 = vld [vmem:[#allocation7 + $0x240] ss:$16 sps:$4 sm:$0xff]   ;;  %v7764_v52 = vld [vmem:[#allocation7 + $0x248] ss:$16 sps:$4 sm:$0xff]   ;;  %v188_v25 = vsel %vm9121_vm9, 0, %v187_v23 }
  0x89   :  { %2780 = vmatprep.subr.bf16.mxu0 %v7725_v54  ;;  %3086 = vmatprep.subr.bf16.mxu1 %v7727_v59  ;;  %v7772_v54 = vld [vmem:[#allocation7 + $0x26c] ss:$16 sps:$4 sm:$0xff]   ;;  %v7773_v59 = vld [vmem:[#allocation7 + $0x280] ss:$16 sps:$4 sm:$0xff]   ;;  %189 = vst [vmem:[#allocation2 + $0x18] sm:$0x22] %v188_v25 }
  0x8a   :  { %2788 = vmatprep.mubr.bf16.mxu0 %v9144_v41  ;;  %3094 = vmatprep.mubr.bf16.mxu1 %v9144_v41  ;;  %v7832_v17 = vld [vmem:[#allocation7 + $0x3ac] ss:$16 sps:$4 sm:$0xff]   ;;  %v7830_v19 = vld [vmem:[#allocation7 + $0x3a8] ss:$16 sps:$4 sm:$0xff]   ;;  %v7836_v20 = vld [vmem:[#allocation7 + $0x3c4] ss:$16 sps:$4 sm:$0xff]  }
  0x8b   :  { %v7837_v23 = vld [vmem:[#allocation7 + $0x3c8] ss:$16 sps:$4 sm:$0xff]   ;;  %v7846_v25 = vld [vmem:[#allocation7 + $0x3ec] ss:$16 sps:$4 sm:$0xff]   ;;  %v8331_v2 = vld [vmem:[#allocation10 + $0x1e0] ss:$16 sps:$4 sm:$0xff]  }
  0x8c   :  { %2781 = vmatpush1.bf16.msra.mxu0 %v7729_v0  ;;  %3087 = vmatpush1.bf16.msra.mxu1 %v7730_v1  ;;  %v195_v0 = vld [vmem:[#allocation2 + $0x20] sm:$0x22]  ;;  %v7782_v1 = vld [vmem:[#allocation7 + $0x2a8] ss:$16 sps:$4 sm:$0xff]   ;;  %v8310_v48 = vld [vmem:[#allocation10 + $0x168] ss:$16 sps:$4 sm:$0xff]  }
  0x8d   :  { %2782 = vmatprep.subr.bf16.mxu0 %v7731_v7  ;;  %3088 = vmatprep.subr.bf16.mxu1 %v7733_v11  ;;  %v196_v6 = vsel %vm9156_vm4, 0, %v195_v0  ;;  %v7785_v7 = vld [vmem:[#allocation7 + $0x2c0] ss:$16 sps:$4 sm:$0xff]   ;;  %v8321_v12 = vld [vmem:[#allocation10 + $0x1a4] ss:$16 sps:$4 sm:$0xff]  }
  0x8e   :  { %197 = vst [vmem:[#allocation2 + $0x20] sm:$0x22] %v196_v6  ;;  %v7791_v11 = vld [vmem:[#allocation7 + $0x2e0] ss:$16 sps:$4 sm:$0xff]   ;;  %v8352_v15 = vld [vmem:[#allocation10 + $0x244] ss:$16 sps:$4 sm:$0xff]  }
  0x8f   :  { %v7815_v6 = vld [vmem:[#allocation7 + $0x360] ss:$16 sps:$4 sm:$0xff]  }
  0x90   :  { %2783 = vmatpush1.bf16.msra.mxu0 %v7735_v13  ;;  %3089 = vmatpush1.bf16.msra.mxu1 %v7736_v14  ;;  %v7794_v13 = vld [vmem:[#allocation7 + $0x2e8] ss:$16 sps:$4 sm:$0xff]   ;;  %v236_v14 = vrot.slane %v9135_v27, 4 }
  0x91   :  { %2784 = vmatprep.subr.bf16.mxu0 %v7737_v18  ;;  %3090 = vmatprep.subr.bf16.mxu1 %v7739_v24  ;;  %v7799_v18 = vld [vmem:[#allocation7 + $0x304] ss:$16 sps:$4 sm:$0xff]   ;;  %v7494_v24 = vpack.c.bf16 %v113_v22, %v112_v21  ;;  %v205_v27 = vld [vmem:[#allocation4 + $0x38] sm:$0xff]  ;;  %v7834_v22 = vld [vmem:[#allocation7 + $0x3c0] ss:$16 sps:$4 sm:$0xff]  }
  0x92   :  { %v7839_v21 = vld [vmem:[#allocation7 + $0x3cc] ss:$16 sps:$4 sm:$0xff]  }
  0x93   :  { %v139_v34 = vshll.u32 %v7494_v24, 16 }
  0x94   :  { %2785 = vmatpush1.bf16.msra.mxu0 %v7741_v26  ;;  %3091 = vmatpush1.bf16.msra.mxu1 %v7742_v28  ;;  %v204_v26 = vld [vmem:[#allocation4 + $0x30] sm:$0xff]  ;;  %v7802_v28 = vld [vmem:[#allocation7 + $0x30c] ss:$16 sps:$4 sm:$0xff]  }
  0x95   :  { %2786 = vmatprep.subr.bf16.mxu0 %v7743_v30  ;;  %3092 = vmatprep.subr.bf16.mxu1 %v7745_v31  ;;  %v258_v30 = vld [vmem:[#allocation2 + $0x20] sm:$0x33]  ;;  %v7496_v31 = vpack.c.bf16 %v205_v27, %v204_v26  ;;  %v7844_v27 = vld [vmem:[#allocation7 + $0x3e8] ss:$16 sps:$4 sm:$0xff]  }
  0x96   :  { %v259_v32 = vsel %vm9165_vm7, %v236_v14, %v258_v30  ;;  %v7824_v14 = vld [vmem:[#allocation7 + $0x388] ss:$16 sps:$4 sm:$0xff]   ;;  %v7841_v26 = vld [vmem:[#allocation7 + $0x3e0] ss:$16 sps:$4 sm:$0xff]   ;;  %v7852_v30 = vld [vmem:[#allocation7 + $0x40c] ss:$16 sps:$4 sm:$0xff]  }
  0x97   :  { %260 = vst [vmem:[#allocation2 + $0x20] sm:$0x33] %v259_v32  ;;  %v232_v38 = vshll.u32 %v7496_v31, 16  ;;  %v7847_v32 = vld [vmem:[#allocation7 + $0x400] ss:$16 sps:$4 sm:$0xff]  }
  0x98   :  { %2787 = vmatpush1.bf16.msra.mxu0 %v7747_v33  ;;  %3093 = vmatpush1.bf16.msra.mxu1 %v7748_v35  ;;  %v136_v33 = vshrl.u32 %v7494_v24, 16  ;;  %v7797_v35 = vld [vmem:[#allocation7 + $0x300] ss:$16 sps:$4 sm:$0xff]   ;;  %v7843_v24 = vld [vmem:[#allocation7 + $0x3e4] ss:$16 sps:$4 sm:$0xff]  }
  0x99   :  { %2807 = vmatprep.subr.bf16.mxu0 %v7751_v36  ;;  %3113 = vmatprep.subr.bf16.mxu1 %v7754_v37  ;;  %v7800_v36 = vld [vmem:[#allocation7 + $0x308] ss:$16 sps:$4 sm:$0xff]   ;;  %v229_v37 = vshrl.u32 %v7496_v31, 16 }
  0x9b   :  { %2789 = vmatmul.mubr.bf16.vlgmr.msra.gmra.mrb[0].mxu0 %v9146_v42  ;;  %3095 = vmatmul.mubr.bf16.vlgmr.msra.gmra.mrb[0].mxu1 %v9146_v42 }
  0x9c   :  { %2808 = vmatpush1.bf16.msra.mxu0 %v7749_v39  ;;  %3114 = vmatpush1.bf16.msra.mxu1 %v7752_v40  ;;  %v7805_v39 = vld [vmem:[#allocation7 + $0x324] ss:$16 sps:$4 sm:$0xff]   ;;  %v138_v40 = vrot.slane %v136_v33, 7  ;;  %v7850_v33 = vld [vmem:[#allocation7 + $0x408] ss:$16 sps:$4 sm:$0xff]  }
  0x9d   :  { %2809 = vmatprep.subr.bf16.mxu0 %v7757_v43  ;;  %3115 = vmatprep.subr.bf16.mxu1 %v7760_v44  ;;  %v7808_v43 = vld [vmem:[#allocation7 + $0x32c] ss:$16 sps:$4 sm:$0xff]   ;;  %v231_v44 = vrot.slane %v229_v37, 6  ;;  %v7856_v37 = vld [vmem:[#allocation7 + $0x428] ss:$16 sps:$4 sm:$0xff]  }
  0xa0   :  { %2810 = vmatpush1.bf16.msra.mxu0 %v7755_v46  ;;  %3116 = vmatpush1.bf16.msra.mxu1 %v7758_v47  ;;  %v234_v46 = vrot.slane %v232_v38, 7  ;;  %v7803_v47 = vld [vmem:[#allocation7 + $0x320] ss:$16 sps:$4 sm:$0xff]   ;;  %v198_v38 = vld [vmem:[#allocation2 + $0x28] sm:$0x22] }
  0xa1   :  { %2811 = vmatprep.subr.bf16.mxu0 %v7763_v49  ;;  %3117 = vmatprep.subr.bf16.mxu1 %v7766_v50  ;;  %v141_v49 = vor.u32 %v139_v34, %v138_v40  ;;  %v143_v50 = vrot.slane %v138_v40, 4  ;;  %v7855_v34 = vld [vmem:[#allocation7 + $0x424] ss:$16 sps:$4 sm:$0xff]   ;;  %v7864_v40 = vld [vmem:[#allocation7 + $0x44c] ss:$16 sps:$4 sm:$0xff]  }
  0xa4   :  { %2812 = vmatpush1.bf16.msra.mxu0 %v7761_v51  ;;  %3118 = vmatpush1.bf16.msra.mxu1 %v7764_v52  ;;  %v156_v51 = vld [vmem:[#allocation2 + $0x8] sm:$0xff]  ;;  %v162_v52 = vld [vmem:[#allocation2 + $0x18] sm:$0x11] }
  0xa5   :  { %2813 = vmatprep.subr.bf16.mxu0 %v7769_v53  ;;  %3119 = vmatprep.subr.bf16.mxu1 %v7772_v54  ;;  %v9177_v53 = vor.u32 %v234_v46, %v231_v44  ;;  %v7806_v54 = vld [vmem:[#allocation7 + $0x328] ss:$16 sps:$4 sm:$0xff]   ;;  %v7859_v44 = vld [vmem:[#allocation7 + $0x440] ss:$16 sps:$4 sm:$0xff]  }
  0xa6   :  { %v7862_v46 = vld [vmem:[#allocation7 + $0x448] ss:$16 sps:$4 sm:$0xff]  }
  0xa8   :  { %2814 = vmatpush1.bf16.msra.mxu0 %v7767_v55  ;;  %3120 = vmatpush1.bf16.msra.mxu1 %v7770_v56  ;;  %v7811_v55 = vld [vmem:[#allocation7 + $0x344] ss:$16 sps:$4 sm:$0xff]   ;;  %v9181_v56 = vsel %vm9113_vm6, %v141_v49, %v156_v51  ;;  %v7870_v49 = vld [vmem:[#allocation7 + $0x46c] ss:$16 sps:$4 sm:$0xff]   ;;  %v237_v51 = vrot.slane %v9177_v53, 4 }
  0xa9   :  { %2815 = vmatprep.subr.bf16.mxu0 %v7775_v57  ;;  %3121 = vmatprep.subr.bf16.mxu1 %v7778_v58  ;;  %v163_v57 = vsel %vm9095_vm10, %v143_v50, %v162_v52  ;;  %v250_v58 = vld [vmem:[#allocation2 + $0x18] sm:$0xee]  ;;  %158 = vst [vmem:[#allocation2 + $0x8] sm:$0xff] %v9181_v56  ;;  %v7865_v50 = vld [vmem:[#allocation7 + $0x460] ss:$16 sps:$4 sm:$0xff]  }
  0xaa   :  { %164 = vst [vmem:[#allocation2 + $0x18] sm:$0x11] %v163_v57  ;;  %v7868_v52 = vld [vmem:[#allocation7 + $0x468] ss:$16 sps:$4 sm:$0xff]  }
  0xac   :  { %2816 = vmatpush1.bf16.msra.mxu0 %v7773_v59  ;;  %3122 = vmatpush1.bf16.msra.mxu1 %v7776_v60  ;;  %v7814_v59 = vld [vmem:[#allocation7 + $0x34c] ss:$16 sps:$4 sm:$0xff]   ;;  %v251_v60 = vsel %vm9137_vm8, %v9177_v53, %v250_v58 }
  0xad   :  { %2817 = vmatprep.subr.bf16.mxu0 %v7781_v61  ;;  %3123 = vmatprep.subr.bf16.mxu1 %v7784_v62  ;;  %v280_v61 = vld [vmem:[#allocation2 + $0x20] sm:$0x11]  ;;  %252 = vst [vmem:[#allocation2 + $0x18] sm:$0xee] %v251_v60 }
  0xae   :  { %v7809_v62 = vld [vmem:[#allocation7 + $0x340] ss:$16 sps:$4 sm:$0xff]   ;;  %v6692_v0 = vcombine.high %v280_v61, %v280_v61 }
  0xaf   :  { %v7871_v60 = vld [vmem:[#allocation7 + $0x480] ss:$16 sps:$4 sm:$0xff]  }
  0xb0   :  { %2818 = vmatpush1.bf16.msra.mxu0 %v7779_v63  ;;  %3124 = vmatpush1.bf16.msra.mxu1 %v7782_v1  ;;  %v7812_v63 = vld [vmem:[#allocation7 + $0x348] ss:$16 sps:$4 sm:$0xff]   ;;  %v6691_v1 = vcombine.low %v280_v61, %v280_v61 }
  0xb1   :  { %2819 = vmatprep.subr.bf16.mxu0 %v7787_v3  ;;  %3125 = vmatprep.subr.bf16.mxu1 %v7790_v5  ;;  %v7817_v3 = vld [vmem:[#allocation7 + $0x364] ss:$16 sps:$4 sm:$0xff]   ;;  %v7820_v5 = vld [vmem:[#allocation7 + $0x36c] ss:$16 sps:$4 sm:$0xff]   ;;  %v7874_v61 = vld [vmem:[#allocation7 + $0x488] ss:$16 sps:$4 sm:$0xff]  }
  0xb2   :  { %2798 = vmatprep.mubr.bf16.mxu0 %v6692_v0  ;;  %3104 = vmatprep.mubr.bf16.mxu1 %v6692_v0  ;;  %v344_v0 = vshrl.u32 %v9144_v41, 16 }
  0xb3   :  { %2799 = vmatmul.mubr.bf16.gmra.mrb[4].mxu0 %v6691_v1  ;;  %3105 = vmatmul.mubr.bf16.gmra.mrb[4].mxu1 %v6691_v1 }
  0xb4   :  { %2820 = vmatpush1.bf16.msra.mxu0 %v7785_v7  ;;  %3126 = vmatpush1.bf16.msra.mxu1 %v7788_v8  ;;  %v7818_v7 = vld [vmem:[#allocation7 + $0x368] ss:$16 sps:$4 sm:$0xff]   ;;  %v7823_v8 = vld [vmem:[#allocation7 + $0x384] ss:$16 sps:$4 sm:$0xff]  }
  0xb5   :  { %2821 = vmatprep.subr.bf16.mxu0 %v7793_v9  ;;  %3127 = vmatprep.subr.bf16.mxu1 %v7796_v10  ;;  %v7826_v9 = vld [vmem:[#allocation7 + $0x38c] ss:$16 sps:$4 sm:$0xff]  }
  0xb6   :  { %v279_v10 = vld [vmem:[#allocation2 + $0x18] sm:$0xff] }
  0xb7   :  { %v9195_v31 = vcombine.low %v9181_v56, %v279_v10 }
  0xb8   :  { %2822 = vmatpush1.bf16.msra.mxu0 %v7791_v11  ;;  %3128 = vmatpush1.bf16.msra.mxu1 %v7794_v13  ;;  %v9190_v11 = vcombine.high %v9181_v56, %v279_v10  ;;  %v7821_v13 = vld [vmem:[#allocation7 + $0x380] ss:$16 sps:$4 sm:$0xff]  }
  0xb9   :  { %2823 = vmatprep.subr.bf16.mxu0 %v7799_v18  ;;  %3129 = vmatprep.subr.bf16.mxu1 %v7802_v28  ;;  %v7827_v18 = vld [vmem:[#allocation7 + $0x3a0] ss:$16 sps:$4 sm:$0xff]   ;;  %v7849_v28 = vld [vmem:[#allocation7 + $0x404] ss:$16 sps:$4 sm:$0xff]  }
  0xba   :  { %2839 = vmatprep.mubr.bf16.mxu0 %v9190_v11  ;;  %3145 = vmatprep.mubr.bf16.mxu1 %v9190_v11  ;;  %v9202_v56 = vld [vmem:[#allocation2 + $0x20] sm:$0x33] }
  0xbb   :  { %v9209_v53 = vcombine.high %v9202_v56, %v9202_v56  ;;  %v7883_v10 = vld [vmem:[#allocation7 + $0x4c0] ss:$16 sps:$4 sm:$0xff]  }
  0xbc   :  { %2824 = vmatpush1.bf16.msra.mxu0 %v7797_v35  ;;  %3130 = vmatpush1.bf16.msra.mxu1 %v7800_v36  ;;  %v7858_v35 = vld [vmem:[#allocation7 + $0x42c] ss:$16 sps:$4 sm:$0xff]   ;;  %v7853_v36 = vld [vmem:[#allocation7 + $0x420] ss:$16 sps:$4 sm:$0xff]  }
  0xbd   :  { %2825 = vmatprep.subr.bf16.mxu0 %v7805_v39  ;;  %3131 = vmatprep.subr.bf16.mxu1 %v7808_v43  ;;  %v7861_v39 = vld [vmem:[#allocation7 + $0x444] ss:$16 sps:$4 sm:$0xff]   ;;  %v199_v43 = vsel %vm9156_vm4, 0, %v198_v38  ;;  %v7918_v38 = vld [vmem:[#allocation7 + $0x56c] ss:$16 sps:$4 sm:$0xff]  }
  0xbe   :  { %200 = vst [vmem:[#allocation2 + $0x28] sm:$0x22] %v199_v43  ;;  %v7921_v43 = vld [vmem:[#allocation7 + $0x584] ss:$16 sps:$4 sm:$0xff]  }
  0xc0   :  { %2826 = vmatpush1.bf16.msra.mxu0 %v7803_v47  ;;  %3132 = vmatpush1.bf16.msra.mxu1 %v7806_v54  ;;  %v7867_v47 = vld [vmem:[#allocation7 + $0x464] ss:$16 sps:$4 sm:$0xff]  }
  0xc1   :  { %2827 = vmatprep.subr.bf16.mxu0 %v7811_v55  ;;  %3133 = vmatprep.subr.bf16.mxu1 %v7814_v59  ;;  %v7873_v54 = vld [vmem:[#allocation7 + $0x484] ss:$16 sps:$4 sm:$0xff]   ;;  %v7876_v55 = vld [vmem:[#allocation7 + $0x48c] ss:$16 sps:$4 sm:$0xff]   ;;  %v346_v59 = vshll.u32 %v9144_v41, 16 }
  0xc2   :  { %v7886_v41 = vld [vmem:[#allocation7 + $0x4c8] ss:$16 sps:$4 sm:$0xff]  }
  0xc3   :  { %v348_v1 = vrot.slane %v346_v59, 1  ;;  %v7932_v59 = vld [vmem:[#allocation7 + $0x5c0] ss:$16 sps:$4 sm:$0xff]  }
  0xc4   :  { %2828 = vmatpush1.bf16.msra.mxu0 %v7809_v62  ;;  %3134 = vmatpush1.bf16.msra.mxu1 %v7812_v63  ;;  %v7879_v62 = vld [vmem:[#allocation7 + $0x4a4] ss:$16 sps:$4 sm:$0xff]   ;;  %v7882_v63 = vld [vmem:[#allocation7 + $0x4ac] ss:$16 sps:$4 sm:$0xff]  }
  0xc5   :  { %2829 = vmatprep.subr.bf16.mxu0 %v7817_v3  ;;  %3135 = vmatprep.subr.bf16.mxu1 %v7820_v5  ;;  %v261_v57 = vld [vmem:[#allocation2 + $0x28] sm:$0x33]  ;;  %v7877_v3 = vld [vmem:[#allocation7 + $0x4a0] ss:$16 sps:$4 sm:$0xff]  }
  0xc6   :  { %v262_v58 = vsel %vm9165_vm7, %v237_v51, %v261_v57  ;;  %v7880_v5 = vld [vmem:[#allocation7 + $0x4a8] ss:$16 sps:$4 sm:$0xff]   ;;  %v7925_v51 = vld [vmem:[#allocation7 + $0x5a0] ss:$16 sps:$4 sm:$0xff]   ;;  %v7934_v57 = vld [vmem:[#allocation7 + $0x5c4] ss:$16 sps:$4 sm:$0xff]  }
  0xc7   :  { %263 = vst [vmem:[#allocation2 + $0x28] sm:$0x33] %v262_v58  ;;  %v7937_v58 = vld [vmem:[#allocation7 + $0x5cc] ss:$16 sps:$4 sm:$0xff]  }
  0xc8   :  { %2830 = vmatpush1.bf16.msra.mxu0 %v7815_v6  ;;  %3136 = vmatpush1.bf16.msra.mxu1 %v7818_v7  ;;  %v351_v6 = vshll.u32 %v9209_v53, 16  ;;  %v7885_v7 = vld [vmem:[#allocation7 + $0x4c4] ss:$16 sps:$4 sm:$0xff]  }
  0xc9   :  { %2831 = vmatprep.subr.bf16.mxu0 %v7823_v8  ;;  %3137 = vmatprep.subr.bf16.mxu1 %v7826_v9  ;;  %v7888_v8 = vld [vmem:[#allocation7 + $0x4cc] ss:$16 sps:$4 sm:$0xff]  }
  0xcc   :  { %2832 = vmatpush1.bf16.msra.mxu0 %v7821_v13  ;;  %3138 = vmatpush1.bf16.msra.mxu1 %v7824_v14 }
  0xcd   :  { %2833 = vmatprep.subr.bf16.mxu0 %v7829_v16  ;;  %3139 = vmatprep.subr.bf16.mxu1 %v7832_v17  ;;  %v349_v16 = vor.u32 %v348_v1, %v344_v0  ;;  %v9213_v17 = vrot.slane %v351_v6, 1  ;;  %v7939_v1 = vld [vmem:[#allocation7 + $0x5e0] ss:$16 sps:$4 sm:$0xff]  }
  0xce   :  { %v281_v9 = vld [vmem:[#allocation2 + $0x28] sm:$0x11] }
  0xcf   :  { %v6694_v13 = vcombine.high %v281_v9, %v281_v9  ;;  %v6693_v14 = vcombine.low %v281_v9, %v281_v9  ;;  %v382_v9 = vshrl.u32 %v9209_v53, 16 }
  0xd0   :  { %2834 = vmatpush1.bf16.msra.mxu0 %v7827_v18  ;;  %3140 = vmatpush1.bf16.msra.mxu1 %v7830_v19  ;;  %v7891_v18 = vld [vmem:[#allocation7 + $0x4e4] ss:$16 sps:$4 sm:$0xff]   ;;  %v7894_v19 = vld [vmem:[#allocation7 + $0x4ec] ss:$16 sps:$4 sm:$0xff]  }
  0xd1   :  { %2835 = vmatprep.subr.bf16.mxu0 %v7836_v20  ;;  %3141 = vmatprep.subr.bf16.mxu1 %v7839_v21  ;;  %v7889_v20 = vld [vmem:[#allocation7 + $0x4e0] ss:$16 sps:$4 sm:$0xff]   ;;  %v354_v21 = vsel %vm330_vm0, %v349_v16, %v9213_v17  ;;  %v7950_v16 = vld [vmem:[#allocation7 + $0x608] ss:$16 sps:$4 sm:$0xff]  }
  0xd4   :  { %2836 = vmatpush1.bf16.msra.mxu0 %v7834_v22  ;;  %3142 = vmatpush1.bf16.msra.mxu1 %v7837_v23  ;;  %v7892_v22 = vld [vmem:[#allocation7 + $0x4e8] ss:$16 sps:$4 sm:$0xff]   ;;  %v7897_v23 = vld [vmem:[#allocation7 + $0x504] ss:$16 sps:$4 sm:$0xff]  }
  0xd5   :  { %2837 = vmatprep.subr.bf16.mxu0 %v7843_v24  ;;  %3143 = vmatprep.subr.bf16.mxu1 %v7846_v25  ;;  %v7900_v24 = vld [vmem:[#allocation7 + $0x50c] ss:$16 sps:$4 sm:$0xff]   ;;  %v7895_v25 = vld [vmem:[#allocation7 + $0x500] ss:$16 sps:$4 sm:$0xff]  }
  0xd8   :  { %2838 = vmatpush1.bf16.msra.mxu0 %v7841_v26  ;;  %3144 = vmatpush1.bf16.msra.mxu1 %v7844_v27  ;;  %v7898_v26 = vld [vmem:[#allocation7 + $0x508] ss:$16 sps:$4 sm:$0xff]   ;;  %v7903_v27 = vld [vmem:[#allocation7 + $0x524] ss:$16 sps:$4 sm:$0xff]  }
  0xd9   :  { %2858 = vmatprep.subr.bf16.mxu0 %v7849_v28  ;;  %3164 = vmatprep.subr.bf16.mxu1 %v7852_v30  ;;  %v7906_v28 = vld [vmem:[#allocation7 + $0x52c] ss:$16 sps:$4 sm:$0xff]   ;;  %v7901_v30 = vld [vmem:[#allocation7 + $0x520] ss:$16 sps:$4 sm:$0xff]  }
  0xdb   :  { %2840 = vmatmul.mubr.bf16.vlgmr.msra.gmra.mrb[0].mxu0 %v9195_v31  ;;  %3146 = vmatmul.mubr.bf16.vlgmr.msra.gmra.mrb[0].mxu1 %v9195_v31 }
  0xdc   :  { %2859 = vmatpush1.bf16.msra.mxu0 %v7847_v32  ;;  %3165 = vmatpush1.bf16.msra.mxu1 %v7850_v33  ;;  %v7904_v32 = vld [vmem:[#allocation7 + $0x528] ss:$16 sps:$4 sm:$0xff]   ;;  %v7909_v33 = vld [vmem:[#allocation7 + $0x544] ss:$16 sps:$4 sm:$0xff]  }
  0xdd   :  { %2860 = vmatprep.subr.bf16.mxu0 %v7855_v34  ;;  %3166 = vmatprep.subr.bf16.mxu1 %v7858_v35  ;;  %v7912_v34 = vld [vmem:[#allocation7 + $0x54c] ss:$16 sps:$4 sm:$0xff]   ;;  %v7907_v35 = vld [vmem:[#allocation7 + $0x540] ss:$16 sps:$4 sm:$0xff]  }
  0xde   :  { %2849 = vmatprep.mubr.bf16.mxu0 %v6694_v13  ;;  %3155 = vmatprep.mubr.bf16.mxu1 %v6694_v13 }
  0xe0   :  { %2861 = vmatpush1.bf16.msra.mxu0 %v7853_v36  ;;  %3167 = vmatpush1.bf16.msra.mxu1 %v7856_v37  ;;  %v7910_v36 = vld [vmem:[#allocation7 + $0x548] ss:$16 sps:$4 sm:$0xff]   ;;  %v7915_v37 = vld [vmem:[#allocation7 + $0x564] ss:$16 sps:$4 sm:$0xff]  }
  0xe1   :  { %2862 = vmatprep.subr.bf16.mxu0 %v7861_v39  ;;  %3168 = vmatprep.subr.bf16.mxu1 %v7864_v40  ;;  %v7913_v39 = vld [vmem:[#allocation7 + $0x560] ss:$16 sps:$4 sm:$0xff]   ;;  %v7916_v40 = vld [vmem:[#allocation7 + $0x568] ss:$16 sps:$4 sm:$0xff]  }
  0xe3   :  { %2850 = vmatmul.mubr.bf16.gmra.mrb[4].mxu0 %v6693_v14  ;;  %3156 = vmatmul.mubr.bf16.gmra.mrb[4].mxu1 %v6693_v14  ;;  %v370_v14 = vshll.u32 %v9190_v11, 16 }
  0xe4   :  { %2863 = vmatpush1.bf16.msra.mxu0 %v7859_v44  ;;  %3169 = vmatpush1.bf16.msra.mxu1 %v7862_v46  ;;  %v7924_v44 = vld [vmem:[#allocation7 + $0x58c] ss:$16 sps:$4 sm:$0xff]   ;;  %v7919_v46 = vld [vmem:[#allocation7 + $0x580] ss:$16 sps:$4 sm:$0xff]  }
  0xe5   :  { %2864 = vmatprep.subr.bf16.mxu0 %v7867_v47  ;;  %3170 = vmatprep.subr.bf16.mxu1 %v7870_v49  ;;  %v7922_v47 = vld [vmem:[#allocation7 + $0x588] ss:$16 sps:$4 sm:$0xff]   ;;  %v7927_v49 = vld [vmem:[#allocation7 + $0x5a4] ss:$16 sps:$4 sm:$0xff]  }
  0xe6   :  { %2890 = vmatprep.mubr.bf16.mxu0 %v354_v21  ;;  %3196 = vmatprep.mubr.bf16.mxu1 %v354_v21  ;;  %v368_v21 = vshrl.u32 %v9190_v11, 16 }
  0xe8   :  { %2865 = vmatpush1.bf16.msra.mxu0 %v7865_v50  ;;  %3171 = vmatpush1.bf16.msra.mxu1 %v7868_v52  ;;  %v7930_v50 = vld [vmem:[#allocation7 + $0x5ac] ss:$16 sps:$4 sm:$0xff]   ;;  %v7928_v52 = vld [vmem:[#allocation7 + $0x5a8] ss:$16 sps:$4 sm:$0xff]  }
  0xe9   :  { %2866 = vmatprep.subr.bf16.mxu0 %v7873_v54  ;;  %3172 = vmatprep.subr.bf16.mxu1 %v7876_v55  ;;  %v9219_v54 = vcombine.low %v9202_v56, %v9202_v56  ;;  %v334_v55 = vshll.u32 %v9146_v42, 16  ;;  %v7944_v56 = vld [vmem:[#allocation7 + $0x5ec] ss:$16 sps:$4 sm:$0xff]  }
  0xeb   :  { %v339_v0 = vshll.u32 %v9219_v54, 16 }
  0xec   :  { %2867 = vmatpush1.bf16.msra.mxu0 %v7871_v60  ;;  %3173 = vmatpush1.bf16.msra.mxu1 %v7874_v61  ;;  %v332_v60 = vshrl.u32 %v9146_v42, 16  ;;  %v7935_v61 = vld [vmem:[#allocation7 + $0x5c8] ss:$16 sps:$4 sm:$0xff]   ;;  %v7952_v42 = vld [vmem:[#allocation7 + $0x60c] ss:$16 sps:$4 sm:$0xff]  }
  0xed   :  { %2868 = vmatprep.subr.bf16.mxu0 %v7879_v62  ;;  %3174 = vmatprep.subr.bf16.mxu1 %v7882_v63  ;;  %v7941_v62 = vld [vmem:[#allocation7 + $0x5e4] ss:$16 sps:$4 sm:$0xff]   ;;  %v336_v63 = vrot.slane %v334_v55, 1  ;;  %v7983_v55 = vld [vmem:[#allocation7 + $0x6c0] ss:$16 sps:$4 sm:$0xff]  }
  0xef   :  { %v337_v6 = vor.u32 %v336_v63, %v332_v60  ;;  %v7989_v60 = vld [vmem:[#allocation7 + $0x6e0] ss:$16 sps:$4 sm:$0xff]   ;;  %v8000_v63 = vld [vmem:[#allocation7 + $0x70c] ss:$16 sps:$4 sm:$0xff]  }
  0xf0   :  { %2869 = vmatpush1.bf16.msra.mxu0 %v7877_v3  ;;  %3175 = vmatpush1.bf16.msra.mxu1 %v7880_v5  ;;  %v7942_v3 = vld [vmem:[#allocation7 + $0x5e8] ss:$16 sps:$4 sm:$0xff]   ;;  %v7949_v5 = vld [vmem:[#allocation7 + $0x604] ss:$16 sps:$4 sm:$0xff]  }
  0xf1   :  { %2870 = vmatprep.subr.bf16.mxu0 %v7885_v7  ;;  %3176 = vmatprep.subr.bf16.mxu1 %v7888_v8  ;;  %v341_v7 = vrot.slane %v339_v0, 1  ;;  %v9224_v8 = vld [vmem:[#allocation2 + $0x28] sm:$0x33]  ;;  %v7995_v0 = vld [vmem:[#allocation7 + $0x700] ss:$16 sps:$4 sm:$0xff]  }
  0xf2   :  { %v9229_v13 = vcombine.high %v9224_v8, %v9224_v8 }
  0xf4   :  { %2871 = vmatpush1.bf16.msra.mxu0 %v7883_v10  ;;  %3177 = vmatpush1.bf16.msra.mxu1 %v7886_v41  ;;  %v7947_v10 = vld [vmem:[#allocation7 + $0x600] ss:$16 sps:$4 sm:$0xff]   ;;  %v342_v41 = vsel %vm330_vm0, %v337_v6, %v341_v7  ;;  %v8004_v6 = vld [vmem:[#allocation7 + $0x728] ss:$16 sps:$4 sm:$0xff]  }
  0xf5   :  { %2872 = vmatprep.subr.bf16.mxu0 %v7891_v18  ;;  %3178 = vmatprep.subr.bf16.mxu1 %v7894_v19  ;;  %v7955_v18 = vld [vmem:[#allocation7 + $0x624] ss:$16 sps:$4 sm:$0xff]   ;;  %v7958_v19 = vld [vmem:[#allocation7 + $0x62c] ss:$16 sps:$4 sm:$0xff]  }
  0xf8   :  { %2873 = vmatpush1.bf16.msra.mxu0 %v7889_v20  ;;  %3179 = vmatpush1.bf16.msra.mxu1 %v7892_v22  ;;  %v384_v20 = vor.u32 %v382_v9, %v9213_v17  ;;  %v7953_v22 = vld [vmem:[#allocation7 + $0x620] ss:$16 sps:$4 sm:$0xff]  }
  0xf9   :  { %2874 = vmatprep.subr.bf16.mxu0 %v7897_v23  ;;  %3180 = vmatprep.subr.bf16.mxu1 %v7900_v24  ;;  %v379_v23 = vshrl.u32 %v9219_v54, 16  ;;  %v372_v24 = vrot.slane %v370_v14, 1  ;;  %v7959_v17 = vld [vmem:[#allocation7 + $0x640] ss:$16 sps:$4 sm:$0xff]   ;;  %v8015_v14 = vld [vmem:[#allocation7 + $0x764] ss:$16 sps:$4 sm:$0xff]  }
  0xfa   :  { %v8007_v9 = vld [vmem:[#allocation7 + $0x740] ss:$16 sps:$4 sm:$0xff]  }
  0xfb   :  { %v373_v11 = vor.u32 %v372_v24, %v368_v21  ;;  %v8019_v21 = vld [vmem:[#allocation7 + $0x780] ss:$16 sps:$4 sm:$0xff]   ;;  %v8030_v24 = vld [vmem:[#allocation7 + $0x7ac] ss:$16 sps:$4 sm:$0xff]  }
  0xfc   :  { %2875 = vmatpush1.bf16.msra.mxu0 %v7895_v25  ;;  %3181 = vmatpush1.bf16.msra.mxu1 %v7898_v26  ;;  %v375_v25 = vshll.u32 %v9229_v13, 16  ;;  %v7956_v26 = vld [vmem:[#allocation7 + $0x628] ss:$16 sps:$4 sm:$0xff]  }
  0xfd   :  { %2876 = vmatprep.subr.bf16.mxu0 %v7903_v27  ;;  %3182 = vmatprep.subr.bf16.mxu1 %v7906_v28  ;;  %v7961_v27 = vld [vmem:[#allocation7 + $0x644] ss:$16 sps:$4 sm:$0xff]   ;;  %v7964_v28 = vld [vmem:[#allocation7 + $0x64c] ss:$16 sps:$4 sm:$0xff]  }
 0x100   :  { %2877 = vmatpush1.bf16.msra.mxu0 %v7901_v30  ;;  %3183 = vmatpush1.bf16.msra.mxu1 %v7904_v32  ;;  %v381_v30 = vor.u32 %v379_v23, %v341_v7  ;;  %v9237_v32 = vrot.slane %v375_v25, 1  ;;  %v8009_v7 = vld [vmem:[#allocation7 + $0x744] ss:$16 sps:$4 sm:$0xff]   ;;  %v8025_v25 = vld [vmem:[#allocation7 + $0x7a0] ss:$16 sps:$4 sm:$0xff]  }
 0x101   :  { %2878 = vmatprep.subr.bf16.mxu0 %v7909_v33  ;;  %3184 = vmatprep.subr.bf16.mxu1 %v7912_v34  ;;  %v7962_v33 = vld [vmem:[#allocation7 + $0x648] ss:$16 sps:$4 sm:$0xff]   ;;  %v7967_v34 = vld [vmem:[#allocation7 + $0x664] ss:$16 sps:$4 sm:$0xff]  }
 0x102   :  { %v8027_v23 = vld [vmem:[#allocation7 + $0x7a4] ss:$16 sps:$4 sm:$0xff]  }
 0x104   :  { %2879 = vmatpush1.bf16.msra.mxu0 %v7907_v35  ;;  %3185 = vmatpush1.bf16.msra.mxu1 %v7910_v36  ;;  %v7970_v35 = vld [vmem:[#allocation7 + $0x66c] ss:$16 sps:$4 sm:$0xff]   ;;  %v7965_v36 = vld [vmem:[#allocation7 + $0x660] ss:$16 sps:$4 sm:$0xff]  }
 0x105   :  { %2880 = vmatprep.subr.bf16.mxu0 %v7915_v37  ;;  %3186 = vmatprep.subr.bf16.mxu1 %v7918_v38  ;;  %v378_v37 = vsel %vm330_vm0, %v373_v11, %v9237_v32  ;;  %v7968_v38 = vld [vmem:[#allocation7 + $0x668] ss:$16 sps:$4 sm:$0xff]   ;;  %v8031_v11 = vld [vmem:[#allocation7 + $0x7c0] ss:$16 sps:$4 sm:$0xff]  }
 0x108   :  { %2881 = vmatpush1.bf16.msra.mxu0 %v7913_v39  ;;  %3187 = vmatpush1.bf16.msra.mxu1 %v7916_v40  ;;  %v7973_v39 = vld [vmem:[#allocation7 + $0x684] ss:$16 sps:$4 sm:$0xff]   ;;  %v7976_v40 = vld [vmem:[#allocation7 + $0x68c] ss:$16 sps:$4 sm:$0xff]  }
 0x109   :  { %2882 = vmatprep.subr.bf16.mxu0 %v7921_v43  ;;  %3188 = vmatprep.subr.bf16.mxu1 %v7924_v44  ;;  %v7971_v43 = vld [vmem:[#allocation7 + $0x680] ss:$16 sps:$4 sm:$0xff]   ;;  %v7974_v44 = vld [vmem:[#allocation7 + $0x688] ss:$16 sps:$4 sm:$0xff]  }
 0x10c   :  { %2883 = vmatpush1.bf16.msra.mxu0 %v7919_v46  ;;  %3189 = vmatpush1.bf16.msra.mxu1 %v7922_v47  ;;  %v7979_v46 = vld [vmem:[#allocation7 + $0x6a4] ss:$16 sps:$4 sm:$0xff]   ;;  %v7982_v47 = vld [vmem:[#allocation7 + $0x6ac] ss:$16 sps:$4 sm:$0xff]  }
 0x10d   :  { %2884 = vmatprep.subr.bf16.mxu0 %v7927_v49  ;;  %3190 = vmatprep.subr.bf16.mxu1 %v7930_v50  ;;  %v7977_v49 = vld [vmem:[#allocation7 + $0x6a0] ss:$16 sps:$4 sm:$0xff]   ;;  %v7980_v50 = vld [vmem:[#allocation7 + $0x6a8] ss:$16 sps:$4 sm:$0xff]  }
 0x110   :  { %2885 = vmatpush1.bf16.msra.mxu0 %v7925_v51  ;;  %3191 = vmatpush1.bf16.msra.mxu1 %v7928_v52  ;;  %v7985_v51 = vld [vmem:[#allocation7 + $0x6c4] ss:$16 sps:$4 sm:$0xff]   ;;  %v7988_v52 = vld [vmem:[#allocation7 + $0x6cc] ss:$16 sps:$4 sm:$0xff]  }
 0x111   :  { %2886 = vmatprep.subr.bf16.mxu0 %v7934_v57  ;;  %3192 = vmatprep.subr.bf16.mxu1 %v7937_v58  ;;  %v7986_v57 = vld [vmem:[#allocation7 + $0x6c8] ss:$16 sps:$4 sm:$0xff]   ;;  %v7991_v58 = vld [vmem:[#allocation7 + $0x6e4] ss:$16 sps:$4 sm:$0xff]  }
 0x114   :  { %2887 = vmatpush1.bf16.msra.mxu0 %v7932_v59  ;;  %3193 = vmatpush1.bf16.msra.mxu1 %v7935_v61  ;;  %v7994_v59 = vld [vmem:[#allocation7 + $0x6ec] ss:$16 sps:$4 sm:$0xff]   ;;  %v7992_v61 = vld [vmem:[#allocation7 + $0x6e8] ss:$16 sps:$4 sm:$0xff]  }
 0x115   :  { %2888 = vmatprep.subr.bf16.mxu0 %v7941_v62  ;;  %3194 = vmatprep.subr.bf16.mxu1 %v7944_v56  ;;  %v7997_v62 = vld [vmem:[#allocation7 + $0x704] ss:$16 sps:$4 sm:$0xff]   ;;  %v7998_v56 = vld [vmem:[#allocation7 + $0x708] ss:$16 sps:$4 sm:$0xff]  }
 0x118   :  { %2889 = vmatpush1.bf16.msra.mxu0 %v7939_v1  ;;  %3195 = vmatpush1.bf16.msra.mxu1 %v7942_v3  ;;  %v8003_v1 = vld [vmem:[#allocation7 + $0x724] ss:$16 sps:$4 sm:$0xff]   ;;  %v8006_v3 = vld [vmem:[#allocation7 + $0x72c] ss:$16 sps:$4 sm:$0xff]  }
 0x119   :  { %2909 = vmatprep.subr.bf16.mxu0 %v7949_v5  ;;  %3215 = vmatprep.subr.bf16.mxu1 %v7952_v42  ;;  %v8001_v5 = vld [vmem:[#allocation7 + $0x720] ss:$16 sps:$4 sm:$0xff]   ;;  %v8012_v42 = vld [vmem:[#allocation7 + $0x74c] ss:$16 sps:$4 sm:$0xff]  }
 0x11b   :  { %2891 = vmatmul.mubr.bf16.vlgmr.msra.gmra.mrb[0].mxu0 %v342_v41  ;;  %3197 = vmatmul.mubr.bf16.vlgmr.msra.gmra.mrb[0].mxu1 %v342_v41  ;;  %v8013_v41 = vld [vmem:[#allocation7 + $0x760] ss:$16 sps:$4 sm:$0xff]  }
 0x11c   :  { %2910 = vmatpush1.bf16.msra.mxu0 %v7947_v10  ;;  %3216 = vmatpush1.bf16.msra.mxu1 %v7950_v16  ;;  %v8010_v10 = vld [vmem:[#allocation7 + $0x748] ss:$16 sps:$4 sm:$0xff]   ;;  %v8018_v16 = vld [vmem:[#allocation7 + $0x76c] ss:$16 sps:$4 sm:$0xff]  }
 0x11d   :  { %2911 = vmatprep.subr.bf16.mxu0 %v7955_v18  ;;  %3217 = vmatprep.subr.bf16.mxu1 %v7958_v19  ;;  %v8016_v18 = vld [vmem:[#allocation7 + $0x768] ss:$16 sps:$4 sm:$0xff]   ;;  %v8021_v19 = vld [vmem:[#allocation7 + $0x784] ss:$16 sps:$4 sm:$0xff]  }
 0x11e   :  { %2900 = vmatprep.mubr.bf16.mxu0 %v384_v20  ;;  %3206 = vmatprep.mubr.bf16.mxu1 %v384_v20  ;;  %v8024_v20 = vld [vmem:[#allocation7 + $0x78c] ss:$16 sps:$4 sm:$0xff]  }
 0x120   :  { %2912 = vmatpush1.bf16.msra.mxu0 %v7953_v22  ;;  %3218 = vmatpush1.bf16.msra.mxu1 %v7956_v26  ;;  %v8022_v22 = vld [vmem:[#allocation7 + $0x788] ss:$16 sps:$4 sm:$0xff]  }
 0x121   :  { %2913 = vmatprep.subr.bf16.mxu0 %v7961_v27  ;;  %3219 = vmatprep.subr.bf16.mxu1 %v7964_v28  ;;  %v8028_v26 = vld [vmem:[#allocation7 + $0x7a8] ss:$16 sps:$4 sm:$0xff]   ;;  %v8033_v27 = vld [vmem:[#allocation7 + $0x7c4] ss:$16 sps:$4 sm:$0xff]   ;;  %v9243_v28 = vcombine.low %v9224_v8, %v9224_v8  ;;  %v8037_v8 = vld [vmem:[#allocation7 + $0x7e0] ss:$16 sps:$4 sm:$0xff]  }
 0x123   :  { %2901 = vmatmul.mubr.bf16.gmra.mrb[4].mxu0 %v381_v30  ;;  %3207 = vmatmul.mubr.bf16.gmra.mrb[4].mxu1 %v381_v30  ;;  %v8036_v30 = vld [vmem:[#allocation7 + $0x7cc] ss:$16 sps:$4 sm:$0xff]  }
 0x124   :  { %2914 = vmatpush1.bf16.msra.mxu0 %v7959_v17  ;;  %3220 = vmatpush1.bf16.msra.mxu1 %v7962_v33  ;;  %v358_v17 = vshll.u32 %v9195_v31, 16  ;;  %v8034_v33 = vld [vmem:[#allocation7 + $0x7c8] ss:$16 sps:$4 sm:$0xff]  }
 0x125   :  { %2915 = vmatprep.subr.bf16.mxu0 %v7967_v34  ;;  %3221 = vmatprep.subr.bf16.mxu1 %v7970_v35  ;;  %v356_v34 = vshrl.u32 %v9195_v31, 16  ;;  %v8039_v35 = vld [vmem:[#allocation7 + $0x7e4] ss:$16 sps:$4 sm:$0xff]   ;;  %v8045_v31 = vld [vmem:[#allocation7 + $0x800] ss:$16 sps:$4 sm:$0xff]  }
 0x126   :  { %2941 = vmatprep.mubr.bf16.mxu0 %v378_v37  ;;  %3247 = vmatprep.mubr.bf16.mxu1 %v378_v37  ;;  %v363_v37 = vshll.u32 %v9243_v28, 16 }
 0x128   :  { %2916 = vmatpush1.bf16.msra.mxu0 %v7965_v36  ;;  %3222 = vmatpush1.bf16.msra.mxu1 %v7968_v38  ;;  %v360_v36 = vrot.slane %v358_v17, 1  ;;  %v8042_v38 = vld [vmem:[#allocation7 + $0x7ec] ss:$16 sps:$4 sm:$0xff]   ;;  %v8087_v17 = vld [vmem:[#allocation7 + $0x8e0] ss:$16 sps:$4 sm:$0xff]  }
 0x129   :  { %2917 = vmatprep.subr.bf16.mxu0 %v7973_v39  ;;  %3223 = vmatprep.subr.bf16.mxu1 %v7976_v40  ;;  %v8040_v39 = vld [vmem:[#allocation7 + $0x7e8] ss:$16 sps:$4 sm:$0xff]   ;;  %v8047_v40 = vld [vmem:[#allocation7 + $0x804] ss:$16 sps:$4 sm:$0xff]  }
 0x12c   :  { %2918 = vmatpush1.bf16.msra.mxu0 %v7971_v43  ;;  %3224 = vmatpush1.bf16.msra.mxu1 %v7974_v44  ;;  %v361_v43 = vor.u32 %v360_v36, %v356_v34  ;;  %v365_v44 = vrot.slane %v363_v37, 1  ;;  %v8093_v34 = vld [vmem:[#allocation7 + $0x900] ss:$16 sps:$4 sm:$0xff]   ;;  %v8101_v36 = vld [vmem:[#allocation7 + $0x924] ss:$16 sps:$4 sm:$0xff]  }
 0x12d   :  { %2919 = vmatprep.subr.bf16.mxu0 %v7979_v46  ;;  %3225 = vmatprep.subr.bf16.mxu1 %v7982_v47  ;;  %v8050_v46 = vld [vmem:[#allocation7 + $0x80c] ss:$16 sps:$4 sm:$0xff]   ;;  %v388_v47 = vshrl.u32 %v9229_v13, 16 }
 0x12e   :  { %v8104_v37 = vld [vmem:[#allocation7 + $0x92c] ss:$16 sps:$4 sm:$0xff]  }
 0x130   :  { %2920 = vmatpush1.bf16.msra.mxu0 %v7977_v49  ;;  %3226 = vmatpush1.bf16.msra.mxu1 %v7980_v50  ;;  %v8048_v49 = vld [vmem:[#allocation7 + $0x808] ss:$16 sps:$4 sm:$0xff]   ;;  %v8053_v50 = vld [vmem:[#allocation7 + $0x824] ss:$16 sps:$4 sm:$0xff]  }
 0x131   :  { %2921 = vmatprep.subr.bf16.mxu0 %v7985_v51  ;;  %3227 = vmatprep.subr.bf16.mxu1 %v7988_v52  ;;  %v366_v51 = vsel %vm330_vm0, %v361_v43, %v365_v44  ;;  %v9250_v52 = vld [vmem:[#allocation2] sm:$0xee] }
 0x132   :  { %v8105_v43 = vld [vmem:[#allocation7 + $0x940] ss:$16 sps:$4 sm:$0xff]  }
 0x134   :  { %2922 = vmatpush1.bf16.msra.mxu0 %v7983_v55  ;;  %3228 = vmatpush1.bf16.msra.mxu1 %v7986_v57  ;;  %v8056_v55 = vld [vmem:[#allocation7 + $0x82c] ss:$16 sps:$4 sm:$0xff]   ;;  %v390_v57 = vor.u32 %v388_v47, %v9237_v32  ;;  %v8060_v32 = vld [vmem:[#allocation7 + $0x848] ss:$16 sps:$4 sm:$0xff]   ;;  %v8111_v47 = vld [vmem:[#allocation7 + $0x960] ss:$16 sps:$4 sm:$0xff]  }
 0x135   :  { %2923 = vmatprep.subr.bf16.mxu0 %v7991_v58  ;;  %3229 = vmatprep.subr.bf16.mxu1 %v7994_v59  ;;  %v8051_v58 = vld [vmem:[#allocation7 + $0x820] ss:$16 sps:$4 sm:$0xff]   ;;  %v8054_v59 = vld [vmem:[#allocation7 + $0x828] ss:$16 sps:$4 sm:$0xff]  }
 0x138   :  { %2924 = vmatpush1.bf16.msra.mxu0 %v7989_v60  ;;  %3230 = vmatpush1.bf16.msra.mxu1 %v7992_v61  ;;  %v385_v60 = vshrl.u32 %v9243_v28, 16  ;;  %v9254_v61 = vld [vmem:[#allocation2 + $0x10] sm:$0xff] }
 0x139   :  { %2925 = vmatprep.subr.bf16.mxu0 %v7997_v62  ;;  %3231 = vmatprep.subr.bf16.mxu1 %v8000_v63  ;;  %v6700_v62 = vcombine.high %v9250_v52, %v9254_v61  ;;  %v8059_v63 = vld [vmem:[#allocation7 + $0x844] ss:$16 sps:$4 sm:$0xff]  }
 0x13c   :  { %2926 = vmatpush1.bf16.msra.mxu0 %v7995_v0  ;;  %3232 = vmatpush1.bf16.msra.mxu1 %v7998_v56  ;;  %v8062_v0 = vld [vmem:[#allocation7 + $0x84c] ss:$16 sps:$4 sm:$0xff]   ;;  %v8057_v56 = vld [vmem:[#allocation7 + $0x840] ss:$16 sps:$4 sm:$0xff]  }
 0x13d   :  { %2927 = vmatprep.subr.bf16.mxu0 %v8003_v1  ;;  %3233 = vmatprep.subr.bf16.mxu1 %v8006_v3  ;;  %v387_v1 = vor.u32 %v385_v60, %v365_v44  ;;  %v413_v3 = vrot.slane %v6700_v62, 1  ;;  %v8108_v44 = vld [vmem:[#allocation7 + $0x948] ss:$16 sps:$4 sm:$0xff]   ;;  %v8123_v60 = vld [vmem:[#allocation7 + $0x9a0] ss:$16 sps:$4 sm:$0xff]  }
 0x13e   :  { %v8126_v62 = vld [vmem:[#allocation7 + $0x9a8] ss:$16 sps:$4 sm:$0xff]  }
 0x140   :  { %2928 = vmatpush1.bf16.msra.mxu0 %v8001_v5  ;;  %3234 = vmatpush1.bf16.msra.mxu1 %v8004_v6  ;;  %v9259_v5 = vrot.slane %v9209_v53, 1  ;;  %v8065_v6 = vld [vmem:[#allocation7 + $0x864] ss:$16 sps:$4 sm:$0xff]  }
 0x141   :  { %2929 = vmatprep.subr.bf16.mxu0 %v8009_v7  ;;  %3235 = vmatprep.subr.bf16.mxu1 %v8012_v42  ;;  %v8068_v7 = vld [vmem:[#allocation7 + $0x86c] ss:$16 sps:$4 sm:$0xff]   ;;  %v8063_v42 = vld [vmem:[#allocation7 + $0x860] ss:$16 sps:$4 sm:$0xff]   ;;  %v8071_v53 = vld [vmem:[#allocation7 + $0x884] ss:$16 sps:$4 sm:$0xff]  }
 0x144   :  { %2930 = vmatpush1.bf16.msra.mxu0 %v8007_v9  ;;  %3236 = vmatpush1.bf16.msra.mxu1 %v8010_v10  ;;  %v415_v9 = vsel %vm409_vm1, %v413_v3, %v9259_v5  ;;  %v8066_v10 = vld [vmem:[#allocation7 + $0x868] ss:$16 sps:$4 sm:$0xff]   ;;  %v8140_v3 = vld [vmem:[#allocation7 + $0x9ec] ss:$16 sps:$4 sm:$0xff]  }
 0x145   :  { %2931 = vmatprep.subr.bf16.mxu0 %v8015_v14  ;;  %3237 = vmatprep.subr.bf16.mxu1 %v8018_v16  ;;  %v8074_v14 = vld [vmem:[#allocation7 + $0x88c] ss:$16 sps:$4 sm:$0xff]   ;;  %v8069_v16 = vld [vmem:[#allocation7 + $0x880] ss:$16 sps:$4 sm:$0xff]  }
 0x148   :  { %2932 = vmatpush1.bf16.msra.mxu0 %v8013_v41  ;;  %3238 = vmatpush1.bf16.msra.mxu1 %v8016_v18  ;;  %v8072_v41 = vld [vmem:[#allocation7 + $0x888] ss:$16 sps:$4 sm:$0xff]   ;;  %v8077_v18 = vld [vmem:[#allocation7 + $0x8a4] ss:$16 sps:$4 sm:$0xff]  }
 0x149   :  { %2933 = vmatprep.subr.bf16.mxu0 %v8021_v19  ;;  %3239 = vmatprep.subr.bf16.mxu1 %v8024_v20  ;;  %v8080_v19 = vld [vmem:[#allocation7 + $0x8ac] ss:$16 sps:$4 sm:$0xff]   ;;  %v8075_v20 = vld [vmem:[#allocation7 + $0x8a0] ss:$16 sps:$4 sm:$0xff]  }
 0x14c   :  { %2934 = vmatpush1.bf16.msra.mxu0 %v8019_v21  ;;  %3240 = vmatpush1.bf16.msra.mxu1 %v8022_v22  ;;  %v8078_v21 = vld [vmem:[#allocation7 + $0x8a8] ss:$16 sps:$4 sm:$0xff]   ;;  %v8083_v22 = vld [vmem:[#allocation7 + $0x8c4] ss:$16 sps:$4 sm:$0xff]  }
 0x14d   :  { %2935 = vmatprep.subr.bf16.mxu0 %v8027_v23  ;;  %3241 = vmatprep.subr.bf16.mxu1 %v8030_v24  ;;  %v8086_v23 = vld [vmem:[#allocation7 + $0x8cc] ss:$16 sps:$4 sm:$0xff]   ;;  %v8081_v24 = vld [vmem:[#allocation7 + $0x8c0] ss:$16 sps:$4 sm:$0xff]  }
 0x150   :  { %2936 = vmatpush1.bf16.msra.mxu0 %v8025_v25  ;;  %3242 = vmatpush1.bf16.msra.mxu1 %v8028_v26  ;;  %v8084_v25 = vld [vmem:[#allocation7 + $0x8c8] ss:$16 sps:$4 sm:$0xff]   ;;  %v8089_v26 = vld [vmem:[#allocation7 + $0x8e4] ss:$16 sps:$4 sm:$0xff]  }
 0x151   :  { %2937 = vmatprep.subr.bf16.mxu0 %v8033_v27  ;;  %3243 = vmatprep.subr.bf16.mxu1 %v8036_v30  ;;  %v8092_v27 = vld [vmem:[#allocation7 + $0x8ec] ss:$16 sps:$4 sm:$0xff]   ;;  %v8090_v30 = vld [vmem:[#allocation7 + $0x8e8] ss:$16 sps:$4 sm:$0xff]  }
 0x154   :  { %2938 = vmatpush1.bf16.msra.mxu0 %v8031_v11  ;;  %3244 = vmatpush1.bf16.msra.mxu1 %v8034_v33  ;;  %v8095_v11 = vld [vmem:[#allocation7 + $0x904] ss:$16 sps:$4 sm:$0xff]   ;;  %v8098_v33 = vld [vmem:[#allocation7 + $0x90c] ss:$16 sps:$4 sm:$0xff]  }
 0x155   :  { %2939 = vmatprep.subr.bf16.mxu0 %v8039_v35  ;;  %3245 = vmatprep.subr.bf16.mxu1 %v8042_v38  ;;  %v8096_v35 = vld [vmem:[#allocation7 + $0x908] ss:$16 sps:$4 sm:$0xff]   ;;  %v8099_v38 = vld [vmem:[#allocation7 + $0x920] ss:$16 sps:$4 sm:$0xff]  }
 0x158   :  { %2940 = vmatpush1.bf16.msra.mxu0 %v8037_v8  ;;  %3246 = vmatpush1.bf16.msra.mxu1 %v8040_v39  ;;  %v8102_v8 = vld [vmem:[#allocation7 + $0x928] ss:$16 sps:$4 sm:$0xff]   ;;  %v8107_v39 = vld [vmem:[#allocation7 + $0x944] ss:$16 sps:$4 sm:$0xff]  }
 0x159   :  { %2960 = vmatprep.subr.bf16.mxu0 %v8047_v40  ;;  %3266 = vmatprep.subr.bf16.mxu1 %v8050_v46  ;;  %v8110_v40 = vld [vmem:[#allocation7 + $0x94c] ss:$16 sps:$4 sm:$0xff]   ;;  %v8113_v46 = vld [vmem:[#allocation7 + $0x964] ss:$16 sps:$4 sm:$0xff]  }
 0x15b   :  { %2942 = vmatmul.mubr.bf16.vlgmr.msra.gmra.mrb[0].mxu0 %v366_v51  ;;  %3248 = vmatmul.mubr.bf16.vlgmr.msra.gmra.mrb[0].mxu1 %v366_v51  ;;  %v8122_v51 = vld [vmem:[#allocation7 + $0x98c] ss:$16 sps:$4 sm:$0xff]  }
 0x15c   :  { %2961 = vmatpush1.bf16.msra.mxu0 %v8045_v31  ;;  %3267 = vmatpush1.bf16.msra.mxu1 %v8048_v49  ;;  %v8116_v31 = vld [vmem:[#allocation7 + $0x96c] ss:$16 sps:$4 sm:$0xff]   ;;  %v8114_v49 = vld [vmem:[#allocation7 + $0x968] ss:$16 sps:$4 sm:$0xff]  }
 0x15d   :  { %2962 = vmatprep.subr.bf16.mxu0 %v8053_v50  ;;  %3268 = vmatprep.subr.bf16.mxu1 %v8056_v55  ;;  %v8119_v50 = vld [vmem:[#allocation7 + $0x984] ss:$16 sps:$4 sm:$0xff]   ;;  %v8117_v55 = vld [vmem:[#allocation7 + $0x980] ss:$16 sps:$4 sm:$0xff]  }
 0x15e   :  { %2951 = vmatprep.mubr.bf16.mxu0 %v390_v57  ;;  %3257 = vmatprep.mubr.bf16.mxu1 %v390_v57  ;;  %v8120_v57 = vld [vmem:[#allocation7 + $0x988] ss:$16 sps:$4 sm:$0xff]  }
 0x160   :  { %2963 = vmatpush1.bf16.msra.mxu0 %v8051_v58  ;;  %3269 = vmatpush1.bf16.msra.mxu1 %v8054_v59  ;;  %v8125_v58 = vld [vmem:[#allocation7 + $0x9a4] ss:$16 sps:$4 sm:$0xff]   ;;  %v8128_v59 = vld [vmem:[#allocation7 + $0x9ac] ss:$16 sps:$4 sm:$0xff]  }
 0x161   :  { %2964 = vmatprep.subr.bf16.mxu0 %v8059_v63  ;;  %3270 = vmatprep.subr.bf16.mxu1 %v8062_v0  ;;  %v8131_v63 = vld [vmem:[#allocation7 + $0x9c4] ss:$16 sps:$4 sm:$0xff]   ;;  %v8134_v0 = vld [vmem:[#allocation7 + $0x9cc] ss:$16 sps:$4 sm:$0xff]  }
 0x163   :  { %2952 = vmatmul.mubr.bf16.gmra.mrb[4].mxu0 %v387_v1  ;;  %3258 = vmatmul.mubr.bf16.gmra.mrb[4].mxu1 %v387_v1  ;;  %v8137_v1 = vld [vmem:[#allocation7 + $0x9e4] ss:$16 sps:$4 sm:$0xff]  }
 0x164   :  { %2965 = vmatpush1.bf16.msra.mxu0 %v8057_v56  ;;  %3271 = vmatpush1.bf16.msra.mxu1 %v8060_v32  ;;  %v8129_v56 = vld [vmem:[#allocation7 + $0x9c0] ss:$16 sps:$4 sm:$0xff]   ;;  %v8132_v32 = vld [vmem:[#allocation7 + $0x9c8] ss:$16 sps:$4 sm:$0xff]  }
 0x165   :  { %2966 = vmatprep.subr.bf16.mxu0 %v8065_v6  ;;  %3272 = vmatprep.subr.bf16.mxu1 %v8068_v7  ;;  %v6699_v6 = vcombine.low %v9250_v52, %v9254_v61  ;;  %v8135_v7 = vld [vmem:[#allocation7 + $0x9e0] ss:$16 sps:$4 sm:$0xff]  }
 0x166   :  { %2992 = vmatprep.mubr.bf16.mxu0 %v415_v9  ;;  %3298 = vmatprep.mubr.bf16.mxu1 %v415_v9  ;;  %v8145_v9 = vld [vmem:[#allocation7 + $0xa04] ss:$16 sps:$4 sm:$0xff]   ;;  %v8149_v61 = vld [vmem:[#allocation7 + $0xa20] ss:$16 sps:$4 sm:$0xff]  }
 0x168   :  { %2967 = vmatpush1.bf16.msra.mxu0 %v8063_v42  ;;  %3273 = vmatpush1.bf16.msra.mxu1 %v8066_v10  ;;  %v8138_v42 = vld [vmem:[#allocation7 + $0x9e8] ss:$16 sps:$4 sm:$0xff]   ;;  %v8148_v10 = vld [vmem:[#allocation7 + $0xa0c] ss:$16 sps:$4 sm:$0xff]  }
 0x169   :  { %2968 = vmatprep.subr.bf16.mxu0 %v8071_v53  ;;  %3274 = vmatprep.subr.bf16.mxu1 %v8074_v14  ;;  %v410_v53 = vrot.slane %v6699_v6, 1  ;;  %v411_v14 = vrot.slane %v9219_v54, 1  ;;  %v8160_v54 = vld [vmem:[#allocation7 + $0xa4c] ss:$16 sps:$4 sm:$0xff]   ;;  %v8211_v6 = vld [vmem:[#allocation7 + $0xb64] ss:$16 sps:$4 sm:$0xff]  }
 0x16b   :  { %v412_v52 = vsel %vm409_vm1, %v410_v53, %v411_v14  ;;  %v8220_v53 = vld [vmem:[#allocation7 + $0xb8c] ss:$16 sps:$4 sm:$0xff]  }
 0x16c   :  { %2969 = vmatpush1.bf16.msra.mxu0 %v8069_v16  ;;  %3275 = vmatpush1.bf16.msra.mxu1 %v8072_v41  ;;  %v8143_v16 = vld [vmem:[#allocation7 + $0xa00] ss:$16 sps:$4 sm:$0xff]   ;;  %v8146_v41 = vld [vmem:[#allocation7 + $0xa08] ss:$16 sps:$4 sm:$0xff]  }
 0x16d   :  { %2970 = vmatprep.subr.bf16.mxu0 %v8077_v18  ;;  %3276 = vmatprep.subr.bf16.mxu1 %v8080_v19  ;;  %v9266_v18 = vld [vmem:[#allocation2 + $0x8] sm:$0xee]  ;;  %v8151_v19 = vld [vmem:[#allocation7 + $0xa24] ss:$16 sps:$4 sm:$0xff]  }
 0x170   :  { %2971 = vmatpush1.bf16.msra.mxu0 %v8075_v20  ;;  %3277 = vmatpush1.bf16.msra.mxu1 %v8078_v21  ;;  %v8154_v20 = vld [vmem:[#allocation7 + $0xa2c] ss:$16 sps:$4 sm:$0xff]   ;;  %v8152_v21 = vld [vmem:[#allocation7 + $0xa28] ss:$16 sps:$4 sm:$0xff]  }
 0x171   :  { %2972 = vmatprep.subr.bf16.mxu0 %v8083_v22  ;;  %3278 = vmatprep.subr.bf16.mxu1 %v8086_v23  ;;  %v8157_v22 = vld [vmem:[#allocation7 + $0xa44] ss:$16 sps:$4 sm:$0xff]   ;;  %v9269_v23 = vld [vmem:[#allocation2 + $0x18] sm:$0xff] }
 0x174   :  { %2973 = vmatpush1.bf16.msra.mxu0 %v8081_v24  ;;  %3279 = vmatpush1.bf16.msra.mxu1 %v8084_v25  ;;  %v6702_v24 = vcombine.high %v9266_v18, %v9269_v23  ;;  %v8155_v25 = vld [vmem:[#allocation7 + $0xa40] ss:$16 sps:$4 sm:$0xff]  }
 0x175   :  { %2974 = vmatprep.subr.bf16.mxu0 %v8089_v26  ;;  %3280 = vmatprep.subr.bf16.mxu1 %v8092_v27  ;;  %v8158_v26 = vld [vmem:[#allocation7 + $0xa48] ss:$16 sps:$4 sm:$0xff]   ;;  %v8163_v27 = vld [vmem:[#allocation7 + $0xa64] ss:$16 sps:$4 sm:$0xff]  }
 0x178   :  { %2975 = vmatpush1.bf16.msra.mxu0 %v8087_v17  ;;  %3281 = vmatpush1.bf16.msra.mxu1 %v8090_v30  ;;  %v8166_v17 = vld [vmem:[#allocation7 + $0xa6c] ss:$16 sps:$4 sm:$0xff]   ;;  %v419_v30 = vrot.slane %v6702_v24, 1  ;;  %v8235_v24 = vld [vmem:[#allocation7 + $0xbe4] ss:$16 sps:$4 sm:$0xff]  }
 0x179   :  { %2976 = vmatprep.subr.bf16.mxu0 %v8095_v11  ;;  %3282 = vmatprep.subr.bf16.mxu1 %v8098_v33  ;;  %v9276_v11 = vrot.slane %v9229_v13, 1  ;;  %v8161_v33 = vld [vmem:[#allocation7 + $0xa60] ss:$16 sps:$4 sm:$0xff]   ;;  %v8170_v13 = vld [vmem:[#allocation7 + $0xa88] ss:$16 sps:$4 sm:$0xff]  }
 0x17c   :  { %2977 = vmatpush1.bf16.msra.mxu0 %v8093_v34  ;;  %3283 = vmatpush1.bf16.msra.mxu1 %v8096_v35  ;;  %v8164_v34 = vld [vmem:[#allocation7 + $0xa68] ss:$16 sps:$4 sm:$0xff]   ;;  %v8169_v35 = vld [vmem:[#allocation7 + $0xa84] ss:$16 sps:$4 sm:$0xff]  }
 0x17d   :  { %2978 = vmatprep.subr.bf16.mxu0 %v8101_v36  ;;  %3284 = vmatprep.subr.bf16.mxu1 %v8104_v37  ;;  %v8172_v36 = vld [vmem:[#allocation7 + $0xa8c] ss:$16 sps:$4 sm:$0xff]   ;;  %v421_v37 = vsel %vm409_vm1, %v419_v30, %v9276_v11  ;;  %v8243_v30 = vld [vmem:[#allocation10 + $0x4] ss:$16 sps:$4 sm:$0xff]  }
 0x180   :  { %2979 = vmatpush1.bf16.msra.mxu0 %v8099_v38  ;;  %3285 = vmatpush1.bf16.msra.mxu1 %v8102_v8  ;;  %v8175_v38 = vld [vmem:[#allocation7 + $0xaa4] ss:$16 sps:$4 sm:$0xff]   ;;  %v8178_v8 = vld [vmem:[#allocation7 + $0xaac] ss:$16 sps:$4 sm:$0xff]  }
 0x181   :  { %2980 = vmatprep.subr.bf16.mxu0 %v8107_v39  ;;  %3286 = vmatprep.subr.bf16.mxu1 %v8110_v40  ;;  %v8173_v39 = vld [vmem:[#allocation7 + $0xaa0] ss:$16 sps:$4 sm:$0xff]   ;;  %v8176_v40 = vld [vmem:[#allocation7 + $0xaa8] ss:$16 sps:$4 sm:$0xff]  }
 0x184   :  { %2981 = vmatpush1.bf16.msra.mxu0 %v8105_v43  ;;  %3287 = vmatpush1.bf16.msra.mxu1 %v8108_v44  ;;  %v8181_v43 = vld [vmem:[#allocation7 + $0xac4] ss:$16 sps:$4 sm:$0xff]   ;;  %v8184_v44 = vld [vmem:[#allocation7 + $0xacc] ss:$16 sps:$4 sm:$0xff]  }
 0x185   :  { %2982 = vmatprep.subr.bf16.mxu0 %v8113_v46  ;;  %3288 = vmatprep.subr.bf16.mxu1 %v8116_v31  ;;  %v8179_v46 = vld [vmem:[#allocation7 + $0xac0] ss:$16 sps:$4 sm:$0xff]   ;;  %v8182_v31 = vld [vmem:[#allocation7 + $0xac8] ss:$16 sps:$4 sm:$0xff]  }
 0x188   :  { %2983 = vmatpush1.bf16.msra.mxu0 %v8111_v47  ;;  %3289 = vmatpush1.bf16.msra.mxu1 %v8114_v49  ;;  %v8187_v47 = vld [vmem:[#allocation7 + $0xae4] ss:$16 sps:$4 sm:$0xff]   ;;  %v8190_v49 = vld [vmem:[#allocation7 + $0xaec] ss:$16 sps:$4 sm:$0xff]  }
 0x189   :  { %2984 = vmatprep.subr.bf16.mxu0 %v8119_v50  ;;  %3290 = vmatprep.subr.bf16.mxu1 %v8122_v51  ;;  %v8185_v50 = vld [vmem:[#allocation7 + $0xae0] ss:$16 sps:$4 sm:$0xff]   ;;  %v8188_v51 = vld [vmem:[#allocation7 + $0xae8] ss:$16 sps:$4 sm:$0xff]  }
 0x18c   :  { %2985 = vmatpush1.bf16.msra.mxu0 %v8117_v55  ;;  %3291 = vmatpush1.bf16.msra.mxu1 %v8120_v57  ;;  %v8193_v55 = vld [vmem:[#allocation7 + $0xb04] ss:$16 sps:$4 sm:$0xff]   ;;  %v8196_v57 = vld [vmem:[#allocation7 + $0xb0c] ss:$16 sps:$4 sm:$0xff]  }
 0x18d   :  { %2986 = vmatprep.subr.bf16.mxu0 %v8125_v58  ;;  %3292 = vmatprep.subr.bf16.mxu1 %v8128_v59  ;;  %v8191_v58 = vld [vmem:[#allocation7 + $0xb00] ss:$16 sps:$4 sm:$0xff]   ;;  %v8194_v59 = vld [vmem:[#allocation7 + $0xb08] ss:$16 sps:$4 sm:$0xff]  }
 0x190   :  { %2987 = vmatpush1.bf16.msra.mxu0 %v8123_v60  ;;  %3293 = vmatpush1.bf16.msra.mxu1 %v8126_v62  ;;  %v8199_v60 = vld [vmem:[#allocation7 + $0xb24] ss:$16 sps:$4 sm:$0xff]   ;;  %v8202_v62 = vld [vmem:[#allocation7 + $0xb2c] ss:$16 sps:$4 sm:$0xff]  }
 0x191   :  { %2988 = vmatprep.subr.bf16.mxu0 %v8131_v63  ;;  %3294 = vmatprep.subr.bf16.mxu1 %v8134_v0  ;;  %v8197_v63 = vld [vmem:[#allocation7 + $0xb20] ss:$16 sps:$4 sm:$0xff]   ;;  %v8200_v0 = vld [vmem:[#allocation7 + $0xb28] ss:$16 sps:$4 sm:$0xff]  }
 0x194   :  { %2989 = vmatpush1.bf16.msra.mxu0 %v8129_v56  ;;  %3295 = vmatpush1.bf16.msra.mxu1 %v8132_v32  ;;  %v8205_v56 = vld [vmem:[#allocation7 + $0xb44] ss:$16 sps:$4 sm:$0xff]   ;;  %v8208_v32 = vld [vmem:[#allocation7 + $0xb4c] ss:$16 sps:$4 sm:$0xff]  }
 0x195   :  { %2990 = vmatprep.subr.bf16.mxu0 %v8137_v1  ;;  %3296 = vmatprep.subr.bf16.mxu1 %v8140_v3  ;;  %v8203_v1 = vld [vmem:[#allocation7 + $0xb40] ss:$16 sps:$4 sm:$0xff]   ;;  %v8206_v3 = vld [vmem:[#allocation7 + $0xb48] ss:$16 sps:$4 sm:$0xff]  }
 0x198   :  { %2991 = vmatpush1.bf16.msra.mxu0 %v8135_v7  ;;  %3297 = vmatpush1.bf16.msra.mxu1 %v8138_v42  ;;  %v8214_v7 = vld [vmem:[#allocation7 + $0xb6c] ss:$16 sps:$4 sm:$0xff]   ;;  %v8209_v42 = vld [vmem:[#allocation7 + $0xb60] ss:$16 sps:$4 sm:$0xff]  }
 0x199   :  { %3011 = vmatprep.subr.bf16.mxu0 %v8145_v9  ;;  %3317 = vmatprep.subr.bf16.mxu1 %v8148_v10  ;;  %v8212_v9 = vld [vmem:[#allocation7 + $0xb68] ss:$16 sps:$4 sm:$0xff]   ;;  %v8217_v10 = vld [vmem:[#allocation7 + $0xb84] ss:$16 sps:$4 sm:$0xff]  }
 0x19b   :  { %2993 = vmatmul.mubr.bf16.vlgmr.msra.gmra.mrb[0].mxu0 %v412_v52  ;;  %3299 = vmatmul.mubr.bf16.vlgmr.msra.gmra.mrb[0].mxu1 %v412_v52  ;;  %v8224_v52 = vld [vmem:[#allocation7 + $0xba8] ss:$16 sps:$4 sm:$0xff]  }
 0x19c   :  { %3012 = vmatpush1.bf16.msra.mxu0 %v8143_v16  ;;  %3318 = vmatpush1.bf16.msra.mxu1 %v8146_v41  ;;  %v8218_v16 = vld [vmem:[#allocation7 + $0xb88] ss:$16 sps:$4 sm:$0xff]   ;;  %v8223_v41 = vld [vmem:[#allocation7 + $0xba4] ss:$16 sps:$4 sm:$0xff]  }
 0x19d   :  { %3013 = vmatprep.subr.bf16.mxu0 %v8151_v19  ;;  %3319 = vmatprep.subr.bf16.mxu1 %v8154_v20  ;;  %v8226_v19 = vld [vmem:[#allocation7 + $0xbac] ss:$16 sps:$4 sm:$0xff]   ;;  %v8221_v20 = vld [vmem:[#allocation7 + $0xba0] ss:$16 sps:$4 sm:$0xff]  }
 0x19e   :  { %3002 = vmatprep.mubr.bf16.mxu0 %v9259_v5  ;;  %3308 = vmatprep.mubr.bf16.mxu1 %v9259_v5  ;;  %v8167_v5 = vld [vmem:[#allocation7 + $0xa80] ss:$16 sps:$4 sm:$0xff]  }
 0x1a0   :  { %3014 = vmatpush1.bf16.msra.mxu0 %v8149_v61  ;;  %3320 = vmatpush1.bf16.msra.mxu1 %v8152_v21  ;;  %v8229_v61 = vld [vmem:[#allocation7 + $0xbc4] ss:$16 sps:$4 sm:$0xff]   ;;  %v8232_v21 = vld [vmem:[#allocation7 + $0xbcc] ss:$16 sps:$4 sm:$0xff]  }
 0x1a1   :  { %3015 = vmatprep.subr.bf16.mxu0 %v8157_v22  ;;  %3321 = vmatprep.subr.bf16.mxu1 %v8160_v54  ;;  %v8227_v22 = vld [vmem:[#allocation7 + $0xbc0] ss:$16 sps:$4 sm:$0xff]   ;;  %v8230_v54 = vld [vmem:[#allocation7 + $0xbc8] ss:$16 sps:$4 sm:$0xff]  }
 0x1a3   :  { %3003 = vmatmul.mubr.bf16.gmra.mrb[4].mxu0 %v411_v14  ;;  %3309 = vmatmul.mubr.bf16.gmra.mrb[4].mxu1 %v411_v14  ;;  %v8215_v14 = vld [vmem:[#allocation7 + $0xb80] ss:$16 sps:$4 sm:$0xff]  }
 0x1a4   :  { %3016 = vmatpush1.bf16.msra.mxu0 %v8155_v25  ;;  %3322 = vmatpush1.bf16.msra.mxu1 %v8158_v26  ;;  %v8238_v25 = vld [vmem:[#allocation7 + $0xbec] ss:$16 sps:$4 sm:$0xff]   ;;  %v6701_v26 = vcombine.low %v9266_v18, %v9269_v23  ;;  %v8249_v18 = vld [vmem:[#allocation10 + $0x24] ss:$16 sps:$4 sm:$0xff]   ;;  %v8252_v23 = vld [vmem:[#allocation10 + $0x2c] ss:$16 sps:$4 sm:$0xff]  }
 0x1a5   :  { %3017 = vmatprep.subr.bf16.mxu0 %v8163_v27  ;;  %3323 = vmatprep.subr.bf16.mxu1 %v8166_v17  ;;  %v8233_v27 = vld [vmem:[#allocation7 + $0xbe0] ss:$16 sps:$4 sm:$0xff]   ;;  %v8236_v17 = vld [vmem:[#allocation7 + $0xbe8] ss:$16 sps:$4 sm:$0xff]  }
 0x1a6   :  { %3043 = vmatprep.mubr.bf16.mxu0 %v421_v37  ;;  %3349 = vmatprep.mubr.bf16.mxu1 %v421_v37  ;;  %v8244_v37 = vld [vmem:[#allocation10 + $0x8] ss:$16 sps:$4 sm:$0xff]  }
 0x1a8   :  { %3018 = vmatpush1.bf16.msra.mxu0 %v8161_v33  ;;  %3324 = vmatpush1.bf16.msra.mxu1 %v8164_v34  ;;  %v8246_v33 = vld [vmem:[#allocation10 + $0xc] ss:$16 sps:$4 sm:$0xff]   ;;  %v416_v34 = vrot.slane %v6701_v26, 1  ;;  %v8304_v26 = vld [vmem:[#allocation10 + $0x148] ss:$16 sps:$4 sm:$0xff]  }
 0x1a9   :  { %3019 = vmatprep.subr.bf16.mxu0 %v8169_v35  ;;  %3325 = vmatprep.subr.bf16.mxu1 %v8172_v36  ;;  %v417_v35 = vrot.slane %v9243_v28, 1  ;;  %v8241_v36 = vld [vmem:[#allocation10] ss:$16 sps:$4 sm:$0xff]   ;;  %v8255_v28 = vld [vmem:[#allocation10 + $0x44] ss:$16 sps:$4 sm:$0xff]  }
 0x1ac   :  { %3020 = vmatpush1.bf16.msra.mxu0 %v8167_v5  ;;  %3326 = vmatpush1.bf16.msra.mxu1 %v8170_v13  ;;  %v418_v5 = vsel %vm409_vm1, %v416_v34, %v417_v35  ;;  %v8247_v13 = vld [vmem:[#allocation10 + $0x20] ss:$16 sps:$4 sm:$0xff]   ;;  %v267_v34 = vld [vmem:[#allocation3 + $0x18] sm:$0x22] }
 0x1ad   :  { %3021 = vmatprep.subr.bf16.mxu0 %v8175_v38  ;;  %3327 = vmatprep.subr.bf16.mxu1 %v8178_v8  ;;  %v8250_v38 = vld [vmem:[#allocation10 + $0x28] ss:$16 sps:$4 sm:$0xff]   ;;  %v8258_v8 = vld [vmem:[#allocation10 + $0x4c] ss:$16 sps:$4 sm:$0xff]  }
 0x1b0   :  { %3022 = vmatpush1.bf16.msra.mxu0 %v8173_v39  ;;  %3328 = vmatpush1.bf16.msra.mxu1 %v8176_v40  ;;  %v8253_v39 = vld [vmem:[#allocation10 + $0x40] ss:$16 sps:$4 sm:$0xff]   ;;  %v8256_v40 = vld [vmem:[#allocation10 + $0x48] ss:$16 sps:$4 sm:$0xff]  }
 0x1b1   :  { %3023 = vmatprep.subr.bf16.mxu0 %v8181_v43  ;;  %3329 = vmatprep.subr.bf16.mxu1 %v8184_v44  ;;  %v8261_v43 = vld [vmem:[#allocation10 + $0x64] ss:$16 sps:$4 sm:$0xff]   ;;  %v8264_v44 = vld [vmem:[#allocation10 + $0x6c] ss:$16 sps:$4 sm:$0xff]  }
 0x1b4   :  { %3024 = vmatpush1.bf16.msra.mxu0 %v8179_v46  ;;  %3330 = vmatpush1.bf16.msra.mxu1 %v8182_v31  ;;  %v8259_v46 = vld [vmem:[#allocation10 + $0x60] ss:$16 sps:$4 sm:$0xff]   ;;  %v8262_v31 = vld [vmem:[#allocation10 + $0x68] ss:$16 sps:$4 sm:$0xff]  }
 0x1b5   :  { %3025 = vmatprep.subr.bf16.mxu0 %v8187_v47  ;;  %3331 = vmatprep.subr.bf16.mxu1 %v8190_v49  ;;  %v8267_v47 = vld [vmem:[#allocation10 + $0x84] ss:$16 sps:$4 sm:$0xff]   ;;  %v8265_v49 = vld [vmem:[#allocation10 + $0x80] ss:$16 sps:$4 sm:$0xff]  }
 0x1b8   :  { %3026 = vmatpush1.bf16.msra.mxu0 %v8185_v50  ;;  %3332 = vmatpush1.bf16.msra.mxu1 %v8188_v51  ;;  %v8268_v50 = vld [vmem:[#allocation10 + $0x88] ss:$16 sps:$4 sm:$0xff]   ;;  %v8273_v51 = vld [vmem:[#allocation10 + $0xa4] ss:$16 sps:$4 sm:$0xff]  }
 0x1b9   :  { %3027 = vmatprep.subr.bf16.mxu0 %v8193_v55  ;;  %3333 = vmatprep.subr.bf16.mxu1 %v8196_v57  ;;  %v8276_v55 = vld [vmem:[#allocation10 + $0xac] ss:$16 sps:$4 sm:$0xff]   ;;  %v8271_v57 = vld [vmem:[#allocation10 + $0xa0] ss:$16 sps:$4 sm:$0xff]  }
 0x1bc   :  { %3028 = vmatpush1.bf16.msra.mxu0 %v8191_v58  ;;  %3334 = vmatpush1.bf16.msra.mxu1 %v8194_v59  ;;  %v8274_v58 = vld [vmem:[#allocation10 + $0xa8] ss:$16 sps:$4 sm:$0xff]   ;;  %v8279_v59 = vld [vmem:[#allocation10 + $0xc4] ss:$16 sps:$4 sm:$0xff]  }
 0x1bd   :  { %3029 = vmatprep.subr.bf16.mxu0 %v8199_v60  ;;  %3335 = vmatprep.subr.bf16.mxu1 %v8202_v62  ;;  %v8282_v60 = vld [vmem:[#allocation10 + $0xcc] ss:$16 sps:$4 sm:$0xff]   ;;  %v8277_v62 = vld [vmem:[#allocation10 + $0xc0] ss:$16 sps:$4 sm:$0xff]  }
 0x1c0   :  { %3030 = vmatpush1.bf16.msra.mxu0 %v8197_v63  ;;  %3336 = vmatpush1.bf16.msra.mxu1 %v8200_v0  ;;  %v8280_v63 = vld [vmem:[#allocation10 + $0xc8] ss:$16 sps:$4 sm:$0xff]   ;;  %v8285_v0 = vld [vmem:[#allocation10 + $0xe4] ss:$16 sps:$4 sm:$0xff]  }
 0x1c1   :  { %3031 = vmatprep.subr.bf16.mxu0 %v8205_v56  ;;  %3337 = vmatprep.subr.bf16.mxu1 %v8208_v32  ;;  %v8288_v56 = vld [vmem:[#allocation10 + $0xec] ss:$16 sps:$4 sm:$0xff]   ;;  %v8283_v32 = vld [vmem:[#allocation10 + $0xe0] ss:$16 sps:$4 sm:$0xff]  }
 0x1c4   :  { %3032 = vmatpush1.bf16.msra.mxu0 %v8203_v1  ;;  %3338 = vmatpush1.bf16.msra.mxu1 %v8206_v3  ;;  %v8286_v1 = vld [vmem:[#allocation10 + $0xe8] ss:$16 sps:$4 sm:$0xff]   ;;  %v8291_v3 = vld [vmem:[#allocation10 + $0x104] ss:$16 sps:$4 sm:$0xff]  }
 0x1c5   :  { %3033 = vmatprep.subr.bf16.mxu0 %v8211_v6  ;;  %3339 = vmatprep.subr.bf16.mxu1 %v8214_v7  ;;  %v8294_v6 = vld [vmem:[#allocation10 + $0x10c] ss:$16 sps:$4 sm:$0xff]   ;;  %v8289_v7 = vld [vmem:[#allocation10 + $0x100] ss:$16 sps:$4 sm:$0xff]  }
 0x1c8   :  { %3034 = vmatpush1.bf16.msra.mxu0 %v8209_v42  ;;  %3340 = vmatpush1.bf16.msra.mxu1 %v8212_v9  ;;  %v8292_v42 = vld [vmem:[#allocation10 + $0x108] ss:$16 sps:$4 sm:$0xff]   ;;  %v8297_v9 = vld [vmem:[#allocation10 + $0x124] ss:$16 sps:$4 sm:$0xff]  }
 0x1c9   :  { %3035 = vmatprep.subr.bf16.mxu0 %v8217_v10  ;;  %3341 = vmatprep.subr.bf16.mxu1 %v8220_v53  ;;  %v8300_v10 = vld [vmem:[#allocation10 + $0x12c] ss:$16 sps:$4 sm:$0xff]   ;;  %v8295_v53 = vld [vmem:[#allocation10 + $0x120] ss:$16 sps:$4 sm:$0xff]  }
 0x1cc   :  { %3036 = vmatpush1.bf16.msra.mxu0 %v8215_v14  ;;  %3342 = vmatpush1.bf16.msra.mxu1 %v8218_v16  ;;  %v8298_v14 = vld [vmem:[#allocation10 + $0x128] ss:$16 sps:$4 sm:$0xff]   ;;  %v8303_v16 = vld [vmem:[#allocation10 + $0x144] ss:$16 sps:$4 sm:$0xff]  }
 0x1cd   :  { %3037 = vmatprep.subr.bf16.mxu0 %v8223_v41  ;;  %3343 = vmatprep.subr.bf16.mxu1 %v8226_v19  ;;  %v8306_v41 = vld [vmem:[#allocation10 + $0x14c] ss:$16 sps:$4 sm:$0xff]  }
 0x1ce   :  { %v165_v19 = vld [vmem:[#allocation3] sm:$0x11] }
 0x1d0   :  { %3038 = vmatpush1.bf16.msra.mxu0 %v8221_v20  ;;  %3344 = vmatpush1.bf16.msra.mxu1 %v8224_v52  ;;  %v171_v20 = vld [vmem:[#allocation3 + $0x10] sm:$0x11] }
 0x1d1   :  { %3039 = vmatprep.subr.bf16.mxu0 %v8229_v61  ;;  %3345 = vmatprep.subr.bf16.mxu1 %v8232_v21  ;;  %v8301_v52 = vld [vmem:[#allocation10 + $0x140] ss:$16 sps:$4 sm:$0xff]   ;;  %v166_v61 = vsel %vm9095_vm10, 0, %v165_v19  ;;  %v172_v21 = vsel %vm9101_vm11, 0, %v171_v20 }
 0x1d2   :  { %167 = vst [vmem:[#allocation3] sm:$0x11] %v166_v61  ;;  %173 = vst [vmem:[#allocation3 + $0x10] sm:$0x11] %v172_v21 }
 0x1d4   :  { %3040 = vmatpush1.bf16.msra.mxu0 %v8227_v22  ;;  %3346 = vmatpush1.bf16.msra.mxu1 %v8230_v54  ;;  %v168_v22 = vld [vmem:[#allocation3 + $0x8] sm:$0x11]  ;;  %v174_v54 = vld [vmem:[#allocation3 + $0x18] sm:$0x11] }
 0x1d5   :  { %3041 = vmatprep.subr.bf16.mxu0 %v8235_v24  ;;  %3347 = vmatprep.subr.bf16.mxu1 %v8238_v25  ;;  %v169_v24 = vsel %vm9095_vm10, 0, %v168_v22  ;;  %v175_v25 = vsel %vm9101_vm11, 0, %v174_v54  ;;  %vm9544_vm11 = vsmask.f32 256 }
 0x1d6   :  { %170 = vst [vmem:[#allocation3 + $0x8] sm:$0x11] %v169_v24  ;;  %176 = vst [vmem:[#allocation3 + $0x18] sm:$0x11] %v175_v25 }
 0x1d8   :  { %3042 = vmatpush1.bf16.msra.mxu0 %v8233_v27  ;;  %3348 = vmatpush1.bf16.msra.mxu1 %v8236_v17  ;;  %v264_v27 = vld [vmem:[#allocation3 + $0x10] sm:$0x22]  ;;  %v8309_v17 = vld [vmem:[#allocation10 + $0x164] ss:$16 sps:$4 sm:$0xff]  }
 0x1d9   :  { %5974 = vmatprep.subr.bf16.mxu0 %v8243_v30  ;;  %6280 = vmatprep.subr.bf16.mxu1 %v8246_v33  ;;  %v8312_v30 = vld [vmem:[#allocation10 + $0x16c] ss:$16 sps:$4 sm:$0xff]   ;;  %v265_v33 = vsel %vm9121_vm9, 0, %v264_v27 }
 0x1da   :  { %266 = vst [vmem:[#allocation3 + $0x10] sm:$0x22] %v265_v33 }
 0x1db   :  { %3044 = vmatmul.mubr.bf16.vlgmr.msra.gmra.mrb[0].mxu0 %v418_v5  ;;  %3350 = vmatmul.mubr.bf16.vlgmr.msra.gmra.mrb[0].mxu1 %v418_v5  ;;  %v8315_v5 = vld [vmem:[#allocation10 + $0x184] ss:$16 sps:$4 sm:$0xff]  }
 0x1dc   :  { %3053 = vmatprep.mubr.bf16.mxu0 %v9276_v11  ;;  %3359 = vmatprep.mubr.bf16.mxu1 %v9276_v11  ;;  %v8270_v11 = vld [vmem:[#allocation10 + $0x8c] ss:$16 sps:$4 sm:$0xff]  }
 0x1dd   :  { %5975 = vmatpush1.bf16.msra.mxu0 %v8241_v36  ;;  %6281 = vmatpush1.bf16.msra.mxu1 %v8244_v37  ;;  %v268_v36 = vsel %vm9121_vm9, 0, %v267_v34  ;;  %v8313_v37 = vld [vmem:[#allocation10 + $0x180] ss:$16 sps:$4 sm:$0xff]  }
 0x1de   :  { %5976 = vmatprep.subr.bf16.mxu0 %v8249_v18  ;;  %6282 = vmatprep.subr.bf16.mxu1 %v8252_v23  ;;  %269 = vst [vmem:[#allocation3 + $0x18] sm:$0x22] %v268_v36  ;;  %v8316_v18 = vld [vmem:[#allocation10 + $0x188] ss:$16 sps:$4 sm:$0xff]   ;;  %v270_v23 = vld [vmem:[#allocation3 + $0x20] sm:$0x22] }
 0x1e1   :  { %5977 = vmatpush1.bf16.msra.mxu0 %v8247_v13  ;;  %6283 = vmatpush1.bf16.msra.mxu1 %v8250_v38  ;;  %v8318_v13 = vld [vmem:[#allocation10 + $0x18c] ss:$16 sps:$4 sm:$0xff]   ;;  %v271_v38 = vsel %vm9156_vm4, 0, %v270_v23 }
 0x1e2   :  { %5978 = vmatprep.subr.bf16.mxu0 %v8255_v28  ;;  %6284 = vmatprep.subr.bf16.mxu1 %v8258_v8  ;;  %272 = vst [vmem:[#allocation3 + $0x20] sm:$0x22] %v271_v38  ;;  %v273_v28 = vld [vmem:[#allocation3 + $0x28] sm:$0x22]  ;;  %v8324_v8 = vld [vmem:[#allocation10 + $0x1ac] ss:$16 sps:$4 sm:$0xff]  }
 0x1e3   :  { %3054 = vmatmul.mubr.bf16.gmra.mrb[4].mxu0 %v417_v35  ;;  %3360 = vmatmul.mubr.bf16.gmra.mrb[4].mxu1 %v417_v35  ;;  %v8307_v35 = vld [vmem:[#allocation10 + $0x160] ss:$16 sps:$4 sm:$0xff]  }
 0x1e4   :  { %v3414_v38 = vld [vmem:[#allocation3] sm:$0xff] }
 0x1e5   :  { %5979 = vmatpush1.bf16.msra.mxu0 %v8253_v39  ;;  %6285 = vmatpush1.bf16.msra.mxu1 %v8256_v40  ;;  %v274_v39 = vsel %vm9156_vm4, 0, %v273_v28  ;;  %v8319_v40 = vld [vmem:[#allocation10 + $0x1a0] ss:$16 sps:$4 sm:$0xff]  }
 0x1e6   :  { %5980 = vmatprep.subr.bf16.mxu0 %v8261_v43  ;;  %6286 = vmatprep.subr.bf16.mxu1 %v8264_v44  ;;  %275 = vst [vmem:[#allocation3 + $0x28] sm:$0x22] %v274_v39  ;;  %v8322_v43 = vld [vmem:[#allocation10 + $0x1a8] ss:$16 sps:$4 sm:$0xff]   ;;  %v8327_v44 = vld [vmem:[#allocation10 + $0x1c4] ss:$16 sps:$4 sm:$0xff]  }
 0x1e7   :  { %v3420_v28 = vld [vmem:[#allocation3 + $0x10] sm:$0x11] }
 0x1e9   :  { %5981 = vmatpush1.bf16.msra.mxu0 %v8259_v46  ;;  %6287 = vmatpush1.bf16.msra.mxu1 %v8262_v31  ;;  %v8330_v46 = vld [vmem:[#allocation10 + $0x1cc] ss:$16 sps:$4 sm:$0xff]   ;;  %v8325_v31 = vld [vmem:[#allocation10 + $0x1c0] ss:$16 sps:$4 sm:$0xff]  }
 0x1ea   :  { %5982 = vmatprep.subr.bf16.mxu0 %v8267_v47  ;;  %6288 = vmatprep.subr.bf16.mxu1 %v8270_v11  ;;  %v8328_v47 = vld [vmem:[#allocation10 + $0x1c8] ss:$16 sps:$4 sm:$0xff]   ;;  %v8333_v11 = vld [vmem:[#allocation10 + $0x1e4] ss:$16 sps:$4 sm:$0xff]  }
 0x1ed   :  { %5983 = vmatpush1.bf16.msra.mxu0 %v8265_v49  ;;  %6289 = vmatpush1.bf16.msra.mxu1 %v8268_v50  ;;  %v8336_v49 = vld [vmem:[#allocation10 + $0x1ec] ss:$16 sps:$4 sm:$0xff]   ;;  %v8334_v50 = vld [vmem:[#allocation10 + $0x1e8] ss:$16 sps:$4 sm:$0xff]  }
 0x1ee   :  { %5984 = vmatprep.subr.bf16.mxu0 %v8273_v51  ;;  %6290 = vmatprep.subr.bf16.mxu1 %v8276_v55  ;;  %v8339_v51 = vld [vmem:[#allocation10 + $0x204] ss:$16 sps:$4 sm:$0xff]   ;;  %v8342_v55 = vld [vmem:[#allocation10 + $0x20c] ss:$16 sps:$4 sm:$0xff]  }
 0x1ef   :  { %v3493_v29 = vld [vmem:[#allocation3 + $0x28] sm:$0x33] }
 0x1f1   :  { %5985 = vmatpush1.bf16.msra.mxu0 %v8271_v57  ;;  %6291 = vmatpush1.bf16.msra.mxu1 %v8274_v58  ;;  %v816_v57 = vlaneseq }
 0x1f2   :  { %5986 = vmatprep.subr.bf16.mxu0 %v8279_v59  ;;  %6292 = vmatprep.subr.bf16.mxu1 %v8282_v60 }
 0x1f3   :  { %v9302_v58 = vshrl.u32 %v816_v57, 7 }
 0x1f5   :  { %5987 = vmatpush1.bf16.msra.mxu0 %v8277_v62  ;;  %6293 = vmatpush1.bf16.msra.mxu1 %v8280_v63  ;;  %v818_v59 = vsub.s32 0, %v9302_v58  ;;  %v826_v60 = vsub.s32 2, %v9302_v58  ;;  %v814_v62 = vld [vmem:[#allocation9] sm:$0xf]  ;;  %v822_v63 = vsub.s32 1, %v9302_v58 }
 0x1f6   :  { %5988 = vmatprep.subr.bf16.mxu0 %v8285_v0  ;;  %6294 = vmatprep.subr.bf16.mxu1 %v8288_v56  ;;  %v830_v0 = vsub.s32 3, %v9302_v58 }
 0x1f7   :  { %v819_v56 = vrot.slane %v814_v62, %v818_v59 }
 0x1f9   :  { %5989 = vmatpush1.bf16.msra.mxu0 %v8283_v32  ;;  %6295 = vmatpush1.bf16.msra.mxu1 %v8286_v1  ;;  %v827_v32 = vrot.slane %v814_v62, %v826_v60  ;;  %v823_v1 = vrot.slane %v814_v62, %v822_v63 }
 0x1fa   :  { %5990 = vmatprep.subr.bf16.mxu0 %v8291_v3  ;;  %6296 = vmatprep.subr.bf16.mxu1 %v8294_v6  ;;  %v831_v3 = vrot.slane %v814_v62, %v830_v0 }
 0x1fd   :  { %5991 = vmatpush1.bf16.msra.mxu0 %v8289_v7  ;;  %6297 = vmatpush1.bf16.msra.mxu1 %v8292_v42 }
 0x1fe   :  { %5992 = vmatprep.subr.bf16.mxu0 %v8297_v9  ;;  %6298 = vmatprep.subr.bf16.mxu1 %v8300_v10 }
 0x201   :  { %5993 = vmatpush1.bf16.msra.mxu0 %v8295_v53  ;;  %6299 = vmatpush1.bf16.msra.mxu1 %v8298_v14 }
 0x202   :  { %5994 = vmatprep.subr.bf16.mxu0 %v8303_v16  ;;  %6300 = vmatprep.subr.bf16.mxu1 %v8306_v41 }
 0x205   :  { %5995 = vmatpush1.bf16.msra.mxu0 %v8301_v52  ;;  %6301 = vmatpush1.bf16.msra.mxu1 %v8304_v26 }
 0x206   :  { %5996 = vmatprep.subr.bf16.mxu0 %v8309_v17  ;;  %6302 = vmatprep.subr.bf16.mxu1 %v8312_v30 }
 0x209   :  { %5997 = vmatpush1.bf16.msra.mxu0 %v8307_v35  ;;  %6303 = vmatpush1.bf16.msra.mxu1 %v8310_v48 }
 0x20a   :  { %5998 = vmatprep.subr.bf16.mxu0 %v8315_v5  ;;  %6304 = vmatprep.subr.bf16.mxu1 %v8318_v13 }
 0x20d   :  { %5999 = vmatpush1.bf16.msra.mxu0 %v8313_v37  ;;  %6305 = vmatpush1.bf16.msra.mxu1 %v8316_v18 }
 0x20e   :  { %6000 = vmatprep.subr.bf16.mxu0 %v8321_v12  ;;  %6306 = vmatprep.subr.bf16.mxu1 %v8324_v8  ;;  %v3417_v12 = vld [vmem:[#allocation3 + $0x8] sm:$0xff] }
 0x211   :  { %6001 = vmatpush1.bf16.msra.mxu0 %v8319_v40  ;;  %6307 = vmatpush1.bf16.msra.mxu1 %v8322_v43 }
 0x212   :  { %6002 = vmatprep.subr.bf16.mxu0 %v8327_v44  ;;  %6308 = vmatprep.subr.bf16.mxu1 %v8330_v46 }
 0x215   :  { %6003 = vmatpush1.bf16.msra.mxu0 %v8325_v31  ;;  %6309 = vmatpush1.bf16.msra.mxu1 %v8328_v47 }
 0x216   :  { %6004 = vmatprep.subr.bf16.mxu0 %v8333_v11  ;;  %6310 = vmatprep.subr.bf16.mxu1 %v8336_v49  ;;  %v3423_v11 = vld [vmem:[#allocation3 + $0x18] sm:$0x11] }
 0x219   :  { %6005 = vmatpush1.bf16.msra.mxu0 %v8331_v2  ;;  %6311 = vmatpush1.bf16.msra.mxu1 %v8334_v50 }
 0x21a   :  { %6025 = vmatprep.subr.bf16.mxu0 %v8339_v51  ;;  %6331 = vmatprep.subr.bf16.mxu1 %v8342_v55 }
 0x2ae   :  { %v3045_v6 = vpop.f32.mrb[0].mxu0  ;;  %v3351_v7 = vpop.f32.mrb[0].mxu1 }
 0x2af   :  { %v7503_v42 = vadd.f32 %v3045_v6, %v819_v56  ;;  %v7509_v9 = vadd.f32 %v3351_v7, %v827_v32  ;;  %v3047_v10 = vpop.f32.mrb[1].mxu0  ;;  %v3353_v53 = vpop.f32.mrb[1].mxu1 }
 0x2b0   :  { %v7504_v14 = vadd.f32 %v3047_v10, %v823_v1  ;;  %v7510_v16 = vadd.f32 %v3353_v53, %v831_v3  ;;  %v3049_v41 = vpop.f32.mrb[2].mxu0  ;;  %v3355_v19 = vpop.f32.mrb[2].mxu1 }
 0x2b1   :  { %v3368_v20 = vmax.f32 %v7503_v42, 0.0  ;;  %v3370_v52 = vmax.f32 %v7509_v9, 0.0  ;;  %v7505_v61 = vadd.f32 %v3049_v41, %v819_v56  ;;  %v7511_v21 = vadd.f32 %v3355_v19, %v827_v32  ;;  %v3051_v22 = vpop.f32.mrb[3].mxu0  ;;  %v3357_v54 = vpop.f32.mrb[3].mxu1 }
 0x2b2   :  { %v3369_v24 = vmax.f32 %v7504_v14, 0.0  ;;  %v3371_v25 = vmax.f32 %v7510_v16, 0.0  ;;  %v7506_v26 = vadd.f32 %v3051_v22, %v823_v1  ;;  %v7512_v27 = vadd.f32 %v3357_v54, %v831_v3 }
 0x2b3   :  { %v3372_v17 = vmax.f32 %v7505_v61, 0.0  ;;  %v3374_v30 = vmax.f32 %v7511_v21, 0.0  ;;  %v3487_v61 = vld [vmem:[#allocation3 + $0x18] sm:$0xee] }
 0x2b4   :  { %v7497_v33 = vpack.c.bf16 %v3369_v24, %v3368_v20  ;;  %v7498_v34 = vpack.c.bf16 %v3371_v25, %v3370_v52  ;;  %v3373_v35 = vmax.f32 %v7506_v26, 0.0  ;;  %v3375_v36 = vmax.f32 %v7512_v27, 0.0  ;;  %v3484_v52 = vld [vmem:[#allocation3 + $0x10] sm:$0xee] }
 0x2b6   :  { %v3395_v48 = vshrl.u32 %v7497_v33, 16  ;;  %v3398_v37 = vshll.u32 %v7497_v33, 16  ;;  %v3402_v5 = vshrl.u32 %v7498_v34, 16  ;;  %v3405_v18 = vshll.u32 %v7498_v34, 16  ;;  %v3055_v23 = vpop.f32.mrb[4].mxu0  ;;  %v3361_v13 = vpop.f32.mrb[4].mxu1 }
 0x2b7   :  { %v7499_v8 = vpack.c.bf16 %v3373_v35, %v3372_v17  ;;  %v7500_v39 = vpack.c.bf16 %v3375_v36, %v3374_v30  ;;  %v7507_v40 = vadd.f32 %v3055_v23, %v819_v56  ;;  %v7513_v43 = vadd.f32 %v3361_v13, %v827_v32  ;;  %v3057_v44 = vpop.f32.mrb[5].mxu0  ;;  %v3363_v46 = vpop.f32.mrb[5].mxu1 }
 0x2b8   :  { %v3397_v31 = vrot.slane %v3395_v48, 7  ;;  %v3404_v47 = vrot.slane %v3402_v5, 7  ;;  %v7508_v49 = vadd.f32 %v3057_v44, %v823_v1  ;;  %v7514_v2 = vadd.f32 %v3363_v46, %v831_v3  ;;  %v3059_v50 = vpop.f32.mrb[6].mxu0  ;;  %v3365_v51 = vpop.f32.mrb[6].mxu1  ;;  %v3490_v5 = vld [vmem:[#allocation3 + $0x20] sm:$0x33] }
 0x2b9   :  { %v3449_v55 = vshrl.u32 %v7499_v8, 16  ;;  %v3452_v57 = vshll.u32 %v7499_v8, 16  ;;  %v3456_v62 = vshrl.u32 %v7500_v39, 16  ;;  %v3459_v6 = vshll.u32 %v7500_v39, 16  ;;  %v3060_v7 = vpop.f32.mrb[7].mxu0  ;;  %v3366_v42 = vpop.f32.mrb[7].mxu1 }
 0x2ba   :  { %v3400_v9 = vor.u32 %v3398_v37, %v3397_v31  ;;  %v3408_v10 = vrot.slane %v3397_v31, 4  ;;  %v3407_v53 = vor.u32 %v3405_v18, %v3404_v47  ;;  %v3409_v56 = vrot.slane %v3404_v47, 4  ;;  %v8337_v8 = vld [vmem:[#allocation10 + $0x200] ss:$16 sps:$4 sm:$0xff]   ;;  %v8340_v39 = vld [vmem:[#allocation10 + $0x208] ss:$16 sps:$4 sm:$0xff]  }
 0x2bb   :  { %v3451_v32 = vrot.slane %v3449_v55, 7  ;;  %v3458_v14 = vrot.slane %v3456_v62, 7  ;;  %v3376_v16 = vmax.f32 %v7507_v40, 0.0  ;;  %v3378_v41 = vmax.f32 %v7513_v43, 0.0  ;;  %v8345_v44 = vld [vmem:[#allocation10 + $0x224] ss:$16 sps:$4 sm:$0xff]  }
 0x2bc   :  { %v3415_v1 = vsel %vm9113_vm6, %v3400_v9, %v3414_v38  ;;  %v3421_v3 = vsel %vm9095_vm10, %v3408_v10, %v3420_v28  ;;  %v9322_v19 = vsel %vm9113_vm6, %v3407_v53, %v3417_v12  ;;  %v3424_v20 = vsel %vm9095_vm10, %v3409_v56, %v3423_v11  ;;  %v8348_v46 = vld [vmem:[#allocation10 + $0x22c] ss:$16 sps:$4 sm:$0xff]   ;;  %v8343_v31 = vld [vmem:[#allocation10 + $0x220] ss:$16 sps:$4 sm:$0xff]   ;;  %v8346_v47 = vld [vmem:[#allocation10 + $0x228] ss:$16 sps:$4 sm:$0xff]  }
 0x2bd   :  { %3416 = vst [vmem:[#allocation3] sm:$0xff] %v3415_v1  ;;  %3422 = vst [vmem:[#allocation3 + $0x10] sm:$0x11] %v3421_v3  ;;  %v3454_v21 = vor.u32 %v3452_v57, %v3451_v32  ;;  %v3461_v22 = vor.u32 %v3459_v6, %v3458_v14  ;;  %v3377_v54 = vmax.f32 %v7508_v49, 0.0  ;;  %v3379_v24 = vmax.f32 %v7514_v2, 0.0 }
 0x2be   :  { %3419 = vst [vmem:[#allocation3 + $0x8] sm:$0xff] %v9322_v19  ;;  %3425 = vst [vmem:[#allocation3 + $0x18] sm:$0x11] %v3424_v20  ;;  %vm3446_vm10 = vsmask.f32 4368  ;;  %v3462_v36 = vrot.slane %v3451_v32, 4 }
 0x2bf   :  { %v3485_v25 = vsel %vm9137_vm8, %v3454_v21, %v3484_v52  ;;  %v3488_v4 = vsel %vm9137_vm8, %v3461_v22, %v3487_v61  ;;  %v7501_v45 = vpack.c.bf16 %v3377_v54, %v3376_v16  ;;  %v7502_v26 = vpack.c.bf16 %v3379_v24, %v3378_v41  ;;  %vm3447_vm5 = vmor %vm9544_vm11, %vm3446_vm10  ;;  %v8355_v11 = vld [vmem:[#allocation10 + $0x24c] ss:$16 sps:$4 sm:$0xff]   ;;  %v8350_v50 = vld [vmem:[#allocation10 + $0x240] ss:$16 sps:$4 sm:$0xff]  }
 0x2c0   :  { %3486 = vst [vmem:[#allocation3 + $0x10] sm:$0xee] %v3485_v25  ;;  %3489 = vst [vmem:[#allocation3 + $0x18] sm:$0xee] %v3488_v4  ;;  %v3471_v48 = vrot.slane %v3458_v14, 4  ;;  %vm6642_vm6 = vcmask 1045504  }
 0x2c1   :  { %v3464_v27 = vshrl.u32 %v7501_v45, 16  ;;  %v3473_v17 = vshrl.u32 %v7502_v26, 16  ;;  %v3467_v33 = vshll.u32 %v7501_v45, 16  ;;  %v3476_v35 = vshll.u32 %v7502_v26, 16  ;;  %v8353_v51 = vld [vmem:[#allocation10 + $0x248] ss:$16 sps:$4 sm:$0xff]  }
 0x2c2   :  { %v8359_v62 = vld [vmem:[#allocation10 + $0x264] ss:$16 sps:$4 sm:$0xff]   ;;  %v8362_v7 = vld [vmem:[#allocation10 + $0x26c] ss:$16 sps:$4 sm:$0xff]   ;;  %v8357_v14 = vld [vmem:[#allocation10 + $0x260] ss:$16 sps:$4 sm:$0xff]  }
 0x2c3   :  { %v3466_v30 = vrot.slane %v3464_v27, 7  ;;  %v3475_v34 = vrot.slane %v3473_v17, 7  ;;  %v8360_v16 = vld [vmem:[#allocation10 + $0x268] ss:$16 sps:$4 sm:$0xff]   ;;  %v8365_v20 = vld [vmem:[#allocation10 + $0x284] ss:$16 sps:$4 sm:$0xff]  }
 0x2c4   :  { %v3504_v9 = vld [vmem:[#allocation3] sm:$0xee]  ;;  %v8366_v24 = vld [vmem:[#allocation10 + $0x288] ss:$16 sps:$4 sm:$0xff]   ;;  %v8371_v25 = vld [vmem:[#allocation10 + $0x2a4] ss:$16 sps:$4 sm:$0xff]  }
 0x2c5   :  { %v3469_v37 = vor.u32 %v3467_v33, %v3466_v30  ;;  %v3478_v18 = vor.u32 %v3476_v35, %v3475_v34  ;;  %v3505_v32 = vld [vmem:[#allocation3 + $0x8] sm:$0xee]  ;;  %v8368_v52 = vld [vmem:[#allocation10 + $0x28c] ss:$16 sps:$4 sm:$0xff]   ;;  %v8363_v54 = vld [vmem:[#allocation10 + $0x280] ss:$16 sps:$4 sm:$0xff]  }
 0x2c6   :  { %v8374_v17 = vld [vmem:[#allocation10 + $0x2ac] ss:$16 sps:$4 sm:$0xff]  }
 0x2c7   :  { %v9332_v23 = vld [vmem:[#allocation3 + $0x10] sm:$0xff]  ;;  %v3470_v13 = vsel %vm3447_vm5, %v3462_v36, %v3469_v37  ;;  %v3479_v38 = vsel %vm3447_vm5, %v3471_v48, %v3478_v18  ;;  %v9348_v55 = vld [vmem:[#allocation3 + $0x18] sm:$0xff] }
 0x2c8   :  { %v9335_v28 = vcombine.low %v3415_v1, %v9332_v23  ;;  %v9338_v12 = vcombine.high %v3415_v1, %v9332_v23  ;;  %v3491_v40 = vsel %vm9165_vm7, %v3470_v13, %v3490_v5  ;;  %v3494_v43 = vsel %vm9165_vm7, %v3479_v38, %v3493_v29  ;;  %v8369_v18 = vld [vmem:[#allocation10 + $0x2a0] ss:$16 sps:$4 sm:$0xff]   ;;  %v8372_v29 = vld [vmem:[#allocation10 + $0x2a8] ss:$16 sps:$4 sm:$0xff]   ;;  %v8380_v13 = vld [vmem:[#allocation10 + $0x2cc] ss:$16 sps:$4 sm:$0xff]  }
 0x2c9   :  { %3492 = vst [vmem:[#allocation3 + $0x20] sm:$0x33] %v3491_v40  ;;  %3495 = vst [vmem:[#allocation3 + $0x28] sm:$0x33] %v3494_v43  ;;  %v9352_v10 = vcombine.high %v9322_v19, %v9348_v55  ;;  %v7105_v53 = vcombine.low %v3504_v9, %v9332_v23  ;;  %v7106_v56 = vcombine.high %v3504_v9, %v9332_v23  ;;  %v8377_v23 = vld [vmem:[#allocation10 + $0x2c4] ss:$16 sps:$4 sm:$0xff]  }
 0x2ca   :  { %6006 = vmatprep.mubr.bf16.mxu0 %v9338_v12  ;;  %6312 = vmatprep.mubr.bf16.mxu1 %v9338_v12  ;;  %v7107_v1 = vcombine.low %v3505_v32, %v9348_v55  ;;  %v7108_v3 = vcombine.high %v3505_v32, %v9348_v55  ;;  %v8375_v38 = vld [vmem:[#allocation10 + $0x2c0] ss:$16 sps:$4 sm:$0xff]   ;;  %v8386_v40 = vld [vmem:[#allocation10 + $0x2ec] ss:$16 sps:$4 sm:$0xff]  }
 0x2cb   :  { %6007 = vmatmul.mubr.bf16.vlgmr.msra.gmra.mrb[8].mxu0 %v9335_v28  ;;  %6313 = vmatmul.mubr.bf16.vlgmr.msra.gmra.mrb[8].mxu1 %v9335_v28  ;;  %v3628_v4 = vrot.slane %v7105_v53, 1  ;;  %v3631_v45 = vrot.slane %v7106_v56, 1  ;;  %v8381_v43 = vld [vmem:[#allocation10 + $0x2e0] ss:$16 sps:$4 sm:$0xff]   ;;  %v8408_v53 = vld [vmem:[#allocation10 + $0x368] ss:$16 sps:$4 sm:$0xff]  }
 0x2cc   :  { %6026 = vmatpush1.bf16.msra.mxu0 %v8337_v8  ;;  %6332 = vmatpush1.bf16.msra.mxu1 %v8340_v39  ;;  %v3634_v26 = vrot.slane %v7107_v1, 1  ;;  %v3637_v27 = vrot.slane %v7108_v3, 1  ;;  %v8378_v8 = vld [vmem:[#allocation10 + $0x2c8] ss:$16 sps:$4 sm:$0xff]   ;;  %v8383_v39 = vld [vmem:[#allocation10 + $0x2e4] ss:$16 sps:$4 sm:$0xff]  }
 0x2cd   :  { %6027 = vmatprep.subr.bf16.mxu0 %v8345_v44  ;;  %6333 = vmatprep.subr.bf16.mxu1 %v8348_v46  ;;  %v8384_v44 = vld [vmem:[#allocation10 + $0x2e8] ss:$16 sps:$4 sm:$0xff]   ;;  %v8389_v46 = vld [vmem:[#allocation10 + $0x304] ss:$16 sps:$4 sm:$0xff]   ;;  %v8405_v9 = vld [vmem:[#allocation10 + $0x360] ss:$16 sps:$4 sm:$0xff]  }
 0x2ce   :  { %v8413_v56 = vld [vmem:[#allocation10 + $0x384] ss:$16 sps:$4 sm:$0xff]   ;;  %v8416_v32 = vld [vmem:[#allocation10 + $0x38c] ss:$16 sps:$4 sm:$0xff]  }
 0x2cf   :  { %v8419_v1 = vld [vmem:[#allocation10 + $0x3a4] ss:$16 sps:$4 sm:$0xff]   ;;  %v8422_v3 = vld [vmem:[#allocation10 + $0x3ac] ss:$16 sps:$4 sm:$0xff]  }
 0x2d0   :  { %6028 = vmatpush1.bf16.msra.mxu0 %v8343_v31  ;;  %6334 = vmatpush1.bf16.msra.mxu1 %v8346_v47  ;;  %v3500_v49 = vld [vmem:[#allocation3 + $0x20] sm:$0x11]  ;;  %v3503_v42 = vld [vmem:[#allocation3 + $0x28] sm:$0x33] }
 0x2d1   :  { %6029 = vmatprep.subr.bf16.mxu0 %v8352_v15  ;;  %6335 = vmatprep.subr.bf16.mxu1 %v8355_v11  ;;  %v7098_v2 = vcombine.high %v3500_v49, %v3500_v49  ;;  %v7097_v57 = vcombine.low %v3500_v49, %v3500_v49  ;;  %v3502_v6 = vld [vmem:[#allocation3 + $0x20] sm:$0x33]  ;;  %v9364_v21 = vcombine.low %v3503_v42, %v3503_v42  ;;  %v8390_v15 = vld [vmem:[#allocation10 + $0x308] ss:$16 sps:$4 sm:$0xff]   ;;  %v8395_v11 = vld [vmem:[#allocation10 + $0x324] ss:$16 sps:$4 sm:$0xff]  }
 0x2d2   :  { %v9356_v41 = vcombine.low %v3502_v6, %v3502_v6  ;;  %v9362_v61 = vcombine.high %v3502_v6, %v3502_v6  ;;  %v9366_v22 = vcombine.high %v3503_v42, %v3503_v42  ;;  %v8392_v31 = vld [vmem:[#allocation10 + $0x30c] ss:$16 sps:$4 sm:$0xff]   ;;  %v8387_v47 = vld [vmem:[#allocation10 + $0x300] ss:$16 sps:$4 sm:$0xff]   ;;  %v8402_v6 = vld [vmem:[#allocation10 + $0x348] ss:$16 sps:$4 sm:$0xff]  }
 0x2d3   :  { %6016 = vmatprep.mubr.bf16.mxu0 %v7098_v2  ;;  %6322 = vmatprep.mubr.bf16.mxu1 %v7098_v2  ;;  %v9378_v35 = vrot.slane %v9364_v21, 1  ;;  %v8398_v49 = vld [vmem:[#allocation10 + $0x32c] ss:$16 sps:$4 sm:$0xff]   ;;  %v8393_v2 = vld [vmem:[#allocation10 + $0x320] ss:$16 sps:$4 sm:$0xff]  }
 0x2d4   :  { %6017 = vmatmul.mubr.bf16.gmra.mrb[12].mxu0 %v7097_v57  ;;  %6323 = vmatmul.mubr.bf16.gmra.mrb[12].mxu1 %v7097_v57  ;;  %v9369_v30 = vrot.slane %v9362_v61, 1  ;;  %v9372_v33 = vrot.slane %v9356_v41, 1  ;;  %v9375_v34 = vrot.slane %v9366_v22, 1  ;;  %v8404_v57 = vld [vmem:[#allocation10 + $0x34c] ss:$16 sps:$4 sm:$0xff]  }
 0x2d5   :  { %6030 = vmatpush1.bf16.msra.mxu0 %v8350_v50  ;;  %6336 = vmatpush1.bf16.msra.mxu1 %v8353_v51  ;;  %v9394_v5 = vsel %vm409_vm1, %v3634_v26, %v9378_v35  ;;  %v8396_v50 = vld [vmem:[#allocation10 + $0x328] ss:$16 sps:$4 sm:$0xff]   ;;  %v8401_v51 = vld [vmem:[#allocation10 + $0x344] ss:$16 sps:$4 sm:$0xff]   ;;  %v8410_v42 = vld [vmem:[#allocation10 + $0x36c] ss:$16 sps:$4 sm:$0xff]  }
 0x2d6   :  { %6057 = vmatprep.mubr.bf16.mxu0 %v9352_v10  ;;  %6363 = vmatprep.mubr.bf16.mxu1 %v9352_v10  ;;  %v9382_v36 = vsel %vm409_vm1, %v3631_v45, %v9369_v30  ;;  %v9386_v48 = vsel %vm409_vm1, %v3628_v4, %v9372_v33  ;;  %v9390_v37 = vsel %vm409_vm1, %v3637_v27, %v9375_v34  ;;  %v8426_v4 = vld [vmem:[#allocation10 + $0x3c8] ss:$16 sps:$4 sm:$0xff]   ;;  %v8431_v45 = vld [vmem:[#allocation10 + $0x3e4] ss:$16 sps:$4 sm:$0xff]   ;;  %v8434_v26 = vld [vmem:[#allocation10 + $0x3ec] ss:$16 sps:$4 sm:$0xff]  }
 0x2d7   :  { %6031 = vmatprep.subr.bf16.mxu0 %v8359_v62  ;;  %6337 = vmatprep.subr.bf16.mxu1 %v8362_v7  ;;  %v8399_v62 = vld [vmem:[#allocation10 + $0x340] ss:$16 sps:$4 sm:$0xff]   ;;  %v8407_v7 = vld [vmem:[#allocation10 + $0x364] ss:$16 sps:$4 sm:$0xff]  }
 0x2d8   :  { %v8429_v27 = vld [vmem:[#allocation10 + $0x3e0] ss:$16 sps:$4 sm:$0xff]  }
 0x2d9   :  { %6032 = vmatpush1.bf16.msra.mxu0 %v8357_v14  ;;  %6338 = vmatpush1.bf16.msra.mxu1 %v8360_v16  ;;  %v8411_v14 = vld [vmem:[#allocation10 + $0x380] ss:$16 sps:$4 sm:$0xff]   ;;  %v8414_v16 = vld [vmem:[#allocation10 + $0x388] ss:$16 sps:$4 sm:$0xff]  }
 0x2da   :  { %6033 = vmatprep.subr.bf16.mxu0 %v8365_v20  ;;  %6339 = vmatprep.subr.bf16.mxu1 %v8368_v52  ;;  %v8417_v20 = vld [vmem:[#allocation10 + $0x3a0] ss:$16 sps:$4 sm:$0xff]   ;;  %v8420_v52 = vld [vmem:[#allocation10 + $0x3a8] ss:$16 sps:$4 sm:$0xff]  }
 0x2dd   :  { %6034 = vmatpush1.bf16.msra.mxu0 %v8363_v54  ;;  %6340 = vmatpush1.bf16.msra.mxu1 %v8366_v24  ;;  %v8425_v54 = vld [vmem:[#allocation10 + $0x3c4] ss:$16 sps:$4 sm:$0xff]   ;;  %v8428_v24 = vld [vmem:[#allocation10 + $0x3cc] ss:$16 sps:$4 sm:$0xff]  }
 0x2de   :  { %6035 = vmatprep.subr.bf16.mxu0 %v8371_v25  ;;  %6341 = vmatprep.subr.bf16.mxu1 %v8374_v17  ;;  %v8423_v25 = vld [vmem:[#allocation10 + $0x3c0] ss:$16 sps:$4 sm:$0xff]   ;;  %v8432_v17 = vld [vmem:[#allocation10 + $0x3e8] ss:$16 sps:$4 sm:$0xff]  }
 0x2e1   :  { %6036 = vmatpush1.bf16.msra.mxu0 %v8369_v18  ;;  %6342 = vmatpush1.bf16.msra.mxu1 %v8372_v29  ;;  %v8437_v18 = vld [vmem:[#allocation10 + $0x404] ss:$16 sps:$4 sm:$0xff]   ;;  %v8440_v29 = vld [vmem:[#allocation10 + $0x40c] ss:$16 sps:$4 sm:$0xff]  }
 0x2e2   :  { %6037 = vmatprep.subr.bf16.mxu0 %v8377_v23  ;;  %6343 = vmatprep.subr.bf16.mxu1 %v8380_v13  ;;  %v3501_v23 = vld [vmem:[#allocation3 + $0x28] sm:$0x11]  ;;  %v8435_v13 = vld [vmem:[#allocation10 + $0x400] ss:$16 sps:$4 sm:$0xff]  }
 0x2e5   :  { %6038 = vmatpush1.bf16.msra.mxu0 %v8375_v38  ;;  %6344 = vmatpush1.bf16.msra.mxu1 %v8378_v8  ;;  %v9398_v38 = vcombine.low %v9322_v19, %v9348_v55  ;;  %v8438_v8 = vld [vmem:[#allocation10 + $0x408] ss:$16 sps:$4 sm:$0xff]   ;;  %v8451_v55 = vld [vmem:[#allocation10 + $0x444] ss:$16 sps:$4 sm:$0xff]  }
 0x2e6   :  { %6039 = vmatprep.subr.bf16.mxu0 %v8383_v39  ;;  %6345 = vmatprep.subr.bf16.mxu1 %v8386_v40  ;;  %v3565_v39 = vshll.u32 %v9338_v12, 16  ;;  %v7100_v40 = vcombine.high %v3501_v23, %v3501_v23  ;;  %v8445_v19 = vld [vmem:[#allocation10 + $0x428] ss:$16 sps:$4 sm:$0xff]  }
 0x2e9   :  { %6040 = vmatpush1.bf16.msra.mxu0 %v8381_v43  ;;  %6346 = vmatpush1.bf16.msra.mxu1 %v8384_v44  ;;  %v8444_v43 = vld [vmem:[#allocation10 + $0x424] ss:$16 sps:$4 sm:$0xff]   ;;  %v8447_v44 = vld [vmem:[#allocation10 + $0x42c] ss:$16 sps:$4 sm:$0xff]  }
 0x2ea   :  { %6041 = vmatprep.subr.bf16.mxu0 %v8389_v46  ;;  %6347 = vmatprep.subr.bf16.mxu1 %v8392_v31  ;;  %v3570_v46 = vshll.u32 %v9362_v61, 16  ;;  %v8442_v31 = vld [vmem:[#allocation10 + $0x420] ss:$16 sps:$4 sm:$0xff]  }
 0x2ed   :  { %6042 = vmatpush1.bf16.msra.mxu0 %v8387_v47  ;;  %6348 = vmatpush1.bf16.msra.mxu1 %v8390_v15  ;;  %v3567_v47 = vrot.slane %v3565_v39, 1  ;;  %v8454_v15 = vld [vmem:[#allocation10 + $0x44c] ss:$16 sps:$4 sm:$0xff]   ;;  %v8496_v39 = vld [vmem:[#allocation10 + $0x528] ss:$16 sps:$4 sm:$0xff]  }
 0x2ee   :  { %6043 = vmatprep.subr.bf16.mxu0 %v8395_v11  ;;  %6349 = vmatprep.subr.bf16.mxu1 %v8398_v49  ;;  %v3563_v11 = vshrl.u32 %v9338_v12, 16  ;;  %v9405_v49 = vrot.slane %v3570_v46, 1  ;;  %v8457_v12 = vld [vmem:[#allocation10 + $0x460] ss:$16 sps:$4 sm:$0xff]   ;;  %v8502_v46 = vld [vmem:[#allocation10 + $0x548] ss:$16 sps:$4 sm:$0xff]  }
 0x2f1   :  { %6044 = vmatpush1.bf16.msra.mxu0 %v8393_v2  ;;  %6350 = vmatpush1.bf16.msra.mxu1 %v8396_v50  ;;  %v8449_v2 = vld [vmem:[#allocation10 + $0x440] ss:$16 sps:$4 sm:$0xff]   ;;  %v7099_v50 = vcombine.low %v3501_v23, %v3501_v23  ;;  %v8495_v23 = vld [vmem:[#allocation10 + $0x524] ss:$16 sps:$4 sm:$0xff]  }
 0x2f2   :  { %6045 = vmatprep.subr.bf16.mxu0 %v8401_v51  ;;  %6351 = vmatprep.subr.bf16.mxu1 %v8404_v57  ;;  %v8452_v51 = vld [vmem:[#allocation10 + $0x448] ss:$16 sps:$4 sm:$0xff]   ;;  %v3568_v57 = vor.u32 %v3567_v47, %v3563_v11  ;;  %v8516_v11 = vld [vmem:[#allocation10 + $0x58c] ss:$16 sps:$4 sm:$0xff]  }
 0x2f3   :  { %v8508_v47 = vld [vmem:[#allocation10 + $0x568] ss:$16 sps:$4 sm:$0xff]  }
 0x2f5   :  { %6046 = vmatpush1.bf16.msra.mxu0 %v8399_v62  ;;  %6352 = vmatpush1.bf16.msra.mxu1 %v8402_v6  ;;  %v8459_v62 = vld [vmem:[#allocation10 + $0x464] ss:$16 sps:$4 sm:$0xff]   ;;  %v8462_v6 = vld [vmem:[#allocation10 + $0x46c] ss:$16 sps:$4 sm:$0xff]  }
 0x2f6   :  { %6047 = vmatprep.subr.bf16.mxu0 %v8407_v7  ;;  %6353 = vmatprep.subr.bf16.mxu1 %v8410_v42  ;;  %v3573_v7 = vsel %vm330_vm0, %v3568_v57, %v9405_v49  ;;  %v8460_v42 = vld [vmem:[#allocation10 + $0x468] ss:$16 sps:$4 sm:$0xff]   ;;  %v8522_v57 = vld [vmem:[#allocation10 + $0x5ac] ss:$16 sps:$4 sm:$0xff]  }
 0x2f9   :  { %6048 = vmatpush1.bf16.msra.mxu0 %v8405_v9  ;;  %6354 = vmatpush1.bf16.msra.mxu1 %v8408_v53  ;;  %v8465_v9 = vld [vmem:[#allocation10 + $0x484] ss:$16 sps:$4 sm:$0xff]   ;;  %v8468_v53 = vld [vmem:[#allocation10 + $0x48c] ss:$16 sps:$4 sm:$0xff]  }
 0x2fa   :  { %6049 = vmatprep.subr.bf16.mxu0 %v8413_v56  ;;  %6355 = vmatprep.subr.bf16.mxu1 %v8416_v32  ;;  %v8463_v56 = vld [vmem:[#allocation10 + $0x480] ss:$16 sps:$4 sm:$0xff]   ;;  %v8466_v32 = vld [vmem:[#allocation10 + $0x488] ss:$16 sps:$4 sm:$0xff]  }
 0x2fd   :  { %6050 = vmatpush1.bf16.msra.mxu0 %v8411_v14  ;;  %6356 = vmatpush1.bf16.msra.mxu1 %v8414_v16  ;;  %v8471_v14 = vld [vmem:[#allocation10 + $0x4a4] ss:$16 sps:$4 sm:$0xff]   ;;  %v8474_v16 = vld [vmem:[#allocation10 + $0x4ac] ss:$16 sps:$4 sm:$0xff]  }
 0x2fe   :  { %6051 = vmatprep.subr.bf16.mxu0 %v8419_v1  ;;  %6357 = vmatprep.subr.bf16.mxu1 %v8422_v3  ;;  %v8469_v1 = vld [vmem:[#allocation10 + $0x4a0] ss:$16 sps:$4 sm:$0xff]   ;;  %v8472_v3 = vld [vmem:[#allocation10 + $0x4a8] ss:$16 sps:$4 sm:$0xff]  }
 0x301   :  { %6052 = vmatpush1.bf16.msra.mxu0 %v8417_v20  ;;  %6358 = vmatpush1.bf16.msra.mxu1 %v8420_v52  ;;  %v8477_v20 = vld [vmem:[#allocation10 + $0x4c4] ss:$16 sps:$4 sm:$0xff]   ;;  %v8480_v52 = vld [vmem:[#allocation10 + $0x4cc] ss:$16 sps:$4 sm:$0xff]  }
 0x302   :  { %6053 = vmatprep.subr.bf16.mxu0 %v8425_v54  ;;  %6359 = vmatprep.subr.bf16.mxu1 %v8428_v24  ;;  %v8475_v54 = vld [vmem:[#allocation10 + $0x4c0] ss:$16 sps:$4 sm:$0xff]   ;;  %v8478_v24 = vld [vmem:[#allocation10 + $0x4c8] ss:$16 sps:$4 sm:$0xff]  }
 0x305   :  { %6054 = vmatpush1.bf16.msra.mxu0 %v8423_v25  ;;  %6360 = vmatpush1.bf16.msra.mxu1 %v8426_v4  ;;  %v8483_v25 = vld [vmem:[#allocation10 + $0x4e4] ss:$16 sps:$4 sm:$0xff]   ;;  %v8486_v4 = vld [vmem:[#allocation10 + $0x4ec] ss:$16 sps:$4 sm:$0xff]  }
 0x306   :  { %6055 = vmatprep.subr.bf16.mxu0 %v8431_v45  ;;  %6361 = vmatprep.subr.bf16.mxu1 %v8434_v26  ;;  %v8481_v45 = vld [vmem:[#allocation10 + $0x4e0] ss:$16 sps:$4 sm:$0xff]   ;;  %v8484_v26 = vld [vmem:[#allocation10 + $0x4e8] ss:$16 sps:$4 sm:$0xff]  }
 0x309   :  { %6056 = vmatpush1.bf16.msra.mxu0 %v8429_v27  ;;  %6362 = vmatpush1.bf16.msra.mxu1 %v8432_v17  ;;  %v8489_v27 = vld [vmem:[#allocation10 + $0x504] ss:$16 sps:$4 sm:$0xff]   ;;  %v8492_v17 = vld [vmem:[#allocation10 + $0x50c] ss:$16 sps:$4 sm:$0xff]  }
 0x30a   :  { %6076 = vmatprep.subr.bf16.mxu0 %v8437_v18  ;;  %6382 = vmatprep.subr.bf16.mxu1 %v8440_v29  ;;  %v8487_v18 = vld [vmem:[#allocation10 + $0x500] ss:$16 sps:$4 sm:$0xff]   ;;  %v8490_v29 = vld [vmem:[#allocation10 + $0x508] ss:$16 sps:$4 sm:$0xff]  }
 0x30c   :  { %6058 = vmatmul.mubr.bf16.vlgmr.msra.gmra.mrb[8].mxu0 %v9398_v38  ;;  %6364 = vmatmul.mubr.bf16.vlgmr.msra.gmra.mrb[8].mxu1 %v9398_v38 }
 0x30d   :  { %6067 = vmatprep.mubr.bf16.mxu0 %v7100_v40  ;;  %6077 = vmatpush1.bf16.msra.mxu0 %v8435_v13  ;;  %v8498_v13 = vld [vmem:[#allocation10 + $0x52c] ss:$16 sps:$4 sm:$0xff]  }
 0x30e   :  { %6373 = vmatprep.mubr.bf16.mxu1 %v7100_v40  ;;  %6383 = vmatpush1.bf16.msra.mxu1 %v8438_v8  ;;  %v8493_v8 = vld [vmem:[#allocation10 + $0x520] ss:$16 sps:$4 sm:$0xff]   ;;  %v8501_v40 = vld [vmem:[#allocation10 + $0x544] ss:$16 sps:$4 sm:$0xff]  }
 0x30f   :  { %6078 = vmatprep.subr.bf16.mxu0 %v8444_v43  ;;  %6384 = vmatprep.subr.bf16.mxu1 %v8447_v44  ;;  %v8504_v43 = vld [vmem:[#allocation10 + $0x54c] ss:$16 sps:$4 sm:$0xff]   ;;  %v8499_v44 = vld [vmem:[#allocation10 + $0x540] ss:$16 sps:$4 sm:$0xff]  }
 0x311   :  { %6079 = vmatpush1.bf16.msra.mxu0 %v8442_v31  ;;  %v8507_v31 = vld [vmem:[#allocation10 + $0x564] ss:$16 sps:$4 sm:$0xff]  }
 0x312   :  { %6385 = vmatpush1.bf16.msra.mxu1 %v8445_v19  ;;  %6080 = vmatprep.subr.bf16.mxu0 %v8451_v55  ;;  %v8510_v19 = vld [vmem:[#allocation10 + $0x56c] ss:$16 sps:$4 sm:$0xff]   ;;  %v8505_v55 = vld [vmem:[#allocation10 + $0x560] ss:$16 sps:$4 sm:$0xff]  }
 0x313   :  { %6386 = vmatprep.subr.bf16.mxu1 %v8454_v15  ;;  %v8513_v15 = vld [vmem:[#allocation10 + $0x584] ss:$16 sps:$4 sm:$0xff]  }
 0x314   :  { %6068 = vmatmul.mubr.bf16.gmra.mrb[16].mxu0 %v7099_v50  ;;  %6374 = vmatmul.mubr.bf16.gmra.mrb[16].mxu1 %v7099_v50  ;;  %v8514_v50 = vld [vmem:[#allocation10 + $0x588] ss:$16 sps:$4 sm:$0xff]  }
 0x315   :  { %6081 = vmatpush1.bf16.msra.mxu0 %v8449_v2  ;;  %6108 = vmatprep.mubr.bf16.mxu0 %v3573_v7  ;;  %v8511_v2 = vld [vmem:[#allocation10 + $0x580] ss:$16 sps:$4 sm:$0xff]  }
 0x316   :  { %6387 = vmatpush1.bf16.msra.mxu1 %v8452_v51  ;;  %6414 = vmatprep.mubr.bf16.mxu1 %v3573_v7  ;;  %v8519_v51 = vld [vmem:[#allocation10 + $0x5a4] ss:$16 sps:$4 sm:$0xff]  }
 0x317   :  { %6082 = vmatprep.subr.bf16.mxu0 %v8459_v62  ;;  %6388 = vmatprep.subr.bf16.mxu1 %v8462_v6  ;;  %v8517_v62 = vld [vmem:[#allocation10 + $0x5a0] ss:$16 sps:$4 sm:$0xff]   ;;  %v8520_v6 = vld [vmem:[#allocation10 + $0x5a8] ss:$16 sps:$4 sm:$0xff]   ;;  %v8525_v7 = vld [vmem:[#allocation10 + $0x5c4] ss:$16 sps:$4 sm:$0xff]  }
 0x319   :  { %6083 = vmatpush1.bf16.msra.mxu0 %v8457_v12  ;;  %v8528_v12 = vld [vmem:[#allocation10 + $0x5cc] ss:$16 sps:$4 sm:$0xff]  }
 0x31a   :  { %6389 = vmatpush1.bf16.msra.mxu1 %v8460_v42  ;;  %6084 = vmatprep.subr.bf16.mxu0 %v8465_v9  ;;  %v8523_v42 = vld [vmem:[#allocation10 + $0x5c0] ss:$16 sps:$4 sm:$0xff]   ;;  %v3553_v9 = vshll.u32 %v9335_v28, 16 }
 0x31b   :  { %6390 = vmatprep.subr.bf16.mxu1 %v8468_v53  ;;  %v8526_v53 = vld [vmem:[#allocation10 + $0x5c8] ss:$16 sps:$4 sm:$0xff]  }
 0x31d   :  { %6085 = vmatpush1.bf16.msra.mxu0 %v8463_v56  ;;  %v8531_v56 = vld [vmem:[#allocation10 + $0x5e4] ss:$16 sps:$4 sm:$0xff]  }
 0x31e   :  { %6391 = vmatpush1.bf16.msra.mxu1 %v8466_v32  ;;  %6086 = vmatprep.subr.bf16.mxu0 %v8471_v14  ;;  %v8534_v32 = vld [vmem:[#allocation10 + $0x5ec] ss:$16 sps:$4 sm:$0xff]   ;;  %v3558_v14 = vshll.u32 %v9356_v41, 16 }
 0x31f   :  { %6392 = vmatprep.subr.bf16.mxu1 %v8474_v16  ;;  %v8529_v16 = vld [vmem:[#allocation10 + $0x5e0] ss:$16 sps:$4 sm:$0xff]  }
 0x321   :  { %6087 = vmatpush1.bf16.msra.mxu0 %v8469_v1  ;;  %v3555_v1 = vrot.slane %v3553_v9, 1  ;;  %v8578_v9 = vld [vmem:[#allocation10 + $0x6cc] ss:$16 sps:$4 sm:$0xff]  }
 0x322   :  { %6393 = vmatpush1.bf16.msra.mxu1 %v8472_v3  ;;  %6088 = vmatprep.subr.bf16.mxu0 %v8477_v20  ;;  %v8532_v3 = vld [vmem:[#allocation10 + $0x5e8] ss:$16 sps:$4 sm:$0xff]   ;;  %v8537_v20 = vld [vmem:[#allocation10 + $0x604] ss:$16 sps:$4 sm:$0xff]  }
 0x323   :  { %6394 = vmatprep.subr.bf16.mxu1 %v8480_v52  ;;  %v3551_v52 = vshrl.u32 %v9335_v28, 16  ;;  %v8546_v28 = vld [vmem:[#allocation10 + $0x62c] ss:$16 sps:$4 sm:$0xff]  }
 0x325   :  { %6089 = vmatpush1.bf16.msra.mxu0 %v8475_v54  ;;  %v3560_v54 = vrot.slane %v3558_v14, 1  ;;  %v8584_v14 = vld [vmem:[#allocation10 + $0x6ec] ss:$16 sps:$4 sm:$0xff]  }
 0x326   :  { %6395 = vmatpush1.bf16.msra.mxu1 %v8478_v24  ;;  %6090 = vmatprep.subr.bf16.mxu0 %v8483_v25  ;;  %v8540_v24 = vld [vmem:[#allocation10 + $0x60c] ss:$16 sps:$4 sm:$0xff]   ;;  %v3556_v25 = vor.u32 %v3555_v1, %v3551_v52  ;;  %v8582_v1 = vld [vmem:[#allocation10 + $0x6e8] ss:$16 sps:$4 sm:$0xff]   ;;  %v8585_v52 = vld [vmem:[#allocation10 + $0x700] ss:$16 sps:$4 sm:$0xff]  }
 0x327   :  { %6396 = vmatprep.subr.bf16.mxu1 %v8486_v4  ;;  %v3601_v4 = vshrl.u32 %v9362_v61, 16  ;;  %v8541_v61 = vld [vmem:[#allocation10 + $0x620] ss:$16 sps:$4 sm:$0xff]  }
 0x329   :  { %6091 = vmatpush1.bf16.msra.mxu0 %v8481_v45  ;;  %v8535_v45 = vld [vmem:[#allocation10 + $0x600] ss:$16 sps:$4 sm:$0xff]  }
 0x32a   :  { %6397 = vmatpush1.bf16.msra.mxu1 %v8484_v26  ;;  %6092 = vmatprep.subr.bf16.mxu0 %v8489_v27  ;;  %v3589_v26 = vshll.u32 %v9352_v10, 16  ;;  %v3561_v27 = vsel %vm330_vm0, %v3556_v25, %v3560_v54  ;;  %v8596_v25 = vld [vmem:[#allocation10 + $0x72c] ss:$16 sps:$4 sm:$0xff]  }
 0x32b   :  { %6398 = vmatprep.subr.bf16.mxu1 %v8492_v17  ;;  %v8538_v17 = vld [vmem:[#allocation10 + $0x608] ss:$16 sps:$4 sm:$0xff]  }
 0x32d   :  { %6093 = vmatpush1.bf16.msra.mxu0 %v8487_v18  ;;  %v3603_v18 = vor.u32 %v3601_v4, %v9405_v49  ;;  %v3587_v49 = vshrl.u32 %v9352_v10, 16  ;;  %v8555_v10 = vld [vmem:[#allocation10 + $0x660] ss:$16 sps:$4 sm:$0xff]  }
 0x32e   :  { %6399 = vmatpush1.bf16.msra.mxu1 %v8490_v29  ;;  %6094 = vmatprep.subr.bf16.mxu0 %v8495_v23  ;;  %v8543_v29 = vld [vmem:[#allocation10 + $0x624] ss:$16 sps:$4 sm:$0xff]   ;;  %v3594_v23 = vshll.u32 %v9366_v22, 16  ;;  %v8591_v4 = vld [vmem:[#allocation10 + $0x720] ss:$16 sps:$4 sm:$0xff]  }
 0x32f   :  { %6400 = vmatprep.subr.bf16.mxu1 %v8498_v13  ;;  %v3591_v13 = vrot.slane %v3589_v26, 1  ;;  %v8599_v26 = vld [vmem:[#allocation10 + $0x744] ss:$16 sps:$4 sm:$0xff]  }
 0x331   :  { %6095 = vmatpush1.bf16.msra.mxu0 %v8493_v8  ;;  %v8544_v8 = vld [vmem:[#allocation10 + $0x628] ss:$16 sps:$4 sm:$0xff]  }
 0x332   :  { %6401 = vmatpush1.bf16.msra.mxu1 %v8496_v39  ;;  %6096 = vmatprep.subr.bf16.mxu0 %v8501_v40  ;;  %v8549_v39 = vld [vmem:[#allocation10 + $0x644] ss:$16 sps:$4 sm:$0xff]   ;;  %v3598_v40 = vshrl.u32 %v9356_v41, 16  ;;  %v8558_v41 = vld [vmem:[#allocation10 + $0x668] ss:$16 sps:$4 sm:$0xff]  }
 0x333   :  { %6402 = vmatprep.subr.bf16.mxu1 %v8504_v43  ;;  %v8552_v43 = vld [vmem:[#allocation10 + $0x64c] ss:$16 sps:$4 sm:$0xff]  }
 0x335   :  { %6097 = vmatpush1.bf16.msra.mxu0 %v8499_v44  ;;  %v9419_v44 = vrot.slane %v3594_v23, 1  ;;  %v8603_v23 = vld [vmem:[#allocation10 + $0x760] ss:$16 sps:$4 sm:$0xff]  }
 0x336   :  { %6403 = vmatpush1.bf16.msra.mxu1 %v8502_v46  ;;  %6098 = vmatprep.subr.bf16.mxu0 %v8507_v31  ;;  %v3600_v46 = vor.u32 %v3598_v40, %v3560_v54  ;;  %v8547_v31 = vld [vmem:[#allocation10 + $0x640] ss:$16 sps:$4 sm:$0xff]   ;;  %v8588_v54 = vld [vmem:[#allocation10 + $0x708] ss:$16 sps:$4 sm:$0xff]  }
 0x337   :  { %6404 = vmatprep.subr.bf16.mxu1 %v8510_v19  ;;  %v3592_v19 = vor.u32 %v3591_v13, %v3587_v49  ;;  %v8611_v13 = vld [vmem:[#allocation10 + $0x784] ss:$16 sps:$4 sm:$0xff]   ;;  %v8612_v40 = vld [vmem:[#allocation10 + $0x788] ss:$16 sps:$4 sm:$0xff]   ;;  %v8620_v49 = vld [vmem:[#allocation10 + $0x7ac] ss:$16 sps:$4 sm:$0xff]  }
 0x339   :  { %6099 = vmatpush1.bf16.msra.mxu0 %v8505_v55  ;;  %v8550_v55 = vld [vmem:[#allocation10 + $0x648] ss:$16 sps:$4 sm:$0xff]  }
 0x33a   :  { %6405 = vmatpush1.bf16.msra.mxu1 %v8508_v47  ;;  %6100 = vmatprep.subr.bf16.mxu0 %v8513_v15  ;;  %v8557_v47 = vld [vmem:[#allocation10 + $0x664] ss:$16 sps:$4 sm:$0xff]   ;;  %v3597_v15 = vsel %vm330_vm0, %v3592_v19, %v9419_v44 }
 0x33b   :  { %6406 = vmatprep.subr.bf16.mxu1 %v8516_v11  ;;  %v8560_v11 = vld [vmem:[#allocation10 + $0x66c] ss:$16 sps:$4 sm:$0xff]   ;;  %v8623_v19 = vld [vmem:[#allocation10 + $0x7c4] ss:$16 sps:$4 sm:$0xff]  }
 0x33d   :  { %6101 = vmatpush1.bf16.msra.mxu0 %v8511_v2  ;;  %v8563_v2 = vld [vmem:[#allocation10 + $0x684] ss:$16 sps:$4 sm:$0xff]  }
 0x33e   :  { %6407 = vmatpush1.bf16.msra.mxu1 %v8514_v50  ;;  %6102 = vmatprep.subr.bf16.mxu0 %v8519_v51  ;;  %v8566_v50 = vld [vmem:[#allocation10 + $0x68c] ss:$16 sps:$4 sm:$0xff]   ;;  %v8561_v51 = vld [vmem:[#allocation10 + $0x680] ss:$16 sps:$4 sm:$0xff]  }
 0x33f   :  { %6408 = vmatprep.subr.bf16.mxu1 %v8522_v57  ;;  %v8564_v57 = vld [vmem:[#allocation10 + $0x688] ss:$16 sps:$4 sm:$0xff]  }
 0x341   :  { %6103 = vmatpush1.bf16.msra.mxu0 %v8517_v62  ;;  %v8569_v62 = vld [vmem:[#allocation10 + $0x6a4] ss:$16 sps:$4 sm:$0xff]  }
 0x342   :  { %6409 = vmatpush1.bf16.msra.mxu1 %v8520_v6  ;;  %6104 = vmatprep.subr.bf16.mxu0 %v8525_v7  ;;  %v8572_v6 = vld [vmem:[#allocation10 + $0x6ac] ss:$16 sps:$4 sm:$0xff]   ;;  %v8567_v7 = vld [vmem:[#allocation10 + $0x6a0] ss:$16 sps:$4 sm:$0xff]  }
 0x343   :  { %6410 = vmatprep.subr.bf16.mxu1 %v8528_v12  ;;  %v8570_v12 = vld [vmem:[#allocation10 + $0x6a8] ss:$16 sps:$4 sm:$0xff]  }
 0x345   :  { %6105 = vmatpush1.bf16.msra.mxu0 %v8523_v42  ;;  %v8575_v42 = vld [vmem:[#allocation10 + $0x6c4] ss:$16 sps:$4 sm:$0xff]  }
 0x346   :  { %6411 = vmatpush1.bf16.msra.mxu1 %v8526_v53  ;;  %6106 = vmatprep.subr.bf16.mxu0 %v8531_v56  ;;  %v8573_v53 = vld [vmem:[#allocation10 + $0x6c0] ss:$16 sps:$4 sm:$0xff]   ;;  %v8576_v56 = vld [vmem:[#allocation10 + $0x6c8] ss:$16 sps:$4 sm:$0xff]  }
 0x347   :  { %6412 = vmatprep.subr.bf16.mxu1 %v8534_v32  ;;  %v8581_v32 = vld [vmem:[#allocation10 + $0x6e4] ss:$16 sps:$4 sm:$0xff]  }
 0x349   :  { %6107 = vmatpush1.bf16.msra.mxu0 %v8529_v16  ;;  %v8579_v16 = vld [vmem:[#allocation10 + $0x6e0] ss:$16 sps:$4 sm:$0xff]  }
 0x34a   :  { %6413 = vmatpush1.bf16.msra.mxu1 %v8532_v3  ;;  %6127 = vmatprep.subr.bf16.mxu0 %v8537_v20  ;;  %v8587_v3 = vld [vmem:[#allocation10 + $0x704] ss:$16 sps:$4 sm:$0xff]   ;;  %v8590_v20 = vld [vmem:[#allocation10 + $0x70c] ss:$16 sps:$4 sm:$0xff]  }
 0x34b   :  { %6433 = vmatprep.subr.bf16.mxu1 %v8540_v24  ;;  %v8593_v24 = vld [vmem:[#allocation10 + $0x724] ss:$16 sps:$4 sm:$0xff]  }
 0x34c   :  { %6109 = vmatmul.mubr.bf16.vlgmr.msra.gmra.mrb[8].mxu0 %v3561_v27 }
 0x34d   :  { %6415 = vmatmul.mubr.bf16.vlgmr.msra.gmra.mrb[8].mxu1 %v3561_v27  ;;  %6118 = vmatprep.mubr.bf16.mxu0 %v3603_v18  ;;  %v8602_v27 = vld [vmem:[#allocation10 + $0x74c] ss:$16 sps:$4 sm:$0xff]  }
 0x34e   :  { %6128 = vmatpush1.bf16.msra.mxu0 %v8535_v45  ;;  %6424 = vmatprep.mubr.bf16.mxu1 %v3603_v18  ;;  %v8594_v45 = vld [vmem:[#allocation10 + $0x728] ss:$16 sps:$4 sm:$0xff]  }
 0x34f   :  { %6434 = vmatpush1.bf16.msra.mxu1 %v8538_v17  ;;  %6129 = vmatprep.subr.bf16.mxu0 %v8543_v29  ;;  %v8597_v17 = vld [vmem:[#allocation10 + $0x740] ss:$16 sps:$4 sm:$0xff]   ;;  %v8600_v18 = vld [vmem:[#allocation10 + $0x748] ss:$16 sps:$4 sm:$0xff]   ;;  %v8605_v29 = vld [vmem:[#allocation10 + $0x764] ss:$16 sps:$4 sm:$0xff]  }
 0x350   :  { %6435 = vmatprep.subr.bf16.mxu1 %v8546_v28  ;;  %v8608_v28 = vld [vmem:[#allocation10 + $0x76c] ss:$16 sps:$4 sm:$0xff]  }
 0x352   :  { %6130 = vmatpush1.bf16.msra.mxu0 %v8541_v61  ;;  %v8606_v61 = vld [vmem:[#allocation10 + $0x768] ss:$16 sps:$4 sm:$0xff]  }
 0x353   :  { %6436 = vmatpush1.bf16.msra.mxu1 %v8544_v8  ;;  %6131 = vmatprep.subr.bf16.mxu0 %v8549_v39  ;;  %v8614_v8 = vld [vmem:[#allocation10 + $0x78c] ss:$16 sps:$4 sm:$0xff]   ;;  %v8609_v39 = vld [vmem:[#allocation10 + $0x780] ss:$16 sps:$4 sm:$0xff]  }
 0x354   :  { %6119 = vmatmul.mubr.bf16.gmra.mrb[20].mxu0 %v3600_v46  ;;  %6437 = vmatprep.subr.bf16.mxu1 %v8552_v43  ;;  %v8617_v43 = vld [vmem:[#allocation10 + $0x7a4] ss:$16 sps:$4 sm:$0xff]  }
 0x355   :  { %6425 = vmatmul.mubr.bf16.gmra.mrb[20].mxu1 %v3600_v46  ;;  %6159 = vmatprep.mubr.bf16.mxu0 %v3597_v15  ;;  %v8615_v46 = vld [vmem:[#allocation10 + $0x7a0] ss:$16 sps:$4 sm:$0xff]  }
 0x356   :  { %6132 = vmatpush1.bf16.msra.mxu0 %v8547_v31  ;;  %6465 = vmatprep.mubr.bf16.mxu1 %v3597_v15  ;;  %v8618_v31 = vld [vmem:[#allocation10 + $0x7a8] ss:$16 sps:$4 sm:$0xff]   ;;  %v3577_v15 = vshll.u32 %v9398_v38, 16 }
 0x357   :  { %6438 = vmatpush1.bf16.msra.mxu1 %v8550_v55  ;;  %6133 = vmatprep.subr.bf16.mxu0 %v8557_v47  ;;  %v8626_v55 = vld [vmem:[#allocation10 + $0x7cc] ss:$16 sps:$4 sm:$0xff]   ;;  %v8621_v47 = vld [vmem:[#allocation10 + $0x7c0] ss:$16 sps:$4 sm:$0xff]  }
 0x358   :  { %6439 = vmatprep.subr.bf16.mxu1 %v8560_v11  ;;  %v8624_v11 = vld [vmem:[#allocation10 + $0x7c8] ss:$16 sps:$4 sm:$0xff]  }
 0x35a   :  { %6134 = vmatpush1.bf16.msra.mxu0 %v8555_v10  ;;  %v8629_v10 = vld [vmem:[#allocation10 + $0x7e4] ss:$16 sps:$4 sm:$0xff]  }
 0x35b   :  { %6440 = vmatpush1.bf16.msra.mxu1 %v8558_v41  ;;  %6135 = vmatprep.subr.bf16.mxu0 %v8563_v2  ;;  %v8632_v41 = vld [vmem:[#allocation10 + $0x7ec] ss:$16 sps:$4 sm:$0xff]   ;;  %v3582_v2 = vshll.u32 %v9364_v21, 16 }
 0x35c   :  { %6441 = vmatprep.subr.bf16.mxu1 %v8566_v50  ;;  %v8627_v50 = vld [vmem:[#allocation10 + $0x7e0] ss:$16 sps:$4 sm:$0xff]  }
 0x35e   :  { %6136 = vmatpush1.bf16.msra.mxu0 %v8561_v51  ;;  %v3579_v51 = vrot.slane %v3577_v15, 1  ;;  %v8685_v15 = vld [vmem:[#allocation10 + $0x904] ss:$16 sps:$4 sm:$0xff]  }
 0x35f   :  { %6442 = vmatpush1.bf16.msra.mxu1 %v8564_v57  ;;  %6137 = vmatprep.subr.bf16.mxu0 %v8569_v62  ;;  %v8630_v57 = vld [vmem:[#allocation10 + $0x7e8] ss:$16 sps:$4 sm:$0xff]   ;;  %v8635_v62 = vld [vmem:[#allocation10 + $0x804] ss:$16 sps:$4 sm:$0xff]  }
 0x360   :  { %6443 = vmatprep.subr.bf16.mxu1 %v8572_v6  ;;  %v3575_v6 = vshrl.u32 %v9398_v38, 16  ;;  %v8639_v38 = vld [vmem:[#allocation10 + $0x820] ss:$16 sps:$4 sm:$0xff]  }
 0x362   :  { %6138 = vmatpush1.bf16.msra.mxu0 %v8567_v7  ;;  %v3584_v7 = vrot.slane %v3582_v2, 1 }
 0x363   :  { %6444 = vmatpush1.bf16.msra.mxu1 %v8570_v12  ;;  %6139 = vmatprep.subr.bf16.mxu0 %v8575_v42  ;;  %v8638_v12 = vld [vmem:[#allocation10 + $0x80c] ss:$16 sps:$4 sm:$0xff]   ;;  %v3580_v42 = vor.u32 %v3579_v51, %v3575_v6  ;;  %v8683_v51 = vld [vmem:[#allocation10 + $0x900] ss:$16 sps:$4 sm:$0xff]  }
 0x364   :  { %6445 = vmatprep.subr.bf16.mxu1 %v8578_v9  ;;  %v3607_v9 = vshrl.u32 %v9366_v22, 16  ;;  %v8642_v22 = vld [vmem:[#allocation10 + $0x828] ss:$16 sps:$4 sm:$0xff]   ;;  %v8694_v6 = vld [vmem:[#allocation10 + $0x92c] ss:$16 sps:$4 sm:$0xff]  }
 0x366   :  { %6140 = vmatpush1.bf16.msra.mxu0 %v8573_v53  ;;  %v8633_v53 = vld [vmem:[#allocation10 + $0x800] ss:$16 sps:$4 sm:$0xff]  }
 0x367   :  { %6446 = vmatpush1.bf16.msra.mxu1 %v8576_v56  ;;  %6141 = vmatprep.subr.bf16.mxu0 %v8581_v32  ;;  %v3585_v56 = vsel %vm330_vm0, %v3580_v42, %v3584_v7  ;;  %v8636_v32 = vld [vmem:[#allocation10 + $0x808] ss:$16 sps:$4 sm:$0xff]   ;;  %v8697_v42 = vld [vmem:[#allocation10 + $0x944] ss:$16 sps:$4 sm:$0xff]  }
 0x368   :  { %6447 = vmatprep.subr.bf16.mxu1 %v8584_v14  ;;  %v3609_v14 = vor.u32 %v3607_v9, %v9419_v44  ;;  %v8648_v44 = vld [vmem:[#allocation10 + $0x848] ss:$16 sps:$4 sm:$0xff]   ;;  %v8700_v9 = vld [vmem:[#allocation10 + $0x94c] ss:$16 sps:$4 sm:$0xff]  }
 0x36a   :  { %6142 = vmatpush1.bf16.msra.mxu0 %v8579_v16  ;;  %v8641_v16 = vld [vmem:[#allocation10 + $0x824] ss:$16 sps:$4 sm:$0xff]  }
 0x36b   :  { %6448 = vmatpush1.bf16.msra.mxu1 %v8582_v1  ;;  %6143 = vmatprep.subr.bf16.mxu0 %v8587_v3  ;;  %v8644_v1 = vld [vmem:[#allocation10 + $0x82c] ss:$16 sps:$4 sm:$0xff]   ;;  %v8647_v3 = vld [vmem:[#allocation10 + $0x844] ss:$16 sps:$4 sm:$0xff]  }
 0x36c   :  { %6449 = vmatprep.subr.bf16.mxu1 %v8590_v20  ;;  %v3604_v20 = vshrl.u32 %v9364_v21, 16  ;;  %v8656_v21 = vld [vmem:[#allocation10 + $0x868] ss:$16 sps:$4 sm:$0xff]  }
 0x36e   :  { %6144 = vmatpush1.bf16.msra.mxu0 %v8585_v52  ;;  %v8650_v52 = vld [vmem:[#allocation10 + $0x84c] ss:$16 sps:$4 sm:$0xff]  }
 0x36f   :  { %6450 = vmatpush1.bf16.msra.mxu1 %v8588_v54  ;;  %6145 = vmatprep.subr.bf16.mxu0 %v8593_v24  ;;  %v3606_v54 = vor.u32 %v3604_v20, %v3584_v7  ;;  %v8645_v24 = vld [vmem:[#allocation10 + $0x840] ss:$16 sps:$4 sm:$0xff]   ;;  %v8710_v20 = vld [vmem:[#allocation10 + $0x988] ss:$16 sps:$4 sm:$0xff]  }
 0x370   :  { %6451 = vmatprep.subr.bf16.mxu1 %v8596_v25  ;;  %v8655_v25 = vld [vmem:[#allocation10 + $0x864] ss:$16 sps:$4 sm:$0xff]   ;;  %v8689_v7 = vld [vmem:[#allocation10 + $0x920] ss:$16 sps:$4 sm:$0xff]  }
 0x372   :  { %6146 = vmatpush1.bf16.msra.mxu0 %v8591_v4  ;;  %v8658_v4 = vld [vmem:[#allocation10 + $0x86c] ss:$16 sps:$4 sm:$0xff]  }
 0x373   :  { %6452 = vmatpush1.bf16.msra.mxu1 %v8594_v45  ;;  %6147 = vmatprep.subr.bf16.mxu0 %v8599_v26  ;;  %v8653_v45 = vld [vmem:[#allocation10 + $0x860] ss:$16 sps:$4 sm:$0xff]   ;;  %v8661_v26 = vld [vmem:[#allocation10 + $0x884] ss:$16 sps:$4 sm:$0xff]  }
 0x374   :  { %6453 = vmatprep.subr.bf16.mxu1 %v8602_v27  ;;  %v8664_v27 = vld [vmem:[#allocation10 + $0x88c] ss:$16 sps:$4 sm:$0xff]  }
 0x376   :  { %6148 = vmatpush1.bf16.msra.mxu0 %v8597_v17  ;;  %v8659_v17 = vld [vmem:[#allocation10 + $0x880] ss:$16 sps:$4 sm:$0xff]  }
 0x377   :  { %6454 = vmatpush1.bf16.msra.mxu1 %v8600_v18  ;;  %6149 = vmatprep.subr.bf16.mxu0 %v8605_v29  ;;  %v8662_v18 = vld [vmem:[#allocation10 + $0x888] ss:$16 sps:$4 sm:$0xff]   ;;  %v8667_v29 = vld [vmem:[#allocation10 + $0x8a4] ss:$16 sps:$4 sm:$0xff]  }
 0x378   :  { %6455 = vmatprep.subr.bf16.mxu1 %v8608_v28  ;;  %v8670_v28 = vld [vmem:[#allocation10 + $0x8ac] ss:$16 sps:$4 sm:$0xff]  }
 0x37a   :  { %6150 = vmatpush1.bf16.msra.mxu0 %v8603_v23  ;;  %v8665_v23 = vld [vmem:[#allocation10 + $0x8a0] ss:$16 sps:$4 sm:$0xff]  }
 0x37b   :  { %6456 = vmatpush1.bf16.msra.mxu1 %v8606_v61  ;;  %6151 = vmatprep.subr.bf16.mxu0 %v8611_v13  ;;  %v8673_v61 = vld [vmem:[#allocation10 + $0x8c4] ss:$16 sps:$4 sm:$0xff]   ;;  %v8676_v13 = vld [vmem:[#allocation10 + $0x8cc] ss:$16 sps:$4 sm:$0xff]  }
 0x37c   :  { %6457 = vmatprep.subr.bf16.mxu1 %v8614_v8  ;;  %v8671_v8 = vld [vmem:[#allocation10 + $0x8c0] ss:$16 sps:$4 sm:$0xff]  }
 0x37e   :  { %6152 = vmatpush1.bf16.msra.mxu0 %v8609_v39  ;;  %v8674_v39 = vld [vmem:[#allocation10 + $0x8c8] ss:$16 sps:$4 sm:$0xff]  }
 0x37f   :  { %6458 = vmatpush1.bf16.msra.mxu1 %v8612_v40  ;;  %6153 = vmatprep.subr.bf16.mxu0 %v8617_v43  ;;  %v8679_v40 = vld [vmem:[#allocation10 + $0x8e4] ss:$16 sps:$4 sm:$0xff]   ;;  %v8682_v43 = vld [vmem:[#allocation10 + $0x8ec] ss:$16 sps:$4 sm:$0xff]  }
 0x380   :  { %6459 = vmatprep.subr.bf16.mxu1 %v8620_v49 }
 0x382   :  { %6154 = vmatpush1.bf16.msra.mxu0 %v8615_v46  ;;  %v8677_v46 = vld [vmem:[#allocation10 + $0x8e0] ss:$16 sps:$4 sm:$0xff]  }
 0x383   :  { %6460 = vmatpush1.bf16.msra.mxu1 %v8618_v31  ;;  %6155 = vmatprep.subr.bf16.mxu0 %v8623_v19  ;;  %v8680_v19 = vld [vmem:[#allocation10 + $0x8e8] ss:$16 sps:$4 sm:$0xff]  }
 0x384   :  { %6461 = vmatprep.subr.bf16.mxu1 %v8626_v55 }
 0x386   :  { %6156 = vmatpush1.bf16.msra.mxu0 %v8621_v47 }
 0x387   :  { %6462 = vmatpush1.bf16.msra.mxu1 %v8624_v11  ;;  %6157 = vmatprep.subr.bf16.mxu0 %v8629_v10 }
 0x388   :  { %6463 = vmatprep.subr.bf16.mxu1 %v8632_v41  ;;  %v8688_v41 = vld [vmem:[#allocation10 + $0x90c] ss:$16 sps:$4 sm:$0xff]  }
 0x38a   :  { %6158 = vmatpush1.bf16.msra.mxu0 %v8627_v50 }
 0x38b   :  { %6464 = vmatpush1.bf16.msra.mxu1 %v8630_v57  ;;  %6178 = vmatprep.subr.bf16.mxu0 %v8635_v62  ;;  %v8686_v57 = vld [vmem:[#allocation10 + $0x908] ss:$16 sps:$4 sm:$0xff]   ;;  %v8691_v62 = vld [vmem:[#allocation10 + $0x924] ss:$16 sps:$4 sm:$0xff]  }
 0x38c   :  { %6484 = vmatprep.subr.bf16.mxu1 %v8638_v12  ;;  %v8692_v12 = vld [vmem:[#allocation10 + $0x928] ss:$16 sps:$4 sm:$0xff]  }
 0x38d   :  { %6160 = vmatmul.mubr.bf16.vlgmr.msra.gmra.mrb[8].mxu0 %v3585_v56 }
 0x38e   :  { %6466 = vmatmul.mubr.bf16.vlgmr.msra.gmra.mrb[8].mxu1 %v3585_v56  ;;  %6169 = vmatprep.mubr.bf16.mxu0 %v3609_v14  ;;  %v8698_v56 = vld [vmem:[#allocation10 + $0x948] ss:$16 sps:$4 sm:$0xff]  }
 0x38f   :  { %6179 = vmatpush1.bf16.msra.mxu0 %v8633_v53  ;;  %6475 = vmatprep.mubr.bf16.mxu1 %v3609_v14  ;;  %v8695_v53 = vld [vmem:[#allocation10 + $0x940] ss:$16 sps:$4 sm:$0xff]   ;;  %v8706_v14 = vld [vmem:[#allocation10 + $0x96c] ss:$16 sps:$4 sm:$0xff]  }
 0x390   :  { %6485 = vmatpush1.bf16.msra.mxu1 %v8636_v32  ;;  %6180 = vmatprep.subr.bf16.mxu0 %v8641_v16  ;;  %v8703_v32 = vld [vmem:[#allocation10 + $0x964] ss:$16 sps:$4 sm:$0xff]   ;;  %v8701_v16 = vld [vmem:[#allocation10 + $0x960] ss:$16 sps:$4 sm:$0xff]  }
 0x391   :  { %6486 = vmatprep.subr.bf16.mxu1 %v8644_v1  ;;  %v8704_v1 = vld [vmem:[#allocation10 + $0x968] ss:$16 sps:$4 sm:$0xff]  }
 0x393   :  { %6181 = vmatpush1.bf16.msra.mxu0 %v8639_v38  ;;  %v8709_v38 = vld [vmem:[#allocation10 + $0x984] ss:$16 sps:$4 sm:$0xff]  }
 0x394   :  { %6487 = vmatpush1.bf16.msra.mxu1 %v8642_v22  ;;  %6182 = vmatprep.subr.bf16.mxu0 %v8647_v3  ;;  %v8712_v22 = vld [vmem:[#allocation10 + $0x98c] ss:$16 sps:$4 sm:$0xff]   ;;  %v8707_v3 = vld [vmem:[#allocation10 + $0x980] ss:$16 sps:$4 sm:$0xff]  }
 0x395   :  { %6170 = vmatmul.mubr.bf16.gmra.mrb[24].mxu0 %v3606_v54  ;;  %6488 = vmatprep.subr.bf16.mxu1 %v8650_v52  ;;  %v8715_v52 = vld [vmem:[#allocation10 + $0x9a4] ss:$16 sps:$4 sm:$0xff]  }
 0x396   :  { %6476 = vmatmul.mubr.bf16.gmra.mrb[24].mxu1 %v3606_v54  ;;  %6210 = vmatprep.mubr.bf16.mxu0 %v9382_v36  ;;  %v8718_v54 = vld [vmem:[#allocation10 + $0x9ac] ss:$16 sps:$4 sm:$0xff]  }
 0x397   :  { %6183 = vmatpush1.bf16.msra.mxu0 %v8645_v24  ;;  %6516 = vmatprep.mubr.bf16.mxu1 %v9382_v36  ;;  %v8668_v36 = vld [vmem:[#allocation10 + $0x8a8] ss:$16 sps:$4 sm:$0xff]   ;;  %v8713_v24 = vld [vmem:[#allocation10 + $0x9a0] ss:$16 sps:$4 sm:$0xff]  }
 0x398   :  { %6489 = vmatpush1.bf16.msra.mxu1 %v8648_v44  ;;  %6184 = vmatprep.subr.bf16.mxu0 %v8655_v25  ;;  %v8716_v44 = vld [vmem:[#allocation10 + $0x9a8] ss:$16 sps:$4 sm:$0xff]   ;;  %v8721_v25 = vld [vmem:[#allocation10 + $0x9c4] ss:$16 sps:$4 sm:$0xff]  }
 0x399   :  { %6490 = vmatprep.subr.bf16.mxu1 %v8658_v4  ;;  %v8724_v4 = vld [vmem:[#allocation10 + $0x9cc] ss:$16 sps:$4 sm:$0xff]  }
 0x39b   :  { %6185 = vmatpush1.bf16.msra.mxu0 %v8653_v45  ;;  %v8719_v45 = vld [vmem:[#allocation10 + $0x9c0] ss:$16 sps:$4 sm:$0xff]  }
 0x39c   :  { %6491 = vmatpush1.bf16.msra.mxu1 %v8656_v21  ;;  %6186 = vmatprep.subr.bf16.mxu0 %v8661_v26  ;;  %v8722_v21 = vld [vmem:[#allocation10 + $0x9c8] ss:$16 sps:$4 sm:$0xff]   ;;  %v8727_v26 = vld [vmem:[#allocation10 + $0x9e4] ss:$16 sps:$4 sm:$0xff]  }
 0x39d   :  { %6492 = vmatprep.subr.bf16.mxu1 %v8664_v27  ;;  %v8730_v27 = vld [vmem:[#allocation10 + $0x9ec] ss:$16 sps:$4 sm:$0xff]  }
 0x39f   :  { %6187 = vmatpush1.bf16.msra.mxu0 %v8659_v17  ;;  %v8725_v17 = vld [vmem:[#allocation10 + $0x9e0] ss:$16 sps:$4 sm:$0xff]  }
 0x3a0   :  { %6493 = vmatpush1.bf16.msra.mxu1 %v8662_v18  ;;  %6188 = vmatprep.subr.bf16.mxu0 %v8667_v29  ;;  %v8728_v18 = vld [vmem:[#allocation10 + $0x9e8] ss:$16 sps:$4 sm:$0xff]   ;;  %v8733_v29 = vld [vmem:[#allocation10 + $0xa04] ss:$16 sps:$4 sm:$0xff]  }
 0x3a1   :  { %6494 = vmatprep.subr.bf16.mxu1 %v8670_v28  ;;  %v8736_v28 = vld [vmem:[#allocation10 + $0xa0c] ss:$16 sps:$4 sm:$0xff]  }
 0x3a3   :  { %6189 = vmatpush1.bf16.msra.mxu0 %v8665_v23  ;;  %v8731_v23 = vld [vmem:[#allocation10 + $0xa00] ss:$16 sps:$4 sm:$0xff]  }
 0x3a4   :  { %6495 = vmatpush1.bf16.msra.mxu1 %v8668_v36  ;;  %6190 = vmatprep.subr.bf16.mxu0 %v8673_v61  ;;  %v8734_v36 = vld [vmem:[#allocation10 + $0xa08] ss:$16 sps:$4 sm:$0xff]   ;;  %v8739_v61 = vld [vmem:[#allocation10 + $0xa24] ss:$16 sps:$4 sm:$0xff]  }
 0x3a5   :  { %6496 = vmatprep.subr.bf16.mxu1 %v8676_v13  ;;  %v8742_v13 = vld [vmem:[#allocation10 + $0xa2c] ss:$16 sps:$4 sm:$0xff]  }
 0x3a7   :  { %6191 = vmatpush1.bf16.msra.mxu0 %v8671_v8  ;;  %v9432_v49 = vpop.f32.mrb[12].mxu0  ;;  %v9434_v31 = vpop.f32.mrb[12].mxu1  ;;  %v8737_v8 = vld [vmem:[#allocation10 + $0xa20] ss:$16 sps:$4 sm:$0xff]  }
 0x3a8   :  { %6497 = vmatpush1.bf16.msra.mxu1 %v8674_v39  ;;  %6192 = vmatprep.subr.bf16.mxu0 %v8679_v40  ;;  %v9436_v55 = vpop.f32.mrb[13].mxu0  ;;  %v9438_v47 = vpop.f32.mrb[13].mxu1  ;;  %v8740_v39 = vld [vmem:[#allocation10 + $0xa28] ss:$16 sps:$4 sm:$0xff]   ;;  %v8745_v40 = vld [vmem:[#allocation10 + $0xa44] ss:$16 sps:$4 sm:$0xff]  }
 0x3a9   :  { %6498 = vmatprep.subr.bf16.mxu1 %v8682_v43  ;;  %v6022_v11 = vpop.f32.mrb[14].mxu0  ;;  %v6328_v10 = vpop.f32.mrb[14].mxu1  ;;  %v8748_v43 = vld [vmem:[#allocation10 + $0xa4c] ss:$16 sps:$4 sm:$0xff]  }
 0x3aa   :  { %v6023_v2 = vpop.f32.mrb[15].mxu0  ;;  %v6329_v50 = vpop.f32.mrb[15].mxu1  ;;  %v8754_v11 = vld [vmem:[#allocation10 + $0xa68] ss:$16 sps:$4 sm:$0xff]   ;;  %v8759_v10 = vld [vmem:[#allocation10 + $0xa84] ss:$16 sps:$4 sm:$0xff]  }
 0x3ab   :  { %6193 = vmatpush1.bf16.msra.mxu0 %v8677_v46  ;;  %v8743_v46 = vld [vmem:[#allocation10 + $0xa40] ss:$16 sps:$4 sm:$0xff]   ;;  %v8760_v50 = vld [vmem:[#allocation10 + $0xa88] ss:$16 sps:$4 sm:$0xff]  }
 0x3ac   :  { %6499 = vmatpush1.bf16.msra.mxu1 %v8680_v19  ;;  %6194 = vmatprep.subr.bf16.mxu0 %v8685_v15  ;;  %v8746_v19 = vld [vmem:[#allocation10 + $0xa48] ss:$16 sps:$4 sm:$0xff]   ;;  %v8753_v15 = vld [vmem:[#allocation10 + $0xa64] ss:$16 sps:$4 sm:$0xff]   ;;  %v8757_v2 = vld [vmem:[#allocation10 + $0xa80] ss:$16 sps:$4 sm:$0xff]  }
 0x3ad   :  { %6500 = vmatprep.subr.bf16.mxu1 %v8688_v41  ;;  %v8762_v41 = vld [vmem:[#allocation10 + $0xa8c] ss:$16 sps:$4 sm:$0xff]  }
 0x3af   :  { %6195 = vmatpush1.bf16.msra.mxu0 %v8683_v51  ;;  %v8765_v51 = vld [vmem:[#allocation10 + $0xaa4] ss:$16 sps:$4 sm:$0xff]  }
 0x3b0   :  { %6501 = vmatpush1.bf16.msra.mxu1 %v8686_v57  ;;  %6196 = vmatprep.subr.bf16.mxu0 %v8691_v62  ;;  %v4032_v57 = vld [vmem:[#allocation12] sm:$0xf] }
 0x3b1   :  { %6502 = vmatprep.subr.bf16.mxu1 %v8694_v6  ;;  %v8763_v62 = vld [vmem:[#allocation10 + $0xaa0] ss:$16 sps:$4 sm:$0xff]   ;;  %v8771_v6 = vld [vmem:[#allocation10 + $0xac4] ss:$16 sps:$4 sm:$0xff]  }
 0x3b3   :  { %6197 = vmatpush1.bf16.msra.mxu0 %v8689_v7  ;;  %v9450_v7 = vrot.slane %v4032_v57, %v818_v59  ;;  %v8772_v59 = vld [vmem:[#allocation10 + $0xac8] ss:$16 sps:$4 sm:$0xff]  }
 0x3b4   :  { %6503 = vmatpush1.bf16.msra.mxu1 %v8692_v12  ;;  %6198 = vmatprep.subr.bf16.mxu0 %v8697_v42  ;;  %v9454_v12 = vrot.slane %v4032_v57, %v826_v60  ;;  %v8774_v42 = vld [vmem:[#allocation10 + $0xacc] ss:$16 sps:$4 sm:$0xff]  }
 0x3b5   :  { %6504 = vmatprep.subr.bf16.mxu1 %v8700_v9  ;;  %v9458_v9 = vrot.slane %v4032_v57, %v822_v63  ;;  %v6019_v60 = vadd.f32 %v9432_v49, %v9450_v7  ;;  %v8775_v49 = vld [vmem:[#allocation10 + $0xae0] ss:$16 sps:$4 sm:$0xff]  }
 0x3b7   :  { %6199 = vmatpush1.bf16.msra.mxu0 %v8695_v53  ;;  %v9462_v53 = vrot.slane %v4032_v57, %v830_v0  ;;  %v6021_v63 = vadd.f32 %v9436_v55, %v9458_v9  ;;  %v8778_v55 = vld [vmem:[#allocation10 + $0xae8] ss:$16 sps:$4 sm:$0xff]   ;;  %v8823_v57 = vld [vmem:[#allocation10 + $0xbe0] ss:$16 sps:$4 sm:$0xff]  }
 0x3b8   :  { %6505 = vmatpush1.bf16.msra.mxu1 %v8698_v56  ;;  %6200 = vmatprep.subr.bf16.mxu0 %v8703_v32  ;;  %v8769_v56 = vld [vmem:[#allocation10 + $0xac0] ss:$16 sps:$4 sm:$0xff]   ;;  %v8777_v32 = vld [vmem:[#allocation10 + $0xae4] ss:$16 sps:$4 sm:$0xff]  }
 0x3b9   :  { %6506 = vmatprep.subr.bf16.mxu1 %v8706_v14  ;;  %v6325_v14 = vadd.f32 %v9434_v31, %v9454_v12  ;;  %v6327_v58 = vadd.f32 %v9438_v47, %v9462_v53  ;;  %v8783_v47 = vld [vmem:[#allocation10 + $0xb04] ss:$16 sps:$4 sm:$0xff]  }
 0x3bb   :  { %6201 = vmatpush1.bf16.msra.mxu0 %v8701_v16  ;;  %v8780_v16 = vld [vmem:[#allocation10 + $0xaec] ss:$16 sps:$4 sm:$0xff]  }
 0x3bc   :  { %6507 = vmatpush1.bf16.msra.mxu1 %v8704_v1  ;;  %6202 = vmatprep.subr.bf16.mxu0 %v8709_v38 }
 0x3bd   :  { %6508 = vmatprep.subr.bf16.mxu1 %v8712_v22 }
 0x3bf   :  { %6203 = vmatpush1.bf16.msra.mxu0 %v8707_v3 }
 0x3c0   :  { %6509 = vmatpush1.bf16.msra.mxu1 %v8710_v20  ;;  %6204 = vmatprep.subr.bf16.mxu0 %v8715_v52 }
 0x3c1   :  { %6510 = vmatprep.subr.bf16.mxu1 %v8718_v54 }
 0x3c3   :  { %6205 = vmatpush1.bf16.msra.mxu0 %v8713_v24 }
 0x3c4   :  { %6511 = vmatpush1.bf16.msra.mxu1 %v8716_v44  ;;  %6206 = vmatprep.subr.bf16.mxu0 %v8721_v25 }
 0x3c5   :  { %6512 = vmatprep.subr.bf16.mxu1 %v8724_v4  ;;  %v8786_v4 = vld [vmem:[#allocation10 + $0xb0c] ss:$16 sps:$4 sm:$0xff]  }
 0x3c7   :  { %6207 = vmatpush1.bf16.msra.mxu0 %v8719_v45  ;;  %v8781_v45 = vld [vmem:[#allocation10 + $0xb00] ss:$16 sps:$4 sm:$0xff]  }
 0x3c8   :  { %6513 = vmatpush1.bf16.msra.mxu1 %v8722_v21  ;;  %6208 = vmatprep.subr.bf16.mxu0 %v8727_v26  ;;  %v8784_v21 = vld [vmem:[#allocation10 + $0xb08] ss:$16 sps:$4 sm:$0xff]   ;;  %v8789_v26 = vld [vmem:[#allocation10 + $0xb24] ss:$16 sps:$4 sm:$0xff]  }
 0x3c9   :  { %6514 = vmatprep.subr.bf16.mxu1 %v8730_v27  ;;  %v8792_v27 = vld [vmem:[#allocation10 + $0xb2c] ss:$16 sps:$4 sm:$0xff]  }
 0x3cb   :  { %6209 = vmatpush1.bf16.msra.mxu0 %v8725_v17  ;;  %v8787_v17 = vld [vmem:[#allocation10 + $0xb20] ss:$16 sps:$4 sm:$0xff]  }
 0x3cc   :  { %6515 = vmatpush1.bf16.msra.mxu1 %v8728_v18  ;;  %6229 = vmatprep.subr.bf16.mxu0 %v8733_v29  ;;  %v8790_v18 = vld [vmem:[#allocation10 + $0xb28] ss:$16 sps:$4 sm:$0xff]   ;;  %v8795_v29 = vld [vmem:[#allocation10 + $0xb44] ss:$16 sps:$4 sm:$0xff]  }
 0x3cd   :  { %6535 = vmatprep.subr.bf16.mxu1 %v8736_v28  ;;  %v8798_v28 = vld [vmem:[#allocation10 + $0xb4c] ss:$16 sps:$4 sm:$0xff]  }
 0x3ce   :  { %6211 = vmatmul.mubr.bf16.vlgmr.msra.gmra.mrb[8].mxu0 %v9386_v48 }
 0x3cf   :  { %6517 = vmatmul.mubr.bf16.vlgmr.msra.gmra.mrb[8].mxu1 %v9386_v48  ;;  %6220 = vmatprep.mubr.bf16.mxu0 %v9369_v30  ;;  %v8756_v48 = vld [vmem:[#allocation10 + $0xa6c] ss:$16 sps:$4 sm:$0xff]  }
 0x3d0   :  { %6230 = vmatpush1.bf16.msra.mxu0 %v8731_v23  ;;  %6526 = vmatprep.mubr.bf16.mxu1 %v9369_v30  ;;  %v8751_v30 = vld [vmem:[#allocation10 + $0xa60] ss:$16 sps:$4 sm:$0xff]  }
 0x3d1   :  { %6536 = vmatpush1.bf16.msra.mxu1 %v8734_v36  ;;  %6231 = vmatprep.subr.bf16.mxu0 %v8739_v61  ;;  %v8793_v23 = vld [vmem:[#allocation10 + $0xb40] ss:$16 sps:$4 sm:$0xff]   ;;  %v8796_v36 = vld [vmem:[#allocation10 + $0xb48] ss:$16 sps:$4 sm:$0xff]   ;;  %v8801_v61 = vld [vmem:[#allocation10 + $0xb64] ss:$16 sps:$4 sm:$0xff]  }
 0x3d2   :  { %6537 = vmatprep.subr.bf16.mxu1 %v8742_v13  ;;  %v8804_v13 = vld [vmem:[#allocation10 + $0xb6c] ss:$16 sps:$4 sm:$0xff]  }
 0x3d4   :  { %6232 = vmatpush1.bf16.msra.mxu0 %v8737_v8  ;;  %v8799_v8 = vld [vmem:[#allocation10 + $0xb60] ss:$16 sps:$4 sm:$0xff]  }
 0x3d5   :  { %6538 = vmatpush1.bf16.msra.mxu1 %v8740_v39  ;;  %6233 = vmatprep.subr.bf16.mxu0 %v8745_v40  ;;  %v8802_v39 = vld [vmem:[#allocation10 + $0xb68] ss:$16 sps:$4 sm:$0xff]   ;;  %v8807_v40 = vld [vmem:[#allocation10 + $0xb84] ss:$16 sps:$4 sm:$0xff]  }
 0x3d6   :  { %6221 = vmatmul.mubr.bf16.gmra.mrb[28].mxu0 %v9372_v33  ;;  %6539 = vmatprep.subr.bf16.mxu1 %v8748_v43  ;;  %v8810_v43 = vld [vmem:[#allocation10 + $0xb8c] ss:$16 sps:$4 sm:$0xff]  }
 0x3d7   :  { %6527 = vmatmul.mubr.bf16.gmra.mrb[28].mxu1 %v9372_v33  ;;  %6261 = vmatprep.mubr.bf16.mxu0 %v9390_v37  ;;  %v8768_v33 = vld [vmem:[#allocation10 + $0xaac] ss:$16 sps:$4 sm:$0xff]  }
 0x3d8   :  { %6234 = vmatpush1.bf16.msra.mxu0 %v8743_v46  ;;  %6567 = vmatprep.mubr.bf16.mxu1 %v9390_v37  ;;  %v8766_v37 = vld [vmem:[#allocation10 + $0xaa8] ss:$16 sps:$4 sm:$0xff]   ;;  %v8805_v46 = vld [vmem:[#allocation10 + $0xb80] ss:$16 sps:$4 sm:$0xff]  }
 0x3d9   :  { %6540 = vmatpush1.bf16.msra.mxu1 %v8746_v19  ;;  %6235 = vmatprep.subr.bf16.mxu0 %v8753_v15  ;;  %v8808_v19 = vld [vmem:[#allocation10 + $0xb88] ss:$16 sps:$4 sm:$0xff]   ;;  %v8813_v15 = vld [vmem:[#allocation10 + $0xba4] ss:$16 sps:$4 sm:$0xff]  }
 0x3da   :  { %6541 = vmatprep.subr.bf16.mxu1 %v8756_v48  ;;  %v8816_v48 = vld [vmem:[#allocation10 + $0xbac] ss:$16 sps:$4 sm:$0xff]  }
 0x3dc   :  { %6236 = vmatpush1.bf16.msra.mxu0 %v8751_v30  ;;  %v8811_v30 = vld [vmem:[#allocation10 + $0xba0] ss:$16 sps:$4 sm:$0xff]  }
 0x3dd   :  { %6542 = vmatpush1.bf16.msra.mxu1 %v8754_v11  ;;  %6237 = vmatprep.subr.bf16.mxu0 %v8759_v10  ;;  %v8814_v11 = vld [vmem:[#allocation10 + $0xba8] ss:$16 sps:$4 sm:$0xff]   ;;  %v8819_v10 = vld [vmem:[#allocation10 + $0xbc4] ss:$16 sps:$4 sm:$0xff]  }
 0x3de   :  { %6543 = vmatprep.subr.bf16.mxu1 %v8762_v41  ;;  %v8822_v41 = vld [vmem:[#allocation10 + $0xbcc] ss:$16 sps:$4 sm:$0xff]  }
 0x3e0   :  { %6238 = vmatpush1.bf16.msra.mxu0 %v8757_v2  ;;  %v8817_v2 = vld [vmem:[#allocation10 + $0xbc0] ss:$16 sps:$4 sm:$0xff]  }
 0x3e1   :  { %6544 = vmatpush1.bf16.msra.mxu1 %v8760_v50  ;;  %6239 = vmatprep.subr.bf16.mxu0 %v8765_v51  ;;  %v8820_v50 = vld [vmem:[#allocation10 + $0xbc8] ss:$16 sps:$4 sm:$0xff]   ;;  %v8825_v51 = vld [vmem:[#allocation10 + $0xbe4] ss:$16 sps:$4 sm:$0xff]  }
 0x3e2   :  { %6545 = vmatprep.subr.bf16.mxu1 %v8768_v33  ;;  %v8828_v33 = vld [vmem:[#allocation10 + $0xbec] ss:$16 sps:$4 sm:$0xff]  }
 0x3e4   :  { %6240 = vmatpush1.bf16.msra.mxu0 %v8763_v62  ;;  %v8826_v62 = vld [vmem:[#allocation10 + $0xbe8] ss:$16 sps:$4 sm:$0xff]  }
 0x3e5   :  { %6546 = vmatpush1.bf16.msra.mxu1 %v8766_v37  ;;  %6241 = vmatprep.subr.bf16.mxu0 %v8771_v6 }
 0x3e6   :  { %6547 = vmatprep.subr.bf16.mxu1 %v8774_v42 }
 0x3e7   :  { %v6069_v0 = vpop.f32.mrb[16].mxu0  ;;  %v6375_v1 = vpop.f32.mrb[16].mxu1 }
 0x3e8   :  { %6242 = vmatpush1.bf16.msra.mxu0 %v8769_v56  ;;  %v9472_v38 = vadd.f32 %v6069_v0, %v6019_v60  ;;  %v9474_v22 = vadd.f32 %v6375_v1, %v6325_v14  ;;  %v6071_v3 = vpop.f32.mrb[17].mxu0  ;;  %v6377_v20 = vpop.f32.mrb[17].mxu1 }
 0x3e9   :  { %6548 = vmatpush1.bf16.msra.mxu1 %v8772_v59  ;;  %v9476_v31 = vadd.f32 %v6071_v3, %v6021_v63  ;;  %6243 = vmatprep.subr.bf16.mxu0 %v8777_v32  ;;  %v9478_v52 = vadd.f32 %v6377_v20, %v6327_v58  ;;  %v6073_v54 = vpop.f32.mrb[18].mxu0  ;;  %v6379_v24 = vpop.f32.mrb[18].mxu1 }
 0x3ea   :  { %6549 = vmatprep.subr.bf16.mxu1 %v8780_v16  ;;  %v6074_v44 = vpop.f32.mrb[19].mxu0  ;;  %v6380_v25 = vpop.f32.mrb[19].mxu1 }
 0x3ec   :  { %6244 = vmatpush1.bf16.msra.mxu0 %v8775_v49 }
 0x3ed   :  { %6550 = vmatpush1.bf16.msra.mxu1 %v8778_v55  ;;  %6245 = vmatprep.subr.bf16.mxu0 %v8783_v47 }
 0x3ee   :  { %6551 = vmatprep.subr.bf16.mxu1 %v8786_v4 }
 0x3f0   :  { %6246 = vmatpush1.bf16.msra.mxu0 %v8781_v45 }
 0x3f1   :  { %6552 = vmatpush1.bf16.msra.mxu1 %v8784_v21  ;;  %6247 = vmatprep.subr.bf16.mxu0 %v8789_v26 }
 0x3f2   :  { %6553 = vmatprep.subr.bf16.mxu1 %v8792_v27 }
 0x3f4   :  { %6248 = vmatpush1.bf16.msra.mxu0 %v8787_v17 }
 0x3f5   :  { %6554 = vmatpush1.bf16.msra.mxu1 %v8790_v18  ;;  %6249 = vmatprep.subr.bf16.mxu0 %v8795_v29  ;;  %v6602_v29 = vld [vmem:[#allocation4 + $0x20] sm:$0xff] }
 0x3f6   :  { %6555 = vmatprep.subr.bf16.mxu1 %v8798_v28  ;;  %v6604_v28 = vld [vmem:[#allocation4 + $0x30] sm:$0xff] }
 0x3f8   :  { %6250 = vmatpush1.bf16.msra.mxu0 %v8793_v23 }
 0x3f9   :  { %6556 = vmatpush1.bf16.msra.mxu1 %v8796_v36  ;;  %6251 = vmatprep.subr.bf16.mxu0 %v8801_v61  ;;  %v6586_v36 = vld [vmem:[#allocation4] sm:$0xff]  ;;  %v6603_v61 = vld [vmem:[#allocation4 + $0x28] sm:$0xff] }
 0x3fa   :  { %6557 = vmatprep.subr.bf16.mxu1 %v8804_v13 }
 0x3fc   :  { %6252 = vmatpush1.bf16.msra.mxu0 %v8799_v8 }
 0x3fd   :  { %6558 = vmatpush1.bf16.msra.mxu1 %v8802_v39  ;;  %6253 = vmatprep.subr.bf16.mxu0 %v8807_v40  ;;  %v6588_v39 = vld [vmem:[#allocation4 + $0x10] sm:$0xff] }
 0x3fe   :  { %6559 = vmatprep.subr.bf16.mxu1 %v8810_v43  ;;  %v6587_v43 = vld [vmem:[#allocation4 + $0x8] sm:$0xff] }
 0x400   :  { %6254 = vmatpush1.bf16.msra.mxu0 %v8805_v46 }
 0x401   :  { %6560 = vmatpush1.bf16.msra.mxu1 %v8808_v19  ;;  %6255 = vmatprep.subr.bf16.mxu0 %v8813_v15 }
 0x402   :  { %6561 = vmatprep.subr.bf16.mxu1 %v8816_v48  ;;  %v6589_v48 = vld [vmem:[#allocation4 + $0x18] sm:$0xff] }
 0x404   :  { %6256 = vmatpush1.bf16.msra.mxu0 %v8811_v30 }
 0x405   :  { %6562 = vmatpush1.bf16.msra.mxu1 %v8814_v11  ;;  %6257 = vmatprep.subr.bf16.mxu0 %v8819_v10  ;;  %v6610_v11 = vrot.slane %v6602_v29, 6  ;;  %v6612_v10 = vrot.slane %v6604_v28, 6 }
 0x406   :  { %6563 = vmatprep.subr.bf16.mxu1 %v8822_v41  ;;  %v6605_v41 = vld [vmem:[#allocation4 + $0x38] sm:$0xff] }
 0x408   :  { %6258 = vmatpush1.bf16.msra.mxu0 %v8817_v2 }
 0x409   :  { %6564 = vmatpush1.bf16.msra.mxu1 %v8820_v50  ;;  %6259 = vmatprep.subr.bf16.mxu0 %v8825_v51 }
 0x40a   :  { %6565 = vmatprep.subr.bf16.mxu1 %v8828_v33 }
 0x40c   :  { %6260 = vmatpush1.bf16.msra.mxu0 %v8823_v57 }
 0x40d   :  { %6566 = vmatpush1.bf16.msra.mxu1 %v8826_v62  ;;  %v6611_v62 = vrot.slane %v6603_v61, 6 }
 0x40f   :  { %6262 = vmatmul.mubr.bf16.vlgmr.msra.gmra.mrb[8].mxu0 %v9394_v5 }
 0x410   :  { %6568 = vmatmul.mubr.bf16.vlgmr.msra.gmra.mrb[8].mxu1 %v9394_v5  ;;  %6271 = vmatprep.mubr.bf16.mxu0 %v9375_v34 }
 0x411   :  { %6577 = vmatprep.mubr.bf16.mxu1 %v9375_v34 }
 0x417   :  { %6272 = vmatmul.mubr.bf16.gmra.mrb[32].mxu0 %v9378_v35 }
 0x418   :  { %6578 = vmatmul.mubr.bf16.gmra.mrb[32].mxu1 %v9378_v35 }
 0x427   :  { %v6120_v37 = vpop.f32.mrb[20].mxu0 }
 0x428   :  { %v6121_v6 = vadd.f32 %v6120_v37, %v9472_v38  ;;  %v6426_v42 = vpop.f32.mrb[20].mxu1  ;;  %v6122_v56 = vpop.f32.mrb[21].mxu0 }
 0x429   :  { %v6427_v59 = vadd.f32 %v6426_v42, %v9474_v22  ;;  %v6123_v32 = vadd.f32 %v6122_v56, %v9476_v31  ;;  %v6428_v60 = vpop.f32.mrb[21].mxu1  ;;  %v6124_v14 = vpop.f32.mrb[22].mxu0 }
 0x42a   :  { %v6429_v5 = vadd.f32 %v6428_v60, %v9478_v52  ;;  %v6430_v16 = vpop.f32.mrb[22].mxu1  ;;  %v6125_v63 = vpop.f32.mrb[23].mxu0 }
 0x42b   :  { %v6431_v34 = vpop.f32.mrb[23].mxu1 }
 0x468   :  { %v6171_v58 = vpop.f32.mrb[24].mxu0 }
 0x469   :  { %v6172_v0 = vadd.f32 %v6171_v58, %v6121_v6  ;;  %v6477_v1 = vpop.f32.mrb[24].mxu1  ;;  %v6173_v35 = vpop.f32.mrb[25].mxu0 }
 0x46a   :  { %v6478_v3 = vadd.f32 %v6477_v1, %v6427_v59  ;;  %v6174_v49 = vadd.f32 %v6173_v35, %v6123_v32  ;;  %v6479_v38 = vpop.f32.mrb[25].mxu1  ;;  %v6175_v20 = vpop.f32.mrb[26].mxu0 }
 0x46b   :  { %v6480_v55 = vadd.f32 %v6479_v38, %v6429_v5  ;;  %v6481_v54 = vpop.f32.mrb[26].mxu1  ;;  %v6176_v22 = vpop.f32.mrb[27].mxu0  ;;  %v6613_v5 = vrot.slane %v6605_v41, 6 }
 0x46c   :  { %v6482_v24 = vpop.f32.mrb[27].mxu1 }
 0x4a9   :  { %v6222_v31 = vpop.f32.mrb[28].mxu0 }
 0x4aa   :  { %v6223_v47 = vadd.f32 %v6222_v31, %v6172_v0  ;;  %v6528_v44 = vpop.f32.mrb[28].mxu1  ;;  %v6224_v25 = vpop.f32.mrb[29].mxu0 }
 0x4ab   :  { %v6529_v52 = vadd.f32 %v6528_v44, %v6478_v3  ;;  %v6225_v4 = vadd.f32 %v6224_v25, %v6174_v49  ;;  %v6530_v45 = vpop.f32.mrb[29].mxu1  ;;  %v6226_v21 = vpop.f32.mrb[30].mxu0 }
 0x4ac   :  { %v6531_v26 = vadd.f32 %v6530_v45, %v6480_v55  ;;  %v6532_v27 = vpop.f32.mrb[30].mxu1  ;;  %v6227_v17 = vpop.f32.mrb[31].mxu0 }
 0x4ad   :  { %v6533_v18 = vpop.f32.mrb[31].mxu1 }
 0x4e2   :  { %v6263_v23 = vpop.f32.mrb[8].mxu0 }
 0x4e3   :  { %v7515_v13 = vadd.f32 %v6263_v23, %v9450_v7  ;;  %v6569_v8 = vpop.f32.mrb[8].mxu1  ;;  %v6265_v40 = vpop.f32.mrb[9].mxu0 }
 0x4e4   :  { %v7519_v46 = vadd.f32 %v6569_v8, %v9454_v12  ;;  %v7516_v19 = vadd.f32 %v6265_v40, %v9458_v9  ;;  %v6571_v15 = vpop.f32.mrb[9].mxu1  ;;  %v6267_v30 = vpop.f32.mrb[10].mxu0 }
 0x4e5   :  { %v6590_v2 = vadd.f32 %v7515_v13, %v6586_v36  ;;  %v7520_v50 = vadd.f32 %v6571_v15, %v9462_v53  ;;  %v7517_v51 = vadd.f32 %v6267_v30, %v9450_v7  ;;  %v6573_v33 = vpop.f32.mrb[10].mxu1  ;;  %v6269_v57 = vpop.f32.mrb[11].mxu0 }
 0x4e6   :  { %v6592_v37 = vadd.f32 %v7519_v46, %v6588_v39  ;;  %v6591_v6 = vadd.f32 %v7516_v19, %v6587_v43  ;;  %v7521_v42 = vadd.f32 %v6573_v33, %v9454_v12  ;;  %v7518_v56 = vadd.f32 %v6269_v57, %v9458_v9  ;;  %v6575_v59 = vpop.f32.mrb[11].mxu1 }
 0x4e7   :  { %v6594_v32 = vmax.f32 %v6590_v2, 0.0  ;;  %v6593_v60 = vadd.f32 %v7520_v50, %v6589_v48  ;;  %v7522_v14 = vadd.f32 %v6575_v59, %v9462_v53  ;;  %v6618_v7 = vadd.f32 %v7517_v51, %v6610_v11 }
 0x4e8   :  { %v6596_v16 = vmax.f32 %v6592_v37, 0.0  ;;  %v6595_v63 = vmax.f32 %v6591_v6, 0.0  ;;  %v6620_v58 = vadd.f32 %v7521_v42, %v6612_v10  ;;  %v6619_v0 = vadd.f32 %v7518_v56, %v6611_v62 }
 0x4e9   :  { %6598 = vst [vmem:[#allocation13] sm:$0xff] %v6594_v32  ;;  %v6597_v34 = vmax.f32 %v6593_v60, 0.0  ;;  %v6621_v12 = vadd.f32 %v7522_v14, %v6613_v5  ;;  %v6626_v55 = vmax.f32 %v6618_v7, 0.0 }
 0x4ea   :  { %6600 = vst [vmem:[#allocation13 + $0x10] sm:$0xff] %v6596_v16  ;;  %6599 = vst [vmem:[#allocation13 + $0x8] sm:$0xff] %v6595_v63  ;;  %v6273_v1 = vpop.f32.mrb[32].mxu0  ;;  %v6628_v44 = vmax.f32 %v6620_v58, 0.0  ;;  %v6627_v25 = vmax.f32 %v6619_v0, 0.0 }
 0x4eb   :  { %6601 = vst [vmem:[#allocation13 + $0x18] sm:$0xff] %v6597_v34  ;;  %v6274_v35 = vadd.f32 %v6273_v1, %v6223_v47  ;;  %v6579_v9 = vpop.f32.mrb[32].mxu1  ;;  %v6275_v3 = vpop.f32.mrb[33].mxu0  ;;  %v6629_v17 = vmax.f32 %v6621_v12, 0.0 }
 0x4ec   :  { %v6580_v49 = vadd.f32 %v6579_v9, %v6529_v52  ;;  %v6276_v38 = vadd.f32 %v6275_v3, %v6225_v4  ;;  %v6581_v20 = vpop.f32.mrb[33].mxu1  ;;  %v6277_v53 = vpop.f32.mrb[34].mxu0  ;;  %v6643_v52 = vrot.slane %v6626_v55, 2  ;;  %v6649_v36 = vrot.slane %v6628_v44, 2 }
 0x4ed   :  { %v6622_v54 = vadd.f32 %v6610_v11, %v6274_v35  ;;  %v6582_v22 = vadd.f32 %v6581_v20, %v6531_v26  ;;  %v6583_v24 = vpop.f32.mrb[34].mxu1  ;;  %v6278_v31 = vpop.f32.mrb[35].mxu0  ;;  %v6646_v26 = vrot.slane %v6627_v25, 2  ;;  %v6652_v8 = vrot.slane %v6629_v17, 2 }
 0x4ee   :  { %v6624_v45 = vadd.f32 %v6612_v10, %v6580_v49  ;;  %v6623_v21 = vadd.f32 %v6611_v62, %v6276_v38  ;;  %v6584_v27 = vpop.f32.mrb[35].mxu1 }
 0x4ef   :  { %v6630_v18 = vmax.f32 %v6622_v54, 0.0  ;;  %v6625_v29 = vadd.f32 %v6613_v5, %v6582_v22 }
 0x4f0   :  { %v6632_v47 = vmax.f32 %v6624_v45, 0.0  ;;  %v6631_v28 = vmax.f32 %v6623_v21, 0.0 }
 0x4f1   :  { %v6644_v4 = vrot.slane %v6630_v18, 2  ;;  %v6633_v23 = vmax.f32 %v6625_v29, 0.0 }
 0x4f2   :  { %v6650_v61 = vrot.slane %v6632_v47, 2  ;;  %v6647_v13 = vrot.slane %v6631_v28, 2 }
 0x4f3   :  { %v6645_v39 = vsel %vm6642_vm6, %v6643_v52, %v6644_v4  ;;  %v6653_v40 = vrot.slane %v6633_v23, 2 }
 0x4f4   :  { %6660 = vst [vmem:[#allocation13 + $0x20] sm:$0xff] %v6645_v39  ;;  %v6651_v43 = vsel %vm6642_vm6, %v6649_v36, %v6650_v61  ;;  %v6648_v46 = vsel %vm6642_vm6, %v6646_v26, %v6647_v13 }
 0x4f5   :  { %6662 = vst [vmem:[#allocation13 + $0x30] sm:$0xff] %v6651_v43  ;;  %6661 = vst [vmem:[#allocation13 + $0x28] sm:$0xff] %v6648_v46  ;;  %v6654_v19 = vsel %vm6642_vm6, %v6652_v8, %v6653_v40 }
 0x4f6   :  { %6663 = vst [vmem:[#allocation13 + $0x38] sm:$0xff] %v6654_v19 }
 0x4f7   :  { %8952 = shalt.err (!%p8949_p2)
}
 0x4f8   :  { %s8953_s7 = scalar_lea.hbm %s9522_s5, 1024 }
 0x4f9   :  { %p8954_p3 = scmp.ne.s32.totalorder %s9522_s5, %s8953_s7  ;;  %p8957_p4 = scmp.lt.u32.totalorder %s8953_s7, %s9522_s5 }
 0x4fb   :  { %p8959_p5 = pnand %p8957_p4, %p8954_p3 }
 0x4fd   :  { %8962 = shalt.err (!%p8959_p5)
}
 0x4fe   :  { %6675 = dma.vmem_to_hbm [thread:$0]  %s6670_s27, 1024, %s9522_s5, [#allocation6], %s8976_s3, %s8976_s3, %s8977_s28  }
 0x4ff   :  { %8969 = dma.done.wait [#allocation6], 1024  }
 0x500   :  { %8970 = vsyncadd [#allocation6], 4294966272 }
 0x501   :  { %6679 = vsyncpa [#allocation5], 1 }
 0x502   :  { %6680 = vsyncpa [#allocation8], 1 }
 0x503   :  { %6681 = vsyncpa [#allocation11], 1 }
 0x504   :  { %6682 = vsyncpa [#allocation6], 1 }

</bundles_post_ra>
